<compile_context>
chip_gen: v7x
topology: tpu7x:2x2x1
jax: 0.10.0
libtpu: 0.0.40
codegen_flags: <defaults>
</compile_context>

<pallas_src>
import functools
import numpy as np

import jax
import jax.numpy as jnp
from jax import lax
from jax.experimental import pallas as pl
from jax.experimental.pallas import tpu as pltpu


# MXU operand dtype. bf16 (with f32 accumulate) gives ~3x fewer MXU passes on
# v5e and halves operand vreg traffic on v6e/v7x, but its ~1e-3 relative error
# is marginal against the 2e-3 check below, so default to f32. Elementwise /
# softmax math always stays f32 (v5e has no bf16 VPU/EUP).
MXU_DTYPE = jnp.float32


# ----------------------------------------------------------------------------
# Fused Pallas kernel: 4 hetero-GAT layers, both edge types, all heads.
# ----------------------------------------------------------------------------
def _fused_gat_kernel(x_ref, mask_ref, slab_ref, out_ref, *, heads, feats, layout):
    """Fused forward: every layer, head and edge type, fully VMEM resident.

    x_ref    : (N, Din0)      input node features (f32).
    mask_ref : (2, N, N)      additive softmax masks, (adj_t - 1) * 1e9.
    slab_ref : (rows, lanes)  all packed parameters; layout[l] holds static
                              (row0, rows, cols) entries for (W, AA, b):
        W  : (Din, 2*H*F)  fc weights, columns packed [edge-type, head, feature]
        AA : (4*H, 2*H*F)  rows [0,2H) block-diag attn_r, rows [2H,4H) attn_l
        b  : (1, H*F)      b_interacts + b_external, head-major
    out_ref  : (N, H_last*F_last) final-layer output (only HBM store).
    """
    n_layers = len(heads)
    mask = mask_ref[...][:, None, :, :]                 # (2, 1, N, N), loaded once

    h = x_ref[...]                                      # (N, Din0), f32
    N = h.shape[0]

    for li in range(n_layers):                          # static unroll (4 layers)
        H, F = heads[li], feats[li]
        (w0, wr, wc), (a0, anr, ac), (b0, bnr, bc) = layout[li]
        W = slab_ref[w0:w0 + wr, :wc]                   # (Din, 2HF)  free slice
        AA = slab_ref[a0:a0 + anr, :ac]                 # (4H, 2HF)
        b = slab_ref[b0:b0 + bnr, :bc]                  # (1, HF)

        # (1) One wide fc matmul: all heads x both edge types at once.
        feat_all = jnp.dot(h.astype(MXU_DTYPE), W.astype(MXU_DTYPE),
                           preferred_element_type=jnp.float32)          # (N, 2HF)

        # (2) Both attention terms for every head / edge type in one matmul:
        #     scoresT[j, n]    = <feat(j)[n,:], attn_r(j)>   (destination term)
        #     scoresT[2H+j, n] = <feat(j)[n,:], attn_l(j)>   (source term)
        scoresT = lax.dot_general(
            AA.astype(MXU_DTYPE), feat_all.astype(MXU_DTYPE),
            (((1,), (1,)), ((), ())),
            preferred_element_type=jnp.float32)                         # (4H, N)
        ERt = scoresT[:2 * H, :]                                        # (2H, N)
        ELt = scoresT[2 * H:, :]                                        # (2H, N)

        # (3) Batched logits + LeakyReLU + masked softmax over all 2H slabs in
        #     one pass (one EUP exp stream, two XLU reduces) instead of 2H
        #     serial per-(head, edge-type) chains.
        # TODO(synk): follow-up lane-densification — pack logits as (N, 2H*N)
        # so the elementwise phase runs at full 128-lane density.
        E = ERt[:, :, None] + ELt[:, None, :]            # (2H, Ndst, Nsrc)
        E = jnp.maximum(E, 0.2 * E)                      # LeakyReLU(0.2)
        S = E.reshape(2, H, N, N) + mask                 # additive adjacency mask
        S = S - jnp.max(S, axis=-1, keepdims=True)
        P = jnp.exp(S)
        inv = pl.reciprocal(jnp.sum(P, axis=-1, keepdims=True), approx=True)
        A = P * inv                                      # normalized attention

        # (4) Aggregation: per head a single K=2N matmul covering both edge
        #     types (alpha blocks concatenated along lanes, feat blocks along
        #     sublanes); head outputs concatenated as values -> no VMEM bounce.
        head_outs = []
        for hh in range(H):                              # static unroll, H <= 4
            acat = jnp.concatenate([A[0, hh], A[1, hh]], axis=1)        # (N, 2N)
            fcat = jnp.concatenate(
                [feat_all[:, hh * F:(hh + 1) * F],
                 feat_all[:, (H + hh) * F:(H + hh + 1) * F]], axis=0)   # (2N, F)
            head_outs.append(
                jnp.dot(acat.astype(MXU_DTYPE), fcat.astype(MXU_DTYPE),
                        preferred_element_type=jnp.float32))            # (N, F)
        out = head_outs[0] if H == 1 else jnp.concatenate(head_outs, axis=1)
        out = out + b                                    # summed biases (b_i + b_e)

        if li < n_layers - 1:
            h = jnp.maximum(out, 0.0)                    # ReLU; head-major concat
        else:
            out_ref[...] = out                           # only final slab to HBM


# ----------------------------------------------------------------------------
# Host-side parameter packing: everything into ONE lane-dense slab.
# ----------------------------------------------------------------------------
def _pack_layer_arrays(p):
    """-> [W (Din,2HF), AA (4H,2HF), b (1,HF)] numpy f32 for one layer."""
    W_i = np.asarray(p["W_i"], np.float32)               # (H, Din, F)
    W_e = np.asarray(p["W_e"], np.float32)
    H, Din, F = W_i.shape
    W = np.concatenate([np.transpose(W_i, (1, 0, 2)).reshape(Din, H * F),
                        np.transpose(W_e, (1, 0, 2)).reshape(Din, H * F)], axis=1)
    ar = np.concatenate([np.asarray(p["ar_i"], np.float32)[:, 0, :],
                         np.asarray(p["ar_e"], np.float32)[:, 0, :]], axis=0)  # (2H,F)
    al = np.concatenate([np.asarray(p["al_i"], np.float32)[:, 0, :],
                         np.asarray(p["al_e"], np.float32)[:, 0, :]], axis=0)  # (2H,F)

    def blkdiag(v):                                      # (2H, F) -> (2H, 2H*F)
        m = np.zeros((2 * H, 2 * H * F), np.float32)
        for j in range(2 * H):
            m[j, j * F:(j + 1) * F] = v[j]
        return m

    AA = np.concatenate([blkdiag(ar), blkdiag(al)], axis=0)            # (4H, 2HF)
    b = (np.asarray(p["b_i"], np.float32)[:, 0, :]
         + np.asarray(p["b_e"], np.float32)[:, 0, :]).reshape(1, H * F)
    return [W, AA, b]


def pack_param_slab(layer_params):
    """Pack every layer's (W, AA, b) into ONE lane-dense f32 slab.

    Coalesces all tiny parameter DMAs into a single one; the kernel takes
    static `ref[r0:r0+r, :c]` slices (free). Returns (slab, layout) with
    layout[l] = ((row0, rows, cols) for W, AA, b); each block is 8-row aligned.
    """
    per_layer = [_pack_layer_arrays(p) for p in layer_params]
    max_cols = max(a.shape[1] for arrs in per_layer for a in arrs)
    lanes = max(128, -(-max_cols // 128) * 128)
    blocks, layout, row = [], [], 0
    for arrs in per_layer:
        entries = []
        for a in arrs:
            r, c = a.shape
            r_pad = -(-r // 8) * 8
            blk = np.zeros((r_pad, lanes), np.float32)
            blk[:r, :c] = a
            blocks.append(blk)
            entries.append((row, r, c))
            row += r_pad
        layout.append(tuple(entries))
    return jnp.asarray(np.concatenate(blocks, axis=0)), tuple(layout)


# ----------------------------------------------------------------------------
# Model: GAT_hetero forward (single fused pallas_call)
# ----------------------------------------------------------------------------
def gat_hetero_forward(x, adj_i, adj_e, layer_params):
    N = x.shape[0]
    heads = tuple(int(p["W_i"].shape[0]) for p in layer_params)
    feats = tuple(int(p["W_i"].shape[2]) for p in layer_params)
    dins = tuple(int(p["W_i"].shape[1]) for p in layer_params)

    # Additive mask form of adjacency: where(adj>0, e, -1e9) == e + (adj-1)*1e9.
    # TODO(synk): zero-in-degree nodes get a uniform softmax here instead of
    # DGL's zero-in-degree error; guard (e.g. multiply P by adj) if needed.
    mask = jnp.stack([(adj_i.astype(jnp.float32) - 1.0) * 1e9,
                      (adj_e.astype(jnp.float32) - 1.0) * 1e9], axis=0)  # (2,N,N)

    slab, layout = pack_param_slab(layer_params)
    out_w = heads[-1] * feats[-1]

    # Advisory cost estimate for XLA scheduling around the custom call.
    flops, transc = 0, 0
    for H, F, Din in zip(heads, feats, dins):
        flops += 2 * N * Din * (2 * H * F)            # fc matmul
        flops += 2 * (4 * H) * (2 * H * F) * N        # attention-term matmul
        flops += 10 * 2 * H * N * N                   # leaky/mask/softmax elementwise
        flops += 2 * H * N * (2 * N) * F              # aggregation matmuls
        transc += 2 * H * N * N                       # exp
    bytes_accessed = 4 * (int(x.size) + int(mask.size) + int(slab.size) + N * out_w)

    kernel = functools.partial(_fused_gat_kernel, heads=heads, feats=feats,
                               layout=layout)

    # TODO(synk): if run over a batch of graphs, add a leading batch grid axis
    # marked "parallel" so v7x's two TensorCores split the batch.
    out = pl.pallas_call(
        kernel,
        out_shape=jax.ShapeDtypeStruct((N, out_w), jnp.float32),
        grid=(1,),
        in_specs=[pl.BlockSpec(x.shape, lambda i: (0, 0)),
                  pl.BlockSpec(mask.shape, lambda i: (0, 0, 0)),
                  pl.BlockSpec(slab.shape, lambda i: (0, 0))],
        out_specs=pl.BlockSpec((N, out_w), lambda i: (0, 0)),
        compiler_params=pltpu.CompilerParams(dimension_semantics=("arbitrary",)),
        cost_estimate=pl.CostEstimate(flops=int(flops),
                                      transcendentals=int(transc),
                                      bytes_accessed=int(bytes_accessed)),
    )(x.astype(jnp.float32), mask, slab)

    # Module semantics: layer4 output is (N, num_heads=1, out_dim); squeeze(dim=2).
    h = out.reshape(N, heads[-1], feats[-1])
    if feats[-1] == 1:
        h = h[:, :, 0]
    return h


# ----------------------------------------------------------------------------
# Pure-JAX reference (same math, faithful layout) for correctness check
# ----------------------------------------------------------------------------
def _ref_gatconv(x, adj, W, al, ar, b):
    feat = jnp.einsum('nd,hdf->hnf', x, W)
    el = jnp.sum(feat * al, axis=-1)                 # (H, N)
    er = jnp.sum(feat * ar, axis=-1)                 # (H, N)
    e = er[:, :, None] + el[:, None, :]              # (H, dst, src)
    e = jnp.where(e > 0, e, 0.2 * e)
    s = jnp.where(adj[None] > 0, e, -1e9)
    s = s - jnp.max(s, axis=-1, keepdims=True)
    p = jnp.exp(s)
    alpha = p / jnp.sum(p, axis=-1, keepdims=True)
    rst = jnp.einsum('hds,hsf->hdf', alpha, feat)
    return rst + b


def reshape_multihead(out_hnf):
    H, N, F = out_hnf.shape
    return jnp.transpose(out_hnf, (1, 0, 2)).reshape(N, H * F)


def ref_forward(x, adj_i, adj_e, layer_params):
    h = x
    for p in layer_params[:3]:
        out = _ref_gatconv(h, adj_i, p["W_i"], p["al_i"], p["ar_i"], p["b_i"]) \
            + _ref_gatconv(h, adj_e, p["W_e"], p["al_e"], p["ar_e"], p["b_e"])
        out = jnp.maximum(out, 0.0)
        h = reshape_multihead(out)
    p = layer_params[3]
    out = _ref_gatconv(h, adj_i, p["W_i"], p["al_i"], p["ar_i"], p["b_i"]) \
        + _ref_gatconv(h, adj_e, p["W_e"], p["al_e"], p["ar_e"], p["b_e"])
    h = jnp.transpose(out, (1, 0, 2))                # (N, 1, out_dim)
    if h.shape[2] == 1:
        h = h[:, :, 0]
    return h


# ----------------------------------------------------------------------------
# Deterministic parameter init (synthetic; DGL GATConv shapes)
# ----------------------------------------------------------------------------
def make_layer_params(key, din, f, h):
    ks = jax.random.split(key, 8)
    scale = 1.0 / float(np.sqrt(din))
    rnd = lambda k, shape, s: (jax.random.normal(k, shape, jnp.float32) * s)
    return dict(
        W_i=rnd(ks[0], (h, din, f), scale), al_i=rnd(ks[1], (h, 1, f), 0.1),
        ar_i=rnd(ks[2], (h, 1, f), 0.1),   b_i=rnd(ks[3], (h, 1, f), 0.01),
        W_e=rnd(ks[4], (h, din, f), scale), al_e=rnd(ks[5], (h, 1, f), 0.1),
        ar_e=rnd(ks[6], (h, 1, f), 0.1),   b_e=rnd(ks[7], (h, 1, f), 0.01),
    )


if __name__ == "__main__":
    key = jax.random.PRNGKey(0)
    N = 32                     # molecule nodes
    in_dim, hidden_dim, out_dim, num_heads = 8, 32, 1, 4
    h1, h2, h3 = hidden_dim, hidden_dim // 2, hidden_dim // 4

    kx, ka1, ka2, kp1, kp2, kp3, kp4 = jax.random.split(key, 7)
    x = jax.random.normal(kx, (N, in_dim), jnp.float32)

    # Dense adjacency per edge type, with self-loops so every node has in-edges.
    adj_i = (jax.random.uniform(ka1, (N, N)) < 0.4).astype(jnp.float32)
    adj_e = (jax.random.uniform(ka2, (N, N)) < 0.4).astype(jnp.float32)
    eye = jnp.eye(N, dtype=jnp.float32)
    adj_i = jnp.maximum(adj_i, eye)
    adj_e = jnp.maximum(adj_e, eye)

    layer_params = [
        make_layer_params(kp1, in_dim,         h1,      num_heads),
        make_layer_params(kp2, h1 * num_heads, h2,      num_heads),
        make_layer_params(kp3, h2 * num_heads, h3,      num_heads),
        make_layer_params(kp4, h3 * num_heads, out_dim, 1),
    ]

    out = jax.block_until_ready(gat_hetero_forward(x, adj_i, adj_e, layer_params))
    ref = jax.block_until_ready(ref_forward(x, adj_i, adj_e, layer_params))
    assert out.shape == ref.shape, (out.shape, ref.shape)
    np.testing.assert_allclose(np.asarray(out), np.asarray(ref), rtol=2e-3, atol=2e-3)

    print("KERNEL_OK")
</pallas_src>

<mosaic_0001>
module attributes {stable_mosaic.version = 11 : i64} {
  func.func @_fused_gat_kernel(%arg0: i32, %arg1: memref<32x8xf32, #tpu.memory_space<vmem>>, %arg2: memref<2x32x32xf32, #tpu.memory_space<vmem>>, %arg3: memref<320x256xf32, #tpu.memory_space<vmem>>, %arg4: memref<32x1xf32, #tpu.memory_space<vmem>>) attributes {dimension_semantics = [#tpu.dimension_semantics<arbitrary>], iteration_bounds = array<i64: 1>, scalar_prefetch = 0 : i64, scratch_operands = 0 : i64, tpu.core_type = #tpu.core_type<tc>, window_params = [{pipeline_mode = #tpu.pipeline_mode<synchronous>, transform_indices = @transform_0, window_bounds = array<i64: 32, 8>}, {pipeline_mode = #tpu.pipeline_mode<synchronous>, transform_indices = @transform_1, window_bounds = array<i64: 2, 32, 32>}, {pipeline_mode = #tpu.pipeline_mode<synchronous>, transform_indices = @transform_2, window_bounds = array<i64: 320, 256>}, {pipeline_mode = #tpu.pipeline_mode<synchronous>, transform_indices = @transform_3, window_bounds = array<i64: 32, 1>}]} {
    %c0 = arith.constant 0 : index
    %c0_0 = arith.constant 0 : index
    %c0_1 = arith.constant 0 : index
    %0 = vector.load %arg2[%c0, %c0_0, %c0_1] : memref<2x32x32xf32, #tpu.memory_space<vmem>>, vector<2x32x32xf32>
    %1 = vector.shape_cast %0 : vector<2x32x32xf32> to vector<2x1x32x32xf32>
    %c0_2 = arith.constant 0 : index
    %c0_3 = arith.constant 0 : index
    %2 = vector.load %arg1[%c0_2, %c0_3] : memref<32x8xf32, #tpu.memory_space<vmem>>, vector<32x8xf32>
    %c0_4 = arith.constant 0 : index
    %c0_5 = arith.constant 0 : index
    %3 = vector.load %arg3[%c0_4, %c0_5] : memref<320x256xf32, #tpu.memory_space<vmem>>, vector<8x256xf32>
    %c8 = arith.constant 8 : index
    %c0_6 = arith.constant 0 : index
    %4 = vector.load %arg3[%c8, %c0_6] : memref<320x256xf32, #tpu.memory_space<vmem>>, vector<16x256xf32>
    %c24 = arith.constant 24 : index
    %c0_7 = arith.constant 0 : index
    %5 = vector.load %arg3[%c24, %c0_7] : memref<320x256xf32, #tpu.memory_space<vmem>>, vector<1x128xf32>
    %cst = arith.constant dense<0.000000e+00> : vector<32x256xf32>
    %6 = tpu.matmul %2, %3, %cst {dimension_numbers = #tpu.dot_dimension_numbers<[1], [0], [0], [1], [0, 0, 1, 1], [], []>} : vector<32x8xf32>, vector<8x256xf32>, vector<32x256xf32> -> vector<32x256xf32>
    %cst_8 = arith.constant dense<0.000000e+00> : vector<16x32xf32>
    %7 = tpu.matmul %4, %6, %cst_8 {dimension_numbers = #tpu.dot_dimension_numbers<[1], [1], [0], [0], [0, 0, 1, 0], [], []>} : vector<16x256xf32>, vector<32x256xf32>, vector<16x32xf32> -> vector<16x32xf32>
    %8 = vector.extract_strided_slice %7 {offsets = [0, 0], sizes = [8, 32], strides = [1, 1]} : vector<16x32xf32> to vector<8x32xf32>
    %9 = vector.extract_strided_slice %7 {offsets = [8, 0], sizes = [8, 32], strides = [1, 1]} : vector<16x32xf32> to vector<8x32xf32>
    %10 = vector.shape_cast %8 : vector<8x32xf32> to vector<8x32x1xf32>
    %11 = vector.shape_cast %9 : vector<8x32xf32> to vector<8x1x32xf32>
    %12 = vector.broadcast %10 : vector<8x32x1xf32> to vector<8x32x32xf32>
    %13 = vector.broadcast %11 : vector<8x1x32xf32> to vector<8x32x32xf32>
    %14 = arith.addf %12, %13 : vector<8x32x32xf32>
    %cst_9 = arith.constant 2.000000e-01 : f32
    %15 = vector.broadcast %cst_9 : f32 to vector<8x32x32xf32>
    %16 = arith.mulf %15, %14 : vector<8x32x32xf32>
    %17 = arith.maximumf %14, %16 : vector<8x32x32xf32>
    %18 = vector.shape_cast %17 : vector<8x32x32xf32> to vector<2x4x32x32xf32>
    %19 = vector.broadcast %1 : vector<2x1x32x32xf32> to vector<2x4x32x32xf32>
    %20 = arith.addf %18, %19 : vector<2x4x32x32xf32>
    %cst_10 = arith.constant dense<0xFF800000> : vector<2x4x32xf32>
    %21 = vector.multi_reduction <maximumf>, %20, %cst_10 [3] : vector<2x4x32x32xf32> to vector<2x4x32xf32>
    %22 = vector.shape_cast %21 : vector<2x4x32xf32> to vector<2x4x32x1xf32>
    %23 = vector.broadcast %22 : vector<2x4x32x1xf32> to vector<2x4x32x32xf32>
    %24 = arith.subf %20, %23 : vector<2x4x32x32xf32>
    %25 = math.exp %24 : vector<2x4x32x32xf32>
    %cst_11 = arith.constant dense<0.000000e+00> : vector<2x4x32xf32>
    %26 = vector.multi_reduction <add>, %25, %cst_11 [3] : vector<2x4x32x32xf32> to vector<2x4x32xf32>
    %27 = vector.shape_cast %26 : vector<2x4x32xf32> to vector<2x4x32x1xf32>
    %28 = tpu.reciprocal %27 {approx = true} : vector<2x4x32x1xf32> -> vector<2x4x32x1xf32>
    %29 = vector.broadcast %28 : vector<2x4x32x1xf32> to vector<2x4x32x32xf32>
    %30 = arith.mulf %25, %29 : vector<2x4x32x32xf32>
    %31 = vector.extract_strided_slice %30 {offsets = [0, 0, 0, 0], sizes = [1, 1, 32, 32], strides = [1, 1, 1, 1]} : vector<2x4x32x32xf32> to vector<1x1x32x32xf32>
    %32 = vector.shape_cast %31 : vector<1x1x32x32xf32> to vector<32x32xf32>
    %33 = vector.extract_strided_slice %30 {offsets = [1, 0, 0, 0], sizes = [1, 1, 32, 32], strides = [1, 1, 1, 1]} : vector<2x4x32x32xf32> to vector<1x1x32x32xf32>
    %34 = vector.shape_cast %33 : vector<1x1x32x32xf32> to vector<32x32xf32>
    %35 = tpu.concatenate %32, %34 in 1 : vector<32x32xf32>, vector<32x32xf32> -> vector<32x64xf32>
    %36 = vector.extract_strided_slice %6 {offsets = [0, 0], sizes = [32, 32], strides = [1, 1]} : vector<32x256xf32> to vector<32x32xf32>
    %37 = vector.extract_strided_slice %6 {offsets = [0, 128], sizes = [32, 32], strides = [1, 1]} : vector<32x256xf32> to vector<32x32xf32>
    %38 = tpu.concatenate %36, %37 in 0 : vector<32x32xf32>, vector<32x32xf32> -> vector<64x32xf32>
    %cst_12 = arith.constant dense<0.000000e+00> : vector<32x32xf32>
    %39 = tpu.matmul %35, %38, %cst_12 {dimension_numbers = #tpu.dot_dimension_numbers<[1], [0], [0], [1], [0, 0, 1, 1], [], []>} : vector<32x64xf32>, vector<64x32xf32>, vector<32x32xf32> -> vector<32x32xf32>
    %40 = vector.extract_strided_slice %30 {offsets = [0, 1, 0, 0], sizes = [1, 1, 32, 32], strides = [1, 1, 1, 1]} : vector<2x4x32x32xf32> to vector<1x1x32x32xf32>
    %41 = vector.shape_cast %40 : vector<1x1x32x32xf32> to vector<32x32xf32>
    %42 = vector.extract_strided_slice %30 {offsets = [1, 1, 0, 0], sizes = [1, 1, 32, 32], strides = [1, 1, 1, 1]} : vector<2x4x32x32xf32> to vector<1x1x32x32xf32>
    %43 = vector.shape_cast %42 : vector<1x1x32x32xf32> to vector<32x32xf32>
    %44 = tpu.concatenate %41, %43 in 1 : vector<32x32xf32>, vector<32x32xf32> -> vector<32x64xf32>
    %45 = vector.extract_strided_slice %6 {offsets = [0, 32], sizes = [32, 32], strides = [1, 1]} : vector<32x256xf32> to vector<32x32xf32>
    %46 = vector.extract_strided_slice %6 {offsets = [0, 160], sizes = [32, 32], strides = [1, 1]} : vector<32x256xf32> to vector<32x32xf32>
    %47 = tpu.concatenate %45, %46 in 0 : vector<32x32xf32>, vector<32x32xf32> -> vector<64x32xf32>
    %cst_13 = arith.constant dense<0.000000e+00> : vector<32x32xf32>
    %48 = tpu.matmul %44, %47, %cst_13 {dimension_numbers = #tpu.dot_dimension_numbers<[1], [0], [0], [1], [0, 0, 1, 1], [], []>} : vector<32x64xf32>, vector<64x32xf32>, vector<32x32xf32> -> vector<32x32xf32>
    %49 = vector.extract_strided_slice %30 {offsets = [0, 2, 0, 0], sizes = [1, 1, 32, 32], strides = [1, 1, 1, 1]} : vector<2x4x32x32xf32> to vector<1x1x32x32xf32>
    %50 = vector.shape_cast %49 : vector<1x1x32x32xf32> to vector<32x32xf32>
    %51 = vector.extract_strided_slice %30 {offsets = [1, 2, 0, 0], sizes = [1, 1, 32, 32], strides = [1, 1, 1, 1]} : vector<2x4x32x32xf32> to vector<1x1x32x32xf32>
    %52 = vector.shape_cast %51 : vector<1x1x32x32xf32> to vector<32x32xf32>
    %53 = tpu.concatenate %50, %52 in 1 : vector<32x32xf32>, vector<32x32xf32> -> vector<32x64xf32>
    %54 = vector.extract_strided_slice %6 {offsets = [0, 64], sizes = [32, 32], strides = [1, 1]} : vector<32x256xf32> to vector<32x32xf32>
    %55 = vector.extract_strided_slice %6 {offsets = [0, 192], sizes = [32, 32], strides = [1, 1]} : vector<32x256xf32> to vector<32x32xf32>
    %56 = tpu.concatenate %54, %55 in 0 : vector<32x32xf32>, vector<32x32xf32> -> vector<64x32xf32>
    %cst_14 = arith.constant dense<0.000000e+00> : vector<32x32xf32>
    %57 = tpu.matmul %53, %56, %cst_14 {dimension_numbers = #tpu.dot_dimension_numbers<[1], [0], [0], [1], [0, 0, 1, 1], [], []>} : vector<32x64xf32>, vector<64x32xf32>, vector<32x32xf32> -> vector<32x32xf32>
    %58 = vector.extract_strided_slice %30 {offsets = [0, 3, 0, 0], sizes = [1, 1, 32, 32], strides = [1, 1, 1, 1]} : vector<2x4x32x32xf32> to vector<1x1x32x32xf32>
    %59 = vector.shape_cast %58 : vector<1x1x32x32xf32> to vector<32x32xf32>
    %60 = vector.extract_strided_slice %30 {offsets = [1, 3, 0, 0], sizes = [1, 1, 32, 32], strides = [1, 1, 1, 1]} : vector<2x4x32x32xf32> to vector<1x1x32x32xf32>
    %61 = vector.shape_cast %60 : vector<1x1x32x32xf32> to vector<32x32xf32>
    %62 = tpu.concatenate %59, %61 in 1 : vector<32x32xf32>, vector<32x32xf32> -> vector<32x64xf32>
    %63 = vector.extract_strided_slice %6 {offsets = [0, 96], sizes = [32, 32], strides = [1, 1]} : vector<32x256xf32> to vector<32x32xf32>
    %64 = vector.extract_strided_slice %6 {offsets = [0, 224], sizes = [32, 32], strides = [1, 1]} : vector<32x256xf32> to vector<32x32xf32>
    %65 = tpu.concatenate %63, %64 in 0 : vector<32x32xf32>, vector<32x32xf32> -> vector<64x32xf32>
    %cst_15 = arith.constant dense<0.000000e+00> : vector<32x32xf32>
    %66 = tpu.matmul %62, %65, %cst_15 {dimension_numbers = #tpu.dot_dimension_numbers<[1], [0], [0], [1], [0, 0, 1, 1], [], []>} : vector<32x64xf32>, vector<64x32xf32>, vector<32x32xf32> -> vector<32x32xf32>
    %67 = tpu.concatenate %39, %48, %57, %66 in 1 : vector<32x32xf32>, vector<32x32xf32>, vector<32x32xf32>, vector<32x32xf32> -> vector<32x128xf32>
    %68 = vector.broadcast %5 : vector<1x128xf32> to vector<32x128xf32>
    %69 = arith.addf %67, %68 : vector<32x128xf32>
    %cst_16 = arith.constant 0.000000e+00 : f32
    %70 = vector.broadcast %cst_16 : f32 to vector<32x128xf32>
    %71 = arith.maximumf %69, %70 : vector<32x128xf32>
    %c32 = arith.constant 32 : index
    %c0_17 = arith.constant 0 : index
    %72 = vector.load %arg3[%c32, %c0_17] : memref<320x256xf32, #tpu.memory_space<vmem>>, vector<128x128xf32>
    %c160 = arith.constant 160 : index
    %c0_18 = arith.constant 0 : index
    %73 = vector.load %arg3[%c160, %c0_18] : memref<320x256xf32, #tpu.memory_space<vmem>>, vector<16x128xf32>
    %c176 = arith.constant 176 : index
    %c0_19 = arith.constant 0 : index
    %74 = vector.load %arg3[%c176, %c0_19] : memref<320x256xf32, #tpu.memory_space<vmem>>, vector<1x64xf32>
    %cst_20 = arith.constant dense<0.000000e+00> : vector<32x128xf32>
    %75 = tpu.matmul %71, %72, %cst_20 {dimension_numbers = #tpu.dot_dimension_numbers<[1], [0], [0], [1], [0, 0, 1, 1], [], []>} : vector<32x128xf32>, vector<128x128xf32>, vector<32x128xf32> -> vector<32x128xf32>
    %cst_21 = arith.constant dense<0.000000e+00> : vector<16x32xf32>
    %76 = tpu.matmul %73, %75, %cst_21 {dimension_numbers = #tpu.dot_dimension_numbers<[1], [1], [0], [0], [0, 0, 1, 0], [], []>} : vector<16x128xf32>, vector<32x128xf32>, vector<16x32xf32> -> vector<16x32xf32>
    %77 = vector.extract_strided_slice %76 {offsets = [0, 0], sizes = [8, 32], strides = [1, 1]} : vector<16x32xf32> to vector<8x32xf32>
    %78 = vector.extract_strided_slice %76 {offsets = [8, 0], sizes = [8, 32], strides = [1, 1]} : vector<16x32xf32> to vector<8x32xf32>
    %79 = vector.shape_cast %77 : vector<8x32xf32> to vector<8x32x1xf32>
    %80 = vector.shape_cast %78 : vector<8x32xf32> to vector<8x1x32xf32>
    %81 = vector.broadcast %79 : vector<8x32x1xf32> to vector<8x32x32xf32>
    %82 = vector.broadcast %80 : vector<8x1x32xf32> to vector<8x32x32xf32>
    %83 = arith.addf %81, %82 : vector<8x32x32xf32>
    %cst_22 = arith.constant 2.000000e-01 : f32
    %84 = vector.broadcast %cst_22 : f32 to vector<8x32x32xf32>
    %85 = arith.mulf %84, %83 : vector<8x32x32xf32>
    %86 = arith.maximumf %83, %85 : vector<8x32x32xf32>
    %87 = vector.shape_cast %86 : vector<8x32x32xf32> to vector<2x4x32x32xf32>
    %88 = vector.broadcast %1 : vector<2x1x32x32xf32> to vector<2x4x32x32xf32>
    %89 = arith.addf %87, %88 : vector<2x4x32x32xf32>
    %cst_23 = arith.constant dense<0xFF800000> : vector<2x4x32xf32>
    %90 = vector.multi_reduction <maximumf>, %89, %cst_23 [3] : vector<2x4x32x32xf32> to vector<2x4x32xf32>
    %91 = vector.shape_cast %90 : vector<2x4x32xf32> to vector<2x4x32x1xf32>
    %92 = vector.broadcast %91 : vector<2x4x32x1xf32> to vector<2x4x32x32xf32>
    %93 = arith.subf %89, %92 : vector<2x4x32x32xf32>
    %94 = math.exp %93 : vector<2x4x32x32xf32>
    %cst_24 = arith.constant dense<0.000000e+00> : vector<2x4x32xf32>
    %95 = vector.multi_reduction <add>, %94, %cst_24 [3] : vector<2x4x32x32xf32> to vector<2x4x32xf32>
    %96 = vector.shape_cast %95 : vector<2x4x32xf32> to vector<2x4x32x1xf32>
    %97 = tpu.reciprocal %96 {approx = true} : vector<2x4x32x1xf32> -> vector<2x4x32x1xf32>
    %98 = vector.broadcast %97 : vector<2x4x32x1xf32> to vector<2x4x32x32xf32>
    %99 = arith.mulf %94, %98 : vector<2x4x32x32xf32>
    %100 = vector.extract_strided_slice %99 {offsets = [0, 0, 0, 0], sizes = [1, 1, 32, 32], strides = [1, 1, 1, 1]} : vector<2x4x32x32xf32> to vector<1x1x32x32xf32>
    %101 = vector.shape_cast %100 : vector<1x1x32x32xf32> to vector<32x32xf32>
    %102 = vector.extract_strided_slice %99 {offsets = [1, 0, 0, 0], sizes = [1, 1, 32, 32], strides = [1, 1, 1, 1]} : vector<2x4x32x32xf32> to vector<1x1x32x32xf32>
    %103 = vector.shape_cast %102 : vector<1x1x32x32xf32> to vector<32x32xf32>
    %104 = tpu.concatenate %101, %103 in 1 : vector<32x32xf32>, vector<32x32xf32> -> vector<32x64xf32>
    %105 = vector.extract_strided_slice %75 {offsets = [0, 0], sizes = [32, 16], strides = [1, 1]} : vector<32x128xf32> to vector<32x16xf32>
    %106 = vector.extract_strided_slice %75 {offsets = [0, 64], sizes = [32, 16], strides = [1, 1]} : vector<32x128xf32> to vector<32x16xf32>
    %107 = tpu.concatenate %105, %106 in 0 : vector<32x16xf32>, vector<32x16xf32> -> vector<64x16xf32>
    %cst_25 = arith.constant dense<0.000000e+00> : vector<32x16xf32>
    %108 = tpu.matmul %104, %107, %cst_25 {dimension_numbers = #tpu.dot_dimension_numbers<[1], [0], [0], [1], [0, 0, 1, 1], [], []>} : vector<32x64xf32>, vector<64x16xf32>, vector<32x16xf32> -> vector<32x16xf32>
    %109 = vector.extract_strided_slice %99 {offsets = [0, 1, 0, 0], sizes = [1, 1, 32, 32], strides = [1, 1, 1, 1]} : vector<2x4x32x32xf32> to vector<1x1x32x32xf32>
    %110 = vector.shape_cast %109 : vector<1x1x32x32xf32> to vector<32x32xf32>
    %111 = vector.extract_strided_slice %99 {offsets = [1, 1, 0, 0], sizes = [1, 1, 32, 32], strides = [1, 1, 1, 1]} : vector<2x4x32x32xf32> to vector<1x1x32x32xf32>
    %112 = vector.shape_cast %111 : vector<1x1x32x32xf32> to vector<32x32xf32>
    %113 = tpu.concatenate %110, %112 in 1 : vector<32x32xf32>, vector<32x32xf32> -> vector<32x64xf32>
    %114 = vector.extract_strided_slice %75 {offsets = [0, 16], sizes = [32, 16], strides = [1, 1]} : vector<32x128xf32> to vector<32x16xf32>
    %115 = vector.extract_strided_slice %75 {offsets = [0, 80], sizes = [32, 16], strides = [1, 1]} : vector<32x128xf32> to vector<32x16xf32>
    %116 = tpu.concatenate %114, %115 in 0 : vector<32x16xf32>, vector<32x16xf32> -> vector<64x16xf32>
    %cst_26 = arith.constant dense<0.000000e+00> : vector<32x16xf32>
    %117 = tpu.matmul %113, %116, %cst_26 {dimension_numbers = #tpu.dot_dimension_numbers<[1], [0], [0], [1], [0, 0, 1, 1], [], []>} : vector<32x64xf32>, vector<64x16xf32>, vector<32x16xf32> -> vector<32x16xf32>
    %118 = vector.extract_strided_slice %99 {offsets = [0, 2, 0, 0], sizes = [1, 1, 32, 32], strides = [1, 1, 1, 1]} : vector<2x4x32x32xf32> to vector<1x1x32x32xf32>
    %119 = vector.shape_cast %118 : vector<1x1x32x32xf32> to vector<32x32xf32>
    %120 = vector.extract_strided_slice %99 {offsets = [1, 2, 0, 0], sizes = [1, 1, 32, 32], strides = [1, 1, 1, 1]} : vector<2x4x32x32xf32> to vector<1x1x32x32xf32>
    %121 = vector.shape_cast %120 : vector<1x1x32x32xf32> to vector<32x32xf32>
    %122 = tpu.concatenate %119, %121 in 1 : vector<32x32xf32>, vector<32x32xf32> -> vector<32x64xf32>
    %123 = vector.extract_strided_slice %75 {offsets = [0, 32], sizes = [32, 16], strides = [1, 1]} : vector<32x128xf32> to vector<32x16xf32>
    %124 = vector.extract_strided_slice %75 {offsets = [0, 96], sizes = [32, 16], strides = [1, 1]} : vector<32x128xf32> to vector<32x16xf32>
    %125 = tpu.concatenate %123, %124 in 0 : vector<32x16xf32>, vector<32x16xf32> -> vector<64x16xf32>
    %cst_27 = arith.constant dense<0.000000e+00> : vector<32x16xf32>
    %126 = tpu.matmul %122, %125, %cst_27 {dimension_numbers = #tpu.dot_dimension_numbers<[1], [0], [0], [1], [0, 0, 1, 1], [], []>} : vector<32x64xf32>, vector<64x16xf32>, vector<32x16xf32> -> vector<32x16xf32>
    %127 = vector.extract_strided_slice %99 {offsets = [0, 3, 0, 0], sizes = [1, 1, 32, 32], strides = [1, 1, 1, 1]} : vector<2x4x32x32xf32> to vector<1x1x32x32xf32>
    %128 = vector.shape_cast %127 : vector<1x1x32x32xf32> to vector<32x32xf32>
    %129 = vector.extract_strided_slice %99 {offsets = [1, 3, 0, 0], sizes = [1, 1, 32, 32], strides = [1, 1, 1, 1]} : vector<2x4x32x32xf32> to vector<1x1x32x32xf32>
    %130 = vector.shape_cast %129 : vector<1x1x32x32xf32> to vector<32x32xf32>
    %131 = tpu.concatenate %128, %130 in 1 : vector<32x32xf32>, vector<32x32xf32> -> vector<32x64xf32>
    %132 = vector.extract_strided_slice %75 {offsets = [0, 48], sizes = [32, 16], strides = [1, 1]} : vector<32x128xf32> to vector<32x16xf32>
    %133 = vector.extract_strided_slice %75 {offsets = [0, 112], sizes = [32, 16], strides = [1, 1]} : vector<32x128xf32> to vector<32x16xf32>
    %134 = tpu.concatenate %132, %133 in 0 : vector<32x16xf32>, vector<32x16xf32> -> vector<64x16xf32>
    %cst_28 = arith.constant dense<0.000000e+00> : vector<32x16xf32>
    %135 = tpu.matmul %131, %134, %cst_28 {dimension_numbers = #tpu.dot_dimension_numbers<[1], [0], [0], [1], [0, 0, 1, 1], [], []>} : vector<32x64xf32>, vector<64x16xf32>, vector<32x16xf32> -> vector<32x16xf32>
    %136 = tpu.concatenate %108, %117, %126, %135 in 1 : vector<32x16xf32>, vector<32x16xf32>, vector<32x16xf32>, vector<32x16xf32> -> vector<32x64xf32>
    %137 = vector.broadcast %74 : vector<1x64xf32> to vector<32x64xf32>
    %138 = arith.addf %136, %137 : vector<32x64xf32>
    %cst_29 = arith.constant 0.000000e+00 : f32
    %139 = vector.broadcast %cst_29 : f32 to vector<32x64xf32>
    %140 = arith.maximumf %138, %139 : vector<32x64xf32>
    %c184 = arith.constant 184 : index
    %c0_30 = arith.constant 0 : index
    %141 = vector.load %arg3[%c184, %c0_30] : memref<320x256xf32, #tpu.memory_space<vmem>>, vector<64x64xf32>
    %c248 = arith.constant 248 : index
    %c0_31 = arith.constant 0 : index
    %142 = vector.load %arg3[%c248, %c0_31] : memref<320x256xf32, #tpu.memory_space<vmem>>, vector<16x64xf32>
    %c264 = arith.constant 264 : index
    %c0_32 = arith.constant 0 : index
    %143 = vector.load %arg3[%c264, %c0_32] : memref<320x256xf32, #tpu.memory_space<vmem>>, vector<1x32xf32>
    %cst_33 = arith.constant dense<0.000000e+00> : vector<32x64xf32>
    %144 = tpu.matmul %140, %141, %cst_33 {dimension_numbers = #tpu.dot_dimension_numbers<[1], [0], [0], [1], [0, 0, 1, 1], [], []>} : vector<32x64xf32>, vector<64x64xf32>, vector<32x64xf32> -> vector<32x64xf32>
    %cst_34 = arith.constant dense<0.000000e+00> : vector<16x32xf32>
    %145 = tpu.matmul %142, %144, %cst_34 {dimension_numbers = #tpu.dot_dimension_numbers<[1], [1], [0], [0], [0, 0, 1, 0], [], []>} : vector<16x64xf32>, vector<32x64xf32>, vector<16x32xf32> -> vector<16x32xf32>
    %146 = vector.extract_strided_slice %145 {offsets = [0, 0], sizes = [8, 32], strides = [1, 1]} : vector<16x32xf32> to vector<8x32xf32>
    %147 = vector.extract_strided_slice %145 {offsets = [8, 0], sizes = [8, 32], strides = [1, 1]} : vector<16x32xf32> to vector<8x32xf32>
    %148 = vector.shape_cast %146 : vector<8x32xf32> to vector<8x32x1xf32>
    %149 = vector.shape_cast %147 : vector<8x32xf32> to vector<8x1x32xf32>
    %150 = vector.broadcast %148 : vector<8x32x1xf32> to vector<8x32x32xf32>
    %151 = vector.broadcast %149 : vector<8x1x32xf32> to vector<8x32x32xf32>
    %152 = arith.addf %150, %151 : vector<8x32x32xf32>
    %cst_35 = arith.constant 2.000000e-01 : f32
    %153 = vector.broadcast %cst_35 : f32 to vector<8x32x32xf32>
    %154 = arith.mulf %153, %152 : vector<8x32x32xf32>
    %155 = arith.maximumf %152, %154 : vector<8x32x32xf32>
    %156 = vector.shape_cast %155 : vector<8x32x32xf32> to vector<2x4x32x32xf32>
    %157 = vector.broadcast %1 : vector<2x1x32x32xf32> to vector<2x4x32x32xf32>
    %158 = arith.addf %156, %157 : vector<2x4x32x32xf32>
    %cst_36 = arith.constant dense<0xFF800000> : vector<2x4x32xf32>
    %159 = vector.multi_reduction <maximumf>, %158, %cst_36 [3] : vector<2x4x32x32xf32> to vector<2x4x32xf32>
    %160 = vector.shape_cast %159 : vector<2x4x32xf32> to vector<2x4x32x1xf32>
    %161 = vector.broadcast %160 : vector<2x4x32x1xf32> to vector<2x4x32x32xf32>
    %162 = arith.subf %158, %161 : vector<2x4x32x32xf32>
    %163 = math.exp %162 : vector<2x4x32x32xf32>
    %cst_37 = arith.constant dense<0.000000e+00> : vector<2x4x32xf32>
    %164 = vector.multi_reduction <add>, %163, %cst_37 [3] : vector<2x4x32x32xf32> to vector<2x4x32xf32>
    %165 = vector.shape_cast %164 : vector<2x4x32xf32> to vector<2x4x32x1xf32>
    %166 = tpu.reciprocal %165 {approx = true} : vector<2x4x32x1xf32> -> vector<2x4x32x1xf32>
    %167 = vector.broadcast %166 : vector<2x4x32x1xf32> to vector<2x4x32x32xf32>
    %168 = arith.mulf %163, %167 : vector<2x4x32x32xf32>
    %169 = vector.extract_strided_slice %168 {offsets = [0, 0, 0, 0], sizes = [1, 1, 32, 32], strides = [1, 1, 1, 1]} : vector<2x4x32x32xf32> to vector<1x1x32x32xf32>
    %170 = vector.shape_cast %169 : vector<1x1x32x32xf32> to vector<32x32xf32>
    %171 = vector.extract_strided_slice %168 {offsets = [1, 0, 0, 0], sizes = [1, 1, 32, 32], strides = [1, 1, 1, 1]} : vector<2x4x32x32xf32> to vector<1x1x32x32xf32>
    %172 = vector.shape_cast %171 : vector<1x1x32x32xf32> to vector<32x32xf32>
    %173 = tpu.concatenate %170, %172 in 1 : vector<32x32xf32>, vector<32x32xf32> -> vector<32x64xf32>
    %174 = vector.extract_strided_slice %144 {offsets = [0, 0], sizes = [32, 8], strides = [1, 1]} : vector<32x64xf32> to vector<32x8xf32>
    %175 = vector.extract_strided_slice %144 {offsets = [0, 32], sizes = [32, 8], strides = [1, 1]} : vector<32x64xf32> to vector<32x8xf32>
    %176 = tpu.concatenate %174, %175 in 0 : vector<32x8xf32>, vector<32x8xf32> -> vector<64x8xf32>
    %cst_38 = arith.constant dense<0.000000e+00> : vector<32x8xf32>
    %177 = tpu.matmul %173, %176, %cst_38 {dimension_numbers = #tpu.dot_dimension_numbers<[1], [0], [0], [1], [0, 0, 1, 1], [], []>} : vector<32x64xf32>, vector<64x8xf32>, vector<32x8xf32> -> vector<32x8xf32>
    %178 = vector.extract_strided_slice %168 {offsets = [0, 1, 0, 0], sizes = [1, 1, 32, 32], strides = [1, 1, 1, 1]} : vector<2x4x32x32xf32> to vector<1x1x32x32xf32>
    %179 = vector.shape_cast %178 : vector<1x1x32x32xf32> to vector<32x32xf32>
    %180 = vector.extract_strided_slice %168 {offsets = [1, 1, 0, 0], sizes = [1, 1, 32, 32], strides = [1, 1, 1, 1]} : vector<2x4x32x32xf32> to vector<1x1x32x32xf32>
    %181 = vector.shape_cast %180 : vector<1x1x32x32xf32> to vector<32x32xf32>
    %182 = tpu.concatenate %179, %181 in 1 : vector<32x32xf32>, vector<32x32xf32> -> vector<32x64xf32>
    %183 = vector.extract_strided_slice %144 {offsets = [0, 8], sizes = [32, 8], strides = [1, 1]} : vector<32x64xf32> to vector<32x8xf32>
    %184 = vector.extract_strided_slice %144 {offsets = [0, 40], sizes = [32, 8], strides = [1, 1]} : vector<32x64xf32> to vector<32x8xf32>
    %185 = tpu.concatenate %183, %184 in 0 : vector<32x8xf32>, vector<32x8xf32> -> vector<64x8xf32>
    %cst_39 = arith.constant dense<0.000000e+00> : vector<32x8xf32>
    %186 = tpu.matmul %182, %185, %cst_39 {dimension_numbers = #tpu.dot_dimension_numbers<[1], [0], [0], [1], [0, 0, 1, 1], [], []>} : vector<32x64xf32>, vector<64x8xf32>, vector<32x8xf32> -> vector<32x8xf32>
    %187 = vector.extract_strided_slice %168 {offsets = [0, 2, 0, 0], sizes = [1, 1, 32, 32], strides = [1, 1, 1, 1]} : vector<2x4x32x32xf32> to vector<1x1x32x32xf32>
    %188 = vector.shape_cast %187 : vector<1x1x32x32xf32> to vector<32x32xf32>
    %189 = vector.extract_strided_slice %168 {offsets = [1, 2, 0, 0], sizes = [1, 1, 32, 32], strides = [1, 1, 1, 1]} : vector<2x4x32x32xf32> to vector<1x1x32x32xf32>
    %190 = vector.shape_cast %189 : vector<1x1x32x32xf32> to vector<32x32xf32>
    %191 = tpu.concatenate %188, %190 in 1 : vector<32x32xf32>, vector<32x32xf32> -> vector<32x64xf32>
    %192 = vector.extract_strided_slice %144 {offsets = [0, 16], sizes = [32, 8], strides = [1, 1]} : vector<32x64xf32> to vector<32x8xf32>
    %193 = vector.extract_strided_slice %144 {offsets = [0, 48], sizes = [32, 8], strides = [1, 1]} : vector<32x64xf32> to vector<32x8xf32>
    %194 = tpu.concatenate %192, %193 in 0 : vector<32x8xf32>, vector<32x8xf32> -> vector<64x8xf32>
    %cst_40 = arith.constant dense<0.000000e+00> : vector<32x8xf32>
    %195 = tpu.matmul %191, %194, %cst_40 {dimension_numbers = #tpu.dot_dimension_numbers<[1], [0], [0], [1], [0, 0, 1, 1], [], []>} : vector<32x64xf32>, vector<64x8xf32>, vector<32x8xf32> -> vector<32x8xf32>
    %196 = vector.extract_strided_slice %168 {offsets = [0, 3, 0, 0], sizes = [1, 1, 32, 32], strides = [1, 1, 1, 1]} : vector<2x4x32x32xf32> to vector<1x1x32x32xf32>
    %197 = vector.shape_cast %196 : vector<1x1x32x32xf32> to vector<32x32xf32>
    %198 = vector.extract_strided_slice %168 {offsets = [1, 3, 0, 0], sizes = [1, 1, 32, 32], strides = [1, 1, 1, 1]} : vector<2x4x32x32xf32> to vector<1x1x32x32xf32>
    %199 = vector.shape_cast %198 : vector<1x1x32x32xf32> to vector<32x32xf32>
    %200 = tpu.concatenate %197, %199 in 1 : vector<32x32xf32>, vector<32x32xf32> -> vector<32x64xf32>
    %201 = vector.extract_strided_slice %144 {offsets = [0, 24], sizes = [32, 8], strides = [1, 1]} : vector<32x64xf32> to vector<32x8xf32>
    %202 = vector.extract_strided_slice %144 {offsets = [0, 56], sizes = [32, 8], strides = [1, 1]} : vector<32x64xf32> to vector<32x8xf32>
    %203 = tpu.concatenate %201, %202 in 0 : vector<32x8xf32>, vector<32x8xf32> -> vector<64x8xf32>
    %cst_41 = arith.constant dense<0.000000e+00> : vector<32x8xf32>
    %204 = tpu.matmul %200, %203, %cst_41 {dimension_numbers = #tpu.dot_dimension_numbers<[1], [0], [0], [1], [0, 0, 1, 1], [], []>} : vector<32x64xf32>, vector<64x8xf32>, vector<32x8xf32> -> vector<32x8xf32>
    %205 = tpu.concatenate %177, %186, %195, %204 in 1 : vector<32x8xf32>, vector<32x8xf32>, vector<32x8xf32>, vector<32x8xf32> -> vector<32x32xf32>
    %206 = vector.broadcast %143 : vector<1x32xf32> to vector<32x32xf32>
    %207 = arith.addf %205, %206 : vector<32x32xf32>
    %cst_42 = arith.constant 0.000000e+00 : f32
    %208 = vector.broadcast %cst_42 : f32 to vector<32x32xf32>
    %209 = arith.maximumf %207, %208 : vector<32x32xf32>
    %c272 = arith.constant 272 : index
    %c0_43 = arith.constant 0 : index
    %210 = vector.load %arg3[%c272, %c0_43] : memref<320x256xf32, #tpu.memory_space<vmem>>, vector<32x2xf32>
    %c304 = arith.constant 304 : index
    %c0_44 = arith.constant 0 : index
    %211 = vector.load %arg3[%c304, %c0_44] : memref<320x256xf32, #tpu.memory_space<vmem>>, vector<4x2xf32>
    %c312 = arith.constant 312 : index
    %c0_45 = arith.constant 0 : index
    %212 = vector.load %arg3[%c312, %c0_45] : memref<320x256xf32, #tpu.memory_space<vmem>>, vector<1x1xf32>
    %cst_46 = arith.constant dense<0.000000e+00> : vector<32x2xf32>
    %213 = tpu.matmul %209, %210, %cst_46 {dimension_numbers = #tpu.dot_dimension_numbers<[1], [0], [0], [1], [0, 0, 1, 1], [], []>} : vector<32x32xf32>, vector<32x2xf32>, vector<32x2xf32> -> vector<32x2xf32>
    %cst_47 = arith.constant dense<0.000000e+00> : vector<4x32xf32>
    %214 = tpu.matmul %211, %213, %cst_47 {dimension_numbers = #tpu.dot_dimension_numbers<[1], [1], [0], [0], [0, 0, 1, 0], [], []>} : vector<4x2xf32>, vector<32x2xf32>, vector<4x32xf32> -> vector<4x32xf32>
    %215 = vector.extract_strided_slice %214 {offsets = [0, 0], sizes = [2, 32], strides = [1, 1]} : vector<4x32xf32> to vector<2x32xf32>
    %216 = vector.extract_strided_slice %214 {offsets = [2, 0], sizes = [2, 32], strides = [1, 1]} : vector<4x32xf32> to vector<2x32xf32>
    %217 = vector.shape_cast %215 : vector<2x32xf32> to vector<2x32x1xf32>
    %218 = vector.shape_cast %216 : vector<2x32xf32> to vector<2x1x32xf32>
    %219 = vector.broadcast %217 : vector<2x32x1xf32> to vector<2x32x32xf32>
    %220 = vector.broadcast %218 : vector<2x1x32xf32> to vector<2x32x32xf32>
    %221 = arith.addf %219, %220 : vector<2x32x32xf32>
    %cst_48 = arith.constant 2.000000e-01 : f32
    %222 = vector.broadcast %cst_48 : f32 to vector<2x32x32xf32>
    %223 = arith.mulf %222, %221 : vector<2x32x32xf32>
    %224 = arith.maximumf %221, %223 : vector<2x32x32xf32>
    %225 = vector.shape_cast %224 : vector<2x32x32xf32> to vector<2x1x32x32xf32>
    %226 = arith.addf %225, %1 : vector<2x1x32x32xf32>
    %cst_49 = arith.constant dense<0xFF800000> : vector<2x1x32xf32>
    %227 = vector.multi_reduction <maximumf>, %226, %cst_49 [3] : vector<2x1x32x32xf32> to vector<2x1x32xf32>
    %228 = vector.shape_cast %227 : vector<2x1x32xf32> to vector<2x1x32x1xf32>
    %229 = vector.broadcast %228 : vector<2x1x32x1xf32> to vector<2x1x32x32xf32>
    %230 = arith.subf %226, %229 : vector<2x1x32x32xf32>
    %231 = math.exp %230 : vector<2x1x32x32xf32>
    %cst_50 = arith.constant dense<0.000000e+00> : vector<2x1x32xf32>
    %232 = vector.multi_reduction <add>, %231, %cst_50 [3] : vector<2x1x32x32xf32> to vector<2x1x32xf32>
    %233 = vector.shape_cast %232 : vector<2x1x32xf32> to vector<2x1x32x1xf32>
    %234 = tpu.reciprocal %233 {approx = true} : vector<2x1x32x1xf32> -> vector<2x1x32x1xf32>
    %235 = vector.broadcast %234 : vector<2x1x32x1xf32> to vector<2x1x32x32xf32>
    %236 = arith.mulf %231, %235 : vector<2x1x32x32xf32>
    %237 = vector.extract_strided_slice %236 {offsets = [0, 0, 0, 0], sizes = [1, 1, 32, 32], strides = [1, 1, 1, 1]} : vector<2x1x32x32xf32> to vector<1x1x32x32xf32>
    %238 = vector.shape_cast %237 : vector<1x1x32x32xf32> to vector<32x32xf32>
    %239 = vector.extract_strided_slice %236 {offsets = [1, 0, 0, 0], sizes = [1, 1, 32, 32], strides = [1, 1, 1, 1]} : vector<2x1x32x32xf32> to vector<1x1x32x32xf32>
    %240 = vector.shape_cast %239 : vector<1x1x32x32xf32> to vector<32x32xf32>
    %241 = tpu.concatenate %238, %240 in 1 : vector<32x32xf32>, vector<32x32xf32> -> vector<32x64xf32>
    %242 = vector.extract_strided_slice %213 {offsets = [0, 0], sizes = [32, 1], strides = [1, 1]} : vector<32x2xf32> to vector<32x1xf32>
    %243 = vector.extract_strided_slice %213 {offsets = [0, 1], sizes = [32, 1], strides = [1, 1]} : vector<32x2xf32> to vector<32x1xf32>
    %244 = tpu.concatenate %242, %243 in 0 : vector<32x1xf32>, vector<32x1xf32> -> vector<64x1xf32>
    %cst_51 = arith.constant dense<0.000000e+00> : vector<32x1xf32>
    %245 = tpu.matmul %241, %244, %cst_51 {dimension_numbers = #tpu.dot_dimension_numbers<[1], [0], [0], [1], [0, 0, 1, 1], [], []>} : vector<32x64xf32>, vector<64x1xf32>, vector<32x1xf32> -> vector<32x1xf32>
    %246 = vector.broadcast %212 : vector<1x1xf32> to vector<32x1xf32>
    %247 = arith.addf %245, %246 : vector<32x1xf32>
    %c0_52 = arith.constant 0 : index
    %c0_53 = arith.constant 0 : index
    %248 = vector.load %arg4[%c0_52, %c0_53] : memref<32x1xf32, #tpu.memory_space<vmem>>, vector<32x1xf32>
    tpu.vector_store %arg4[%c0_52, %c0_53], %247 {strides = array<i32>} : memref<32x1xf32, #tpu.memory_space<vmem>>, vector<32x1xf32>,
    return
  }
  func.func @transform_0(%arg0: i32) -> (i32, i32) {
    %c0_i32 = arith.constant 0 : i32
    %c0_i32_0 = arith.constant 0 : i32
    %c0_i32_1 = arith.constant 0 : i32
    return %c0_i32, %c0_i32_0 : i32, i32
  }
  func.func @transform_1(%arg0: i32) -> (i32, i32, i32) {
    %c0_i32 = arith.constant 0 : i32
    %c0_i32_0 = arith.constant 0 : i32
    %c0_i32_1 = arith.constant 0 : i32
    %c0_i32_2 = arith.constant 0 : i32
    return %c0_i32, %c0_i32_0, %c0_i32_1 : i32, i32, i32
  }
  func.func @transform_2(%arg0: i32) -> (i32, i32) {
    %c0_i32 = arith.constant 0 : i32
    %c0_i32_0 = arith.constant 0 : i32
    %c0_i32_1 = arith.constant 0 : i32
    return %c0_i32, %c0_i32_0 : i32, i32
  }
  func.func @transform_3(%arg0: i32) -> (i32, i32) {
    %c0_i32 = arith.constant 0 : i32
    %c0_i32_0 = arith.constant 0 : i32
    %c0_i32_1 = arith.constant 0 : i32
    return %c0_i32, %c0_i32_0 : i32, i32
  }
}

</mosaic_0001>

<bundles_post_ra>
// kernel: tpu_custom_call.1
= control target key start
LH: loop header
LB: loop body
LE: loop exit
PB: predicated region body
PF: predicated region fallthrough
CT: control target
= control target key end

     0   :  { %8 = vsyncpa [#allocation3], 0  ;;  %s8726_s0 = inlined_call_operand.vmem [shape: f32[32,8], index: 0, kind: input, shape index: {}]   ;;  %s8727_s1 = inlined_call_operand.hbm [shape: f32[2,32,32], index: 1, kind: input, shape index: {}]   ;;  %s8728_s2 = inlined_call_operand.hbm [shape: f32[320,256], index: 2, kind: input, shape index: {}]   ;;  %s8729_s3 = inlined_call_operand.vmem [shape: f32[32,1], index: 3, kind: output, shape index: {}]  }
   0x1   :  { %9 = vsyncpa [#allocation5], 0  ;;  %s6871_s12 = smov [#allocation2]   ;;  %s6823_s16 = scalar_lea.hbm %s8727_s1, 1024 }
   0x2   :  { %s17_s13 = sshll.u32 %s6871_s12, 4  ;;  %p6824_p0 = scmp.ne.s32.totalorder %s8727_s1, %s6823_s16  ;;  %s18_s13 = int_to_ptr.vmem [resolvable:$true] %s17_s13 }
   0x3   :  { %p6827_p1 = scmp.lt.u32.totalorder %s6823_s16, %s8727_s1 }
   0x5   :  { %p6829_p2 = pnand %p6827_p1, %p6824_p0 }
   0x7   :  { %6832 = shalt.err (!%p6829_p2)
}
   0x8   :  { %s6833_s21 = scalar_lea.vmem %s18_s13, 1024  ;;  %p6838_p4 = scmp.lt.s32.totalorder %s18_s13, %s18_s13 }
   0x9   :  { %p6834_p3 = scmp.ne.s32.totalorder %s18_s13, %s6833_s21  ;;  %p6839_p5 = scmp.lt.s32.totalorder %s6833_s21, %s6833_s21 }
   0xb   :  { %p6840_p6 = por %p6839_p5, %p6838_p4 }
   0xd   :  { %p6841_p7 = pnand %p6840_p6, %p6834_p3 }
   0xf   :  { %6844 = shalt.err (!%p6841_p7)
}
  0x10   :  { %s6872_s22 = smov 128   ;;  %s6873_s23 = smov 8  }
  0x11   :  { %23 = dma.hbm_to_vmem [thread:$0]  %s8727_s1, 1024, %s18_s13, [#allocation3], %s6872_s22, %s6872_s22, %s6873_s23  }
  0x12   :  { %s6874_s26 = smov [#allocation4]   ;;  %s6845_s30 = scalar_lea.hbm %s8728_s2, 10240 }
  0x13   :  { %s29_s27 = sshll.u32 %s6874_s26, 4  ;;  %p6846_p8 = scmp.ne.s32.totalorder %s8728_s2, %s6845_s30  ;;  %s30_s27 = int_to_ptr.vmem [resolvable:$true] %s29_s27 }
  0x14   :  { %p6849_p9 = scmp.lt.u32.totalorder %s6845_s30, %s8728_s2 }
  0x16   :  { %p6851_p10 = pnand %p6849_p9, %p6846_p8 }
  0x18   :  { %6854 = shalt.err (!%p6851_p10)
}
  0x19   :  { %s6855_s8 = scalar_lea.vmem %s30_s27, 10240  ;;  %p6860_p12 = scmp.lt.s32.totalorder %s30_s27, %s30_s27 }
  0x1a   :  { %p6856_p11 = scmp.ne.s32.totalorder %s30_s27, %s6855_s8  ;;  %p6861_p13 = scmp.lt.s32.totalorder %s6855_s8, %s6855_s8 }
  0x1c   :  { %p6862_p0 = por %p6861_p13, %p6860_p12 }
  0x1e   :  { %p6863_p1 = pnand %p6862_p0, %p6856_p11 }
  0x20   :  { %6866 = shalt.err (!%p6863_p1)
}
  0x21   :  { %s6875_s1 = smov 256   ;;  %s6876_s9 = smov 16  }
  0x22   :  { %35 = dma.hbm_to_vmem [thread:$0]  %s8728_s2, 10240, %s30_s27, [#allocation5], %s6875_s1, %s6875_s1, %s6876_s9  }
  0x23   :  { %6867 = dma.done.wait [#allocation3], 1024  }
  0x24   :  { %6868 = vsyncadd [#allocation3], 4294966272 }
  0x25   :  { %6869 = dma.done.wait [#allocation5], 10240  }
  0x26   :  { %6870 = vsyncadd [#allocation5], 4294957056  ;;  %v8730_v0 = vmov 0.0   ;;  %v55_v1 = vld [vmem:[#allocation4 + $0x8] sm:$0xff]  ;;  %v54_v2 = vld [vmem:[#allocation4] sm:$0xff]  ;;  %vm61_vm0 = vcmask 64512   ;;  %v238_v53 = vlaneseq }
  0x27   :  { %138 = vmatprep.mubr.f32.mxu1 %v8730_v0  ;;  %v50_v3 = vld [vmem:[%s8726_s0] sm:$0xff]  ;;  %74 = vmatprep.subr.mxu1 %v55_v1  ;;  %v51_v4 = vld [vmem:[%s8726_s0 + $0x8] sm:$0xff]  ;;  %v52_v5 = vld [vmem:[%s8726_s0 + $0x10] sm:$0xff]  ;;  %s6878_s19 = smov 96   ;;  %s6879_s20 = smov 32   ;;  %vm608_vm1 = vcmask 261120  }
  0x28   :  { %75 = vmatpush1.msra.mxu1 %v54_v2  ;;  %v53_v6 = vld [vmem:[%s8726_s0 + $0x18] sm:$0xff]  ;;  %s6880_s0 = smov 64   ;;  %v56_v24 = vld [vmem:[#allocation4 + $0x10] sm:$0xff]  ;;  %v59_v25 = vld [vmem:[#allocation4 + $0x28] sm:$0xff]  ;;  %v239_v54 = vshrl.u32 %v238_v53, 7  ;;  %vm981_vm2 = vcmask 523264  }
  0x29   :  { %5172 = vmatmul.mubr.msk.f32.vlgmr.msra.gmra.mrb[0].mxu1 %vm61_vm0, %v50_v3  ;;  %v57_v7 = vld [vmem:[#allocation4 + $0x18] sm:$0xff]  ;;  %v58_v26 = vld [vmem:[#allocation4 + $0x20] sm:$0xff]  ;;  %vm1566_vm3 = vcmask 785408   ;;  %s6882_s21 = smov 112   ;;  %s6883_s22 = smov 80   ;;  %vm3084_vm4 = vcmask 130048   ;;  %vm8086_vm6 = vmpackc.low %vm981_vm2, %vm981_vm2 }
  0x2a   :  { %144 = vmatprep.mubr.f32.mxu1 %v8730_v0  ;;  %v6980_v55 = vsub.s32 5, %v239_v54  ;;  %v6982_v56 = vsub.s32 4, %v239_v54  ;;  %v6988_v63 = vsub.s32 6, %v239_v54  ;;  %v6991_v2 = vsub.s32 7, %v239_v54  ;;  %s6884_s24 = smov 48   ;;  %s6885_s25 = smov 120  }
  0x2b   :  { %vm3093_vm5 = vcmask 392192   ;;  %s6886_s26 = smov 104   ;;  %s6887_s27 = smov 24   ;;  %vm4637_vm7 = vcmask 195584   ;;  %vm6889_vm8 = vmmov 0   ;;  %vm4753_vm9 = vcmask 15360  }
  0x2c   :  { %vm6131_vm10 = vmpackc.low %vm4753_vm9, %vm4753_vm9  ;;  %vm5161_vm11 = vcmask 7168  }
  0x2d   :  { %5173 = vmatmul.mubr.msk.f32.gmra.mrb[2].mxu1 %vm61_vm0, %v51_v4  ;;  %v6994_v4 = vsub.s32 0, %v239_v54 }
  0x2e   :  { %150 = vmatprep.mubr.f32.mxu1 %v8730_v0 }
  0x31   :  { %5174 = vmatmul.mubr.msk.f32.gmra.mrb[4].mxu1 %vm61_vm0, %v52_v5 }
  0x32   :  { %156 = vmatprep.mubr.f32.mxu1 %v8730_v0 }
  0x35   :  { %5175 = vmatmul.mubr.msk.f32.gmra.mrb[6].mxu1 %vm61_vm0, %v53_v6  ;;  %v6997_v6 = vsub.s32 1, %v239_v54 }
  0x36   :  { %227 = vmatprep.mubr.f32.mxu1 %v57_v7 }
  0xfc   :  { %v140_v8 = vpop.f32.mrb[0].mxu1 }
  0xfd   :  { %v142_v9 = vpop.f32.mrb[1].mxu1 }
 0x100   :  { %v146_v10 = vpop.f32.mrb[2].mxu1 }
 0x101   :  { %v148_v11 = vpop.f32.mrb[3].mxu1  ;;  %v6173_v12 = vpack.i.bf16 %v146_v10, %v140_v8  ;;  %v5855_v13 = vpack.c.bf16 %v146_v10, %v140_v8  ;;  %v7000_v8 = vsub.s32 2, %v239_v54  ;;  %v7003_v10 = vsub.s32 3, %v239_v54 }
 0x102   :  { %v6198_v14 = vpack.i.bf16 %v148_v11, %v142_v9  ;;  %v5853_v15 = vpack.c.bf16 %v148_v11, %v142_v9 }
 0x103   :  { %6174 = vrot.lane.b32.xlu0 %v6173_v12, %s6878_s19  ;;  %5862 = vmatprep.subr.bf16.mxu0 %v5855_v13  ;;  %8736 = vst [vmem:[#allocation8_spill] sm:$0xff] %v7003_v10 }
 0x104   :  { %5864 = vmatpush3.bf16.msra.mxu0 %v5855_v13  ;;  %6199 = vrot.lane.b32.xlu1 %v6198_v14, %s6879_s20  ;;  %v152_v16 = vpop.f32.mrb[4].mxu1 }
 0x105   :  { %5854 = vmatprep.subr.bf16.mxu1 %v5853_v15  ;;  %v154_v17 = vpop.f32.mrb[5].mxu1 }
 0x106   :  { %5856 = vmatpush1.bf16.xpose.msra.mxu1 %v5855_v13 }
 0x107   :  { %6179 = vrot.lane.b32.xlu0 %v6173_v12, %s6880_s0 }
 0x108   :  { %v158_v18 = vpop.f32.mrb[6].mxu1 }
 0x109   :  { %v160_v19 = vpop.f32.mrb[7].mxu1  ;;  %v6203_v20 = vpack.i.bf16 %v158_v18, %v152_v16  ;;  %v5859_v21 = vpack.c.bf16 %v158_v18, %v152_v16 }
 0x10a   :  { %v5857_v22 = vpack.c.bf16 %v160_v19, %v154_v17  ;;  %v6960_v23 = vpack.i.bf16 %v160_v19, %v154_v17 }
 0x10b   :  { %6184 = vrot.lane.b32.xlu0 %v6173_v12, %s6879_s20  ;;  %6204 = vrot.lane.b32.xlu1 %v6203_v20, %s6878_s19  ;;  %v6881_v12 = vmov 1966171168  }
 0x10c   :  { %5866 = vmatprep.subr.bf16.mxu0 %v5859_v21  ;;  %5858 = vmatprep.subr.bf16.mxu1 %v5857_v22  ;;  %v393_v13 = vunpack.c.l.s4 %v6881_v12 }
 0x10d   :  { %5868 = vmatpush3.bf16.msra.mxu0 %v5859_v21 }
 0x10e   :  { %5860 = vmatpush1.bf16.xpose.msra.mxu1 %v5859_v21  ;;  %5870 = vmatprep.subr.bf16.mxu0 %v5853_v15 }
 0x10f   :  { %6189 = vrot.lane.b32.xlu0 %v6198_v14, %s6878_s19  ;;  %6214 = vrot.lane.b32.xlu1 %v6203_v20, %s6879_s20 }
 0x111   :  { %5872 = vmatpush3.bf16.msra.mxu0 %v5853_v15 }
 0x112   :  { %5874 = vmatprep.subr.bf16.mxu0 %v5857_v22 }
 0x113   :  { %6194 = vrot.lane.b32.xlu0 %v6198_v14, %s6880_s0  ;;  %6219 = vrot.lane.b32.xlu1 %v6960_v23, %s6878_s19  ;;  %v394_v14 = vunpack.c.0.s8 %v393_v13 }
 0x115   :  { %228 = vmatmul.mubr.f32.vlgmr.msra.gmra.mrb[8].mxu1 %v56_v24  ;;  %5876 = vmatpush3.bf16.msra.mxu0 %v5857_v22  ;;  %v7006_v15 = vsub.s32 %v394_v14, %v239_v54 }
 0x116   :  { %232 = vmatprep.mubr.f32.mxu1 %v59_v25 }
 0x117   :  { %6209 = vrot.lane.b32.xlu0 %v6203_v20, %s6880_s0  ;;  %8737 = vst [vmem:[#allocation9_spill] sm:$0xff] %v7006_v15 }
 0x119   :  { %233 = vmatmul.mubr.f32.gmra.mrb[10].mxu1 %v58_v26 }
 0x175   :  { %v6175_v27 = vpop.permute.xlu0 %6174 }
 0x176   :  { %v6177_v28 = vunpack.i.h.bf16 %v6175_v27  ;;  %v6176_v29 = vunpack.i.l.bf16 %v6175_v27  ;;  %v6970_v31 = vpop.permute.xlu1 %6199 }
 0x178   :  { %v5877_v30 = vpack.c.bf16 %v6177_v28, %v6176_v29 }
 0x179   :  { %v6180_v32 = vpop.permute.xlu0 %6179 }
 0x17a   :  { %v6182_v33 = vunpack.i.h.bf16 %v6180_v32  ;;  %v6181_v34 = vunpack.i.l.bf16 %v6180_v32  ;;  %5878 = vmatprep.subr.bf16.mxu1 %v5877_v30 }
 0x17b   :  { %5880 = vmatpush3.bf16.msra.mxu1 %v5877_v30 }
 0x17c   :  { %v6972_v35 = vpack.c.bf16 %v6182_v33, %v6181_v34 }
 0x17d   :  { %v6185_v36 = vpop.permute.xlu0 %6184  ;;  %v6205_v37 = vpop.permute.xlu1 %6204 }
 0x17e   :  { %v6207_v38 = vunpack.i.h.bf16 %v6205_v37  ;;  %v6206_v39 = vunpack.i.l.bf16 %v6205_v37  ;;  %5894 = vmatprep.subr.bf16.mxu0 %v6972_v35  ;;  %v6187_v47 = vunpack.i.h.bf16 %v6185_v36  ;;  %v6186_v48 = vunpack.i.l.bf16 %v6185_v36  ;;  %v7022_v36 = vld [vmem:[#allocation2 + $0x20] sm:$0xff] }
 0x180   :  { %v5881_v40 = vpack.c.bf16 %v6207_v38, %v6206_v39  ;;  %v6977_v52 = vpack.c.bf16 %v6187_v47, %v6186_v48  ;;  %v7027_v47 = vld [vmem:[#allocation2 + $0x28] sm:$0xff] }
 0x181   :  { %v6190_v41 = vpop.permute.xlu0 %6189  ;;  %v6975_v42 = vpop.permute.xlu1 %6214 }
 0x182   :  { %v6192_v43 = vunpack.i.h.bf16 %v6190_v41  ;;  %v6191_v44 = vunpack.i.l.bf16 %v6190_v41  ;;  %5882 = vmatprep.subr.bf16.mxu1 %v5881_v40 }
 0x183   :  { %5884 = vmatpush3.bf16.msra.mxu1 %v5881_v40 }
 0x184   :  { %v5885_v45 = vpack.c.bf16 %v6192_v43, %v6191_v44 }
 0x185   :  { %v6220_v46 = vpop.permute.xlu1 %6219  ;;  %v7011_v19 = vpop.permute.xlu0 %6194 }
 0x186   :  { %v6222_v49 = vunpack.i.h.bf16 %v6220_v46  ;;  %v6221_v50 = vunpack.i.l.bf16 %v6220_v46  ;;  %5886 = vmatprep.subr.bf16.mxu1 %v5885_v45 }
 0x187   :  { %5888 = vmatpush3.bf16.msra.mxu1 %v5885_v45 }
 0x188   :  { %v5889_v51 = vpack.c.bf16 %v6222_v49, %v6221_v50 }
 0x189   :  { %v7017_v22 = vpop.permute.xlu0 %6209 }
 0x18a   :  { %5890 = vmatprep.subr.bf16.mxu1 %v5889_v51 }
 0x18b   :  { %5892 = vmatpush3.bf16.msra.mxu1 %v5889_v51 }
 0x18c   :  { %5910 = vmatprep.subr.bf16.mxu1 %v6977_v52 }
 0x1e8   :  { %v229_v57 = vpop.f32.mrb[8].mxu1 }
 0x1e9   :  { %v231_v58 = vpop.f32.mrb[9].mxu1  ;;  %v336_v59 = vrot.slane %v229_v57, %v6980_v55  ;;  %v317_v60 = vrot.slane %v229_v57, %v6982_v56  ;;  %v355_v1 = vrot.slane %v229_v57, %v6988_v63  ;;  %v374_v3 = vrot.slane %v229_v57, %v6991_v2 }
 0x1ea   :  { %v241_v5 = vrot.slane %v229_v57, %v6994_v4  ;;  %v260_v7 = vrot.slane %v229_v57, %v6997_v6  ;;  %v279_v9 = vrot.slane %v229_v57, %v7000_v8  ;;  %v298_v11 = vrot.slane %v229_v57, %v7003_v10 }
 0x1eb   :  { %338 = vbcast.lane.b32.xlu1 %v336_v59, 256  ;;  %319 = vbcast.lane.b32.xlu0 %v317_v60, 256 }
 0x1ec   :  { %v6986_v61 = vpop.f32.mrb[10].mxu1 }
 0x1ed   :  { %v236_v62 = vpop.f32.mrb[11].mxu1  ;;  %v391_v16 = vcombine.high %v6986_v61, %v6986_v61 }
 0x1ef   :  { %342 = vbcast.lane.b32.xlu1 %v336_v59, 264  ;;  %323 = vbcast.lane.b32.xlu0 %v317_v60, 264  ;;  %v405_v17 = vrot.slane %v391_v16, %v7006_v15 }
 0x1f1   :  { %v407_v18 = vcombine.high %v405_v17, %v405_v17  ;;  %v421_v20 = vrot.slane %v405_v17, %v7006_v15 }
 0x1f3   :  { %331 = vbcast.lane.b32.xlu1 %v317_v60, 280  ;;  %327 = vbcast.lane.b32.xlu0 %v317_v60, 272  ;;  %v7015_v21 = vrot.slane %v407_v18, %v7006_v15  ;;  %v459_v24 = vrot.slane %v421_v20, %v6994_v4  ;;  %v437_v57 = vcombine.high %v421_v20, %v421_v20 }
 0x1f5   :  { %v463_v25 = vrot.slane %v7015_v21, %v6994_v4  ;;  %v467_v20 = vrot.slane %v437_v57, %v6994_v4 }
 0x1f7   :  { %350 = vbcast.lane.b32.xlu1 %v336_v59, 280  ;;  %346 = vbcast.lane.b32.xlu0 %v336_v59, 272 }
 0x1fb   :  { %361 = vbcast.lane.b32.xlu1 %v355_v1, 264  ;;  %357 = vbcast.lane.b32.xlu0 %v355_v1, 256 }
 0x1ff   :  { %380 = vbcast.lane.b32.xlu1 %v374_v3, 264  ;;  %376 = vbcast.lane.b32.xlu0 %v374_v3, 256 }
 0x203   :  { %369 = vbcast.lane.b32.xlu1 %v355_v1, 280  ;;  %365 = vbcast.lane.b32.xlu0 %v355_v1, 272 }
 0x207   :  { %388 = vbcast.lane.b32.xlu1 %v374_v3, 280  ;;  %384 = vbcast.lane.b32.xlu0 %v374_v3, 272  ;;  %v7037_v3 = vld [vmem:[#allocation2 + $0x30] sm:$0xff] }
 0x20b   :  { %247 = vbcast.lane.b32.xlu1 %v241_v5, 264  ;;  %243 = vbcast.lane.b32.xlu0 %v241_v5, 256 }
 0x20f   :  { %266 = vbcast.lane.b32.xlu1 %v260_v7, 264  ;;  %262 = vbcast.lane.b32.xlu0 %v260_v7, 256 }
 0x213   :  { %255 = vbcast.lane.b32.xlu1 %v241_v5, 280  ;;  %251 = vbcast.lane.b32.xlu0 %v241_v5, 272  ;;  %v439_v5 = vcombine.high %v7015_v21, %v7015_v21 }
 0x217   :  { %274 = vbcast.lane.b32.xlu1 %v260_v7, 280  ;;  %270 = vbcast.lane.b32.xlu0 %v260_v7, 272 }
 0x21b   :  { %285 = vbcast.lane.b32.xlu1 %v279_v9, 264  ;;  %281 = vbcast.lane.b32.xlu0 %v279_v9, 256 }
 0x21f   :  { %304 = vbcast.lane.b32.xlu1 %v298_v11, 264  ;;  %300 = vbcast.lane.b32.xlu0 %v298_v11, 256 }
 0x223   :  { %289 = vbcast.lane.b32.xlu1 %v279_v9, 272  ;;  %293 = vbcast.lane.b32.xlu0 %v279_v9, 280 }
 0x227   :  { %308 = vbcast.lane.b32.xlu1 %v298_v11, 272  ;;  %312 = vbcast.lane.b32.xlu0 %v298_v11, 280 }
 0x25d   :  { %v339_v26 = vpop.permute.xlu1 %338  ;;  %v320_v27 = vpop.permute.xlu0 %319 }
 0x25e   :  { %v500_v28 = vadd.f32 %v463_v25, %v339_v26  ;;  %v496_v29 = vadd.f32 %v459_v24, %v320_v27 }
 0x260   :  { %v532_v30 = vmul.f32 0.2, %v500_v28  ;;  %v528_v32 = vmul.f32 0.2, %v496_v29 }
 0x261   :  { %v343_v33 = vpop.permute.xlu1 %342  ;;  %v324_v34 = vpop.permute.xlu0 %323 }
 0x262   :  { %v560_v37 = vmax.f32 %v496_v29, %v528_v32  ;;  %v501_v38 = vadd.f32 %v463_v25, %v343_v33  ;;  %v497_v39 = vadd.f32 %v459_v24, %v324_v34  ;;  %v564_v40 = vmax.f32 %v500_v28, %v532_v30 }
 0x264   :  { %v533_v41 = vmul.f32 0.2, %v501_v38  ;;  %v529_v43 = vmul.f32 0.2, %v497_v39  ;;  %v7025_v44 = vadd.f32 %v560_v37, %v7022_v36  ;;  %v7032_v54 = vadd.f32 %v564_v40, %v7022_v36 }
 0x265   :  { %v332_v45 = vpop.permute.xlu1 %331  ;;  %v328_v46 = vpop.permute.xlu0 %327 }
 0x266   :  { %v561_v48 = vmax.f32 %v497_v39, %v529_v43  ;;  %v499_v49 = vadd.f32 %v459_v24, %v332_v45  ;;  %v498_v50 = vadd.f32 %v459_v24, %v328_v46  ;;  %v565_v51 = vmax.f32 %v501_v38, %v533_v41  ;;  %v7052_v24 = vld [vmem:[#allocation2 + $0x38] sm:$0xff] }
 0x267   :  { %v657_v53 = vsel %vm608_vm1, %v7025_v44, -inf  ;;  %v669_v14 = vsel %vm608_vm1, %v7032_v54, -inf  ;;  %v471_v39 = vrot.slane %v439_v5, %v6994_v4  ;;  %v398_v45 = vrot.slane %v6986_v61, %v7006_v15 }
 0x268   :  { %v531_v58 = vmul.f32 0.2, %v499_v49  ;;  %v530_v59 = vmul.f32 0.2, %v498_v50  ;;  %658 = vmax.xlane.f32.xlu0 %v657_v53  ;;  %v7035_v60 = vadd.f32 %v561_v48, %v7027_v47  ;;  %v7046_v16 = vadd.f32 %v565_v51, %v7027_v47 }
 0x269   :  { %v351_v62 = vpop.permute.xlu1 %350  ;;  %v347_v1 = vpop.permute.xlu0 %346  ;;  %v406_v5 = vcombine.high %v398_v45, %v398_v45 }
 0x26a   :  { %v562_v7 = vmax.f32 %v498_v50, %v530_v59  ;;  %v503_v9 = vadd.f32 %v463_v25, %v351_v62  ;;  %v502_v11 = vadd.f32 %v463_v25, %v347_v1  ;;  %v563_v12 = vmax.f32 %v499_v49, %v531_v58 }
 0x26b   :  { %v660_v13 = vsel %vm608_vm1, %v7035_v60, -inf  ;;  %v672_v32 = vsel %vm608_vm1, %v7046_v16, -inf }
 0x26c   :  { %v535_v17 = vmul.f32 0.2, %v503_v9  ;;  %v534_v18 = vmul.f32 0.2, %v502_v11  ;;  %661 = vmax.xlane.f32.xlu1 %v660_v13  ;;  %670 = vmax.xlane.f32.xlu0 %v669_v14  ;;  %v7050_v21 = vadd.f32 %v562_v7, %v7037_v3  ;;  %v7059_v34 = vadd.f32 %v563_v12, %v7052_v24 }
 0x26d   :  { %v362_v25 = vpop.permute.xlu1 %361  ;;  %v358_v26 = vpop.permute.xlu0 %357 }
 0x26e   :  { %v566_v27 = vmax.f32 %v502_v11, %v534_v18  ;;  %v505_v28 = vadd.f32 %v467_v20, %v362_v25  ;;  %v504_v29 = vadd.f32 %v467_v20, %v358_v26  ;;  %v567_v30 = vmax.f32 %v503_v9, %v535_v17 }
 0x26f   :  { %v663_v33 = vsel %vm608_vm1, %v7050_v21, -inf  ;;  %v666_v51 = vsel %vm608_vm1, %v7059_v34, -inf  ;;  %v7085_v18 = vrot.slane %v398_v45, %v7006_v15 }
 0x270   :  { %v537_v37 = vmul.f32 0.2, %v505_v28  ;;  %v536_v38 = vmul.f32 0.2, %v504_v29  ;;  %673 = vmax.xlane.f32.xlu1 %v672_v32  ;;  %664 = vmax.xlane.f32.xlu0 %v663_v33  ;;  %v7063_v40 = vadd.f32 %v566_v27, %v7037_v3  ;;  %v7072_v57 = vadd.f32 %v567_v30, %v7052_v24 }
 0x271   :  { %v381_v41 = vpop.permute.xlu1 %380  ;;  %v377_v43 = vpop.permute.xlu0 %376 }
 0x272   :  { %v568_v46 = vmax.f32 %v504_v29, %v536_v38  ;;  %v509_v48 = vadd.f32 %v471_v39, %v381_v41  ;;  %v508_v49 = vadd.f32 %v471_v39, %v377_v43  ;;  %v569_v50 = vmax.f32 %v505_v28, %v537_v37 }
 0x273   :  { %v675_v53 = vsel %vm608_vm1, %v7063_v40, -inf  ;;  %v678_v14 = vsel %vm608_vm1, %v7072_v57, -inf  ;;  %v7091_v29 = vrot.slane %v406_v5, %v7006_v15 }
 0x274   :  { %v541_v58 = vmul.f32 0.2, %v509_v48  ;;  %v540_v59 = vmul.f32 0.2, %v508_v49  ;;  %667 = vmax.xlane.f32.xlu1 %v666_v51  ;;  %676 = vmax.xlane.f32.xlu0 %v675_v53  ;;  %v7075_v62 = vadd.f32 %v568_v46, %v7022_v36  ;;  %v7082_v17 = vadd.f32 %v569_v50, %v7027_v47 }
 0x275   :  { %v370_v61 = vpop.permute.xlu1 %369  ;;  %v366_v1 = vpop.permute.xlu0 %365 }
 0x276   :  { %v572_v7 = vmax.f32 %v508_v49, %v540_v59  ;;  %v507_v9 = vadd.f32 %v467_v20, %v370_v61  ;;  %v506_v11 = vadd.f32 %v467_v20, %v366_v1  ;;  %v573_v12 = vmax.f32 %v509_v48, %v541_v58 }
 0x277   :  { %v681_v13 = vsel %vm608_vm1, %v7075_v62, -inf  ;;  %v684_v41 = vsel %vm608_vm1, %v7082_v17, -inf  ;;  %v7119_v61 = vrot.slane %v7091_v29, %v6994_v4 }
 0x278   :  { %v539_v25 = vmul.f32 0.2, %v507_v9  ;;  %v538_v26 = vmul.f32 0.2, %v506_v11  ;;  %682 = vmax.xlane.f32.xlu1 %v681_v13  ;;  %679 = vmax.xlane.f32.xlu0 %v678_v14  ;;  %v7088_v27 = vadd.f32 %v572_v7, %v7022_v36  ;;  %v7098_v43 = vadd.f32 %v573_v12, %v7027_v47 }
 0x279   :  { %v389_v20 = vpop.permute.xlu1 %388  ;;  %v385_v28 = vpop.permute.xlu0 %384  ;;  %v7102_v36 = vrot.slane %v7085_v18, %v6994_v4 }
 0x27a   :  { %v570_v30 = vmax.f32 %v506_v11, %v538_v26  ;;  %v511_v32 = vadd.f32 %v471_v39, %v389_v20  ;;  %v510_v33 = vadd.f32 %v471_v39, %v385_v28  ;;  %v571_v37 = vmax.f32 %v507_v9, %v539_v25 }
 0x27b   :  { %v693_v38 = vsel %vm608_vm1, %v7088_v27, -inf  ;;  %v696_v58 = vsel %vm608_vm1, %v7098_v43, -inf }
 0x27c   :  { %v543_v45 = vmul.f32 0.2, %v511_v32  ;;  %v542_v46 = vmul.f32 0.2, %v510_v33  ;;  %694 = vmax.xlane.f32.xlu1 %v693_v38  ;;  %685 = vmax.xlane.f32.xlu0 %v684_v41  ;;  %v7105_v39 = vadd.f32 %v570_v30, %v7037_v3  ;;  %v7115_v59 = vadd.f32 %v571_v37, %v7052_v24 }
 0x27d   :  { %v248_v48 = vpop.permute.xlu1 %247  ;;  %v7107_v49 = vpop.permute.xlu0 %243  ;;  %v436_v38 = vcombine.high %v7085_v18, %v7085_v18  ;;  %v45_v18 = vld [vmem:[#allocation2 + $0x18] sm:$0xff] }
 0x27e   :  { %v574_v50 = vmax.f32 %v510_v33, %v542_v46  ;;  %v481_v51 = vadd.f32 %v7102_v36, %v248_v48  ;;  %v575_v53 = vmax.f32 %v511_v32, %v543_v45  ;;  %v687_v47 = vsel %vm608_vm1, %v7105_v39, -inf }
 0x27f   :  { %v690_v14 = vsel %vm608_vm1, %v7115_v59, -inf }
 0x280   :  { %v513_v1 = vmul.f32 0.2, %v481_v51  ;;  %688 = vmax.xlane.f32.xlu1 %v687_v47  ;;  %697 = vmax.xlane.f32.xlu0 %v696_v58  ;;  %v7122_v5 = vadd.f32 %v574_v50, %v7037_v3  ;;  %v7132_v25 = vadd.f32 %v575_v53, %v7052_v24  ;;  %v43_v3 = vld [vmem:[#allocation2 + $0x8] sm:$0xff]  ;;  %v438_v53 = vcombine.high %v7091_v29, %v7091_v29 }
 0x281   :  { %v267_v7 = vpop.permute.xlu1 %266  ;;  %v7124_v9 = vpop.permute.xlu0 %262  ;;  %v7151_v47 = vrot.slane %v436_v38, %v6994_v4 }
 0x282   :  { %v485_v11 = vadd.f32 %v7119_v61, %v267_v7  ;;  %v545_v12 = vmax.f32 %v481_v51, %v513_v1  ;;  %v699_v13 = vsel %vm608_vm1, %v7122_v5, -inf  ;;  %v702_v33 = vsel %vm608_vm1, %v7132_v25, -inf }
 0x283   :  { %v7159_v29 = vrot.slane %v438_v53, %v6994_v4 }
 0x284   :  { %v517_v26 = vmul.f32 0.2, %v485_v11  ;;  %700 = vmax.xlane.f32.xlu1 %v699_v13  ;;  %691 = vmax.xlane.f32.xlu0 %v690_v14  ;;  %v7139_v37 = vadd.f32 %v545_v12, %v43_v3 }
 0x285   :  { %v256_v20 = vpop.permute.xlu1 %255  ;;  %v7134_v28 = vpop.permute.xlu0 %251 }
 0x286   :  { %v483_v30 = vadd.f32 %v7102_v36, %v256_v20  ;;  %v549_v32 = vmax.f32 %v485_v11, %v517_v26  ;;  %v612_v50 = vsel %vm608_vm1, %v7139_v37, -inf }
 0x288   :  { %v515_v24 = vmul.f32 0.2, %v483_v30  ;;  %703 = vmax.xlane.f32.xlu0 %v702_v33  ;;  %v7146_v51 = vadd.f32 %v549_v32, %v43_v3 }
 0x289   :  { %v275_v41 = vpop.permute.xlu1 %274  ;;  %v271_v45 = vpop.permute.xlu0 %270 }
 0x28a   :  { %v487_v46 = vadd.f32 %v7119_v61, %v275_v41  ;;  %v547_v48 = vmax.f32 %v483_v30, %v515_v24  ;;  %v624_v13 = vsel %vm608_vm1, %v7146_v51, -inf }
 0x28c   :  { %v519_v58 = vmul.f32 0.2, %v487_v46  ;;  %613 = vmax.xlane.f32.xlu0 %v612_v50  ;;  %v7156_v14 = vadd.f32 %v547_v48, %v45_v18 }
 0x28d   :  { %v286_v1 = vpop.permute.xlu1 %285  ;;  %v282_v7 = vpop.permute.xlu0 %281 }
 0x28e   :  { %v489_v11 = vadd.f32 %v7151_v47, %v286_v1  ;;  %v551_v12 = vmax.f32 %v487_v46, %v519_v58  ;;  %v618_v38 = vsel %vm608_vm1, %v7156_v14, -inf }
 0x290   :  { %v521_v26 = vmul.f32 0.2, %v489_v11  ;;  %625 = vmax.xlane.f32.xlu0 %v624_v13  ;;  %v7164_v24 = vadd.f32 %v551_v12, %v45_v18 }
 0x291   :  { %v305_v20 = vpop.permute.xlu1 %304  ;;  %v301_v30 = vpop.permute.xlu0 %300 }
 0x292   :  { %v493_v32 = vadd.f32 %v7159_v29, %v305_v20  ;;  %v553_v33 = vmax.f32 %v489_v11, %v521_v26  ;;  %v630_v53 = vsel %vm608_vm1, %v7164_v24, -inf }
 0x294   :  { %v525_v41 = vmul.f32 0.2, %v493_v32  ;;  %619 = vmax.xlane.f32.xlu0 %v618_v38  ;;  %v7171_v58 = vadd.f32 %v553_v33, %v43_v3 }
 0x295   :  { %6224 = vrot.lane.b32.xlu1 %v6960_v23, %s6880_s0  ;;  %v294_v46 = vpop.permute.xlu0 %293 }
 0x296   :  { %v491_v48 = vadd.f32 %v7151_v47, %v294_v46  ;;  %v557_v50 = vmax.f32 %v493_v32, %v525_v41  ;;  %v636_v26 = vsel %vm608_vm1, %v7171_v58, -inf }
 0x298   :  { %v523_v1 = vmul.f32 0.2, %v491_v48  ;;  %631 = vmax.xlane.f32.xlu0 %v630_v53  ;;  %v7176_v20 = vadd.f32 %v557_v50, %v43_v3  ;;  %v480_v3 = vadd.f32 %v7102_v36, %v7107_v49  ;;  %v488_v49 = vadd.f32 %v7151_v47, %v282_v7 }
 0x299   :  { %v313_v11 = vpop.permute.xlu0 %312 }
 0x29a   :  { %v495_v12 = vadd.f32 %v7159_v29, %v313_v11  ;;  %v555_v13 = vmax.f32 %v491_v48, %v523_v1  ;;  %v648_v32 = vsel %vm608_vm1, %v7176_v20, -inf  ;;  %v512_v50 = vmul.f32 0.2, %v480_v3 }
 0x29b   :  { %v484_v1 = vadd.f32 %v7119_v61, %v7124_v9 }
 0x29c   :  { %v527_v38 = vmul.f32 0.2, %v495_v12  ;;  %637 = vmax.xlane.f32.xlu0 %v636_v26  ;;  %v7180_v41 = vadd.f32 %v555_v13, %v45_v18  ;;  %v544_v11 = vmax.f32 %v480_v3, %v512_v50  ;;  %v482_v13 = vadd.f32 %v7102_v36, %v7134_v28  ;;  %v42_v26 = vld [vmem:[#allocation2] sm:$0xff]  ;;  %v44_v3 = vld [vmem:[#allocation2 + $0x10] sm:$0xff]  ;;  %v290_v36 = vpop.permute.xlu1 %289 }
 0x29d   :  { %v520_v28 = vmul.f32 0.2, %v488_v49 }
 0x29e   :  { %v559_v46 = vmax.f32 %v495_v12, %v527_v38  ;;  %v642_v33 = vsel %vm608_vm1, %v7180_v41, -inf  ;;  %v516_v12 = vmul.f32 0.2, %v484_v1 }
 0x29f   :  { %v552_v7 = vmax.f32 %v488_v49, %v520_v28 }
 0x2a0   :  { %649 = vmax.xlane.f32.xlu0 %v648_v32  ;;  %v7184_v53 = vadd.f32 %v559_v46, %v45_v18  ;;  %v486_v18 = vadd.f32 %v7119_v61, %v271_v45  ;;  %v548_v38 = vmax.f32 %v484_v1, %v516_v12  ;;  %v514_v46 = vmul.f32 0.2, %v482_v13 }
 0x2a1   :  { %v7195_v32 = vadd.f32 %v544_v11, %v42_v26  ;;  %v492_v61 = vadd.f32 %v7159_v29, %v301_v30 }
 0x2a2   :  { %v654_v48 = vsel %vm608_vm1, %v7184_v53, -inf  ;;  %v546_v0 = vmax.f32 %v482_v13, %v514_v46  ;;  %v7200_v9 = vadd.f32 %v548_v38, %v42_v26  ;;  %v490_v13 = vadd.f32 %v7151_v47, %v290_v36 }
 0x2a3   :  { %v524_v12 = vmul.f32 0.2, %v492_v61 }
 0x2a4   :  { %643 = vmax.xlane.f32.xlu0 %v642_v33  ;;  %v518_v33 = vmul.f32 0.2, %v486_v18  ;;  %v621_v45 = vsel %vm608_vm1, %v7200_v9, -inf  ;;  %v7205_v1 = vadd.f32 %v546_v0, %v44_v3 }
 0x2a5   :  { %v556_v46 = vmax.f32 %v492_v61, %v524_v12 }
 0x2a6   :  { %v550_v50 = vmax.f32 %v486_v18, %v518_v33  ;;  %v615_v38 = vsel %vm608_vm1, %v7205_v1, -inf  ;;  %v309_v18 = vpop.permute.xlu1 %308  ;;  %v522_v33 = vmul.f32 0.2, %v490_v13 }
 0x2a7   :  { %v494_v0 = vadd.f32 %v7159_v29, %v309_v18  ;;  %v7219_v36 = vadd.f32 %v556_v46, %v42_v26 }
 0x2a8   :  { %655 = vmax.xlane.f32.xlu0 %v654_v48  ;;  %v609_v48 = vsel %vm608_vm1, %v7195_v32, -inf  ;;  %v7207_v11 = vadd.f32 %v550_v50, %v44_v3  ;;  %v554_v50 = vmax.f32 %v490_v13, %v522_v33 }
 0x2a9   :  { %v526_v49 = vmul.f32 0.2, %v494_v0 }
 0x2aa   :  { %v627_v30 = vsel %vm608_vm1, %v7207_v11, -inf }
 0x2ab   :  { %v558_v28 = vmax.f32 %v494_v0, %v526_v49 }
 0x2ad   :  { %v7227_v61 = vadd.f32 %v558_v28, %v44_v3 }
 0x2b9   :  { %610 = vmax.xlane.f32.xlu1 %v609_v48  ;;  %v7215_v48 = vadd.f32 %v552_v7, %v42_v26  ;;  %v651_v7 = vsel %vm608_vm1, %v7227_v61, -inf }
 0x2bb   :  { %v633_v47 = vsel %vm608_vm1, %v7215_v48, -inf }
 0x2bd   :  { %622 = vmax.xlane.f32.xlu1 %v621_v45  ;;  %v645_v45 = vsel %vm608_vm1, %v7219_v36, -inf }
 0x2c1   :  { %616 = vmax.xlane.f32.xlu1 %v615_v38  ;;  %v7223_v38 = vadd.f32 %v554_v50, %v44_v3 }
 0x2c3   :  { %v639_v29 = vsel %vm608_vm1, %v7223_v38, -inf }
 0x2c5   :  { %628 = vmax.xlane.f32.xlu1 %v627_v30 }
 0x2c9   :  { %634 = vmax.xlane.f32.xlu1 %v633_v47 }
 0x2cd   :  { %646 = vmax.xlane.f32.xlu1 %v645_v45 }
 0x2d1   :  { %640 = vmax.xlane.f32.xlu1 %v639_v29 }
 0x2d5   :  { %652 = vmax.xlane.f32.xlu1 %v651_v7 }
 0x2f5   :  { %v659_v26 = vpop.xlane.xlu0 %658 }
 0x2f6   :  { %v721_v12 = vsub.f32 %v7025_v44, %v659_v26 }
 0x2f8   :  { %v769_v13 = vmul.f32 1.442695, %v721_v12 }
 0x2f9   :  { %v662_v18 = vpop.xlane.xlu1 %661  ;;  %v671_v30 = vpop.xlane.xlu0 %670 }
 0x2fa   :  { %6383 = vpow2.f32 %v769_v13  ;;  %v722_v46 = vsub.f32 %v7035_v60, %v662_v18  ;;  %v725_v33 = vsub.f32 %v7032_v54, %v671_v30 }
 0x2fc   :  { %v771_v0 = vmul.f32 1.442695, %v722_v46  ;;  %v777_v50 = vmul.f32 1.442695, %v725_v33 }
 0x2fd   :  { %v674_v3 = vpop.xlane.xlu1 %673  ;;  %v665_v49 = vpop.xlane.xlu0 %664 }
 0x2fe   :  { %6385 = vpow2.f32 %v771_v0  ;;  %v726_v47 = vsub.f32 %v7046_v16, %v674_v3  ;;  %v723_v28 = vsub.f32 %v7050_v21, %v665_v49 }
 0x2ff   :  { %6387 = vpow2.f32 %v777_v50 }
 0x300   :  { %v779_v45 = vmul.f32 1.442695, %v726_v47  ;;  %v773_v44 = vmul.f32 1.442695, %v723_v28 }
 0x301   :  { %v668_v29 = vpop.xlane.xlu1 %667  ;;  %v677_v7 = vpop.xlane.xlu0 %676 }
 0x302   :  { %6389 = vpow2.f32 %v779_v45  ;;  %v724_v26 = vsub.f32 %v7059_v34, %v668_v29  ;;  %v727_v60 = vsub.f32 %v7063_v40, %v677_v7 }
 0x303   :  { %6391 = vpow2.f32 %v773_v44 }
 0x304   :  { %v7238_v54 = vpop.eup %6383  ;;  %v775_v12 = vmul.f32 1.442695, %v724_v26  ;;  %v781_v13 = vmul.f32 1.442695, %v727_v60 }
 0x305   :  { %v683_v18 = vpop.xlane.xlu1 %682  ;;  %v680_v30 = vpop.xlane.xlu0 %679  ;;  %v849_v16 = vsel %vm608_vm1, %v7238_v54, 0.0 }
 0x306   :  { %6393 = vpow2.f32 %v775_v12  ;;  %v729_v21 = vsub.f32 %v7075_v62, %v683_v18  ;;  %v728_v46 = vsub.f32 %v7072_v57, %v680_v30  ;;  %850 = vadd.xlane.f32.xlu1 %v849_v16 }
 0x307   :  { %6395 = vpow2.f32 %v781_v13 }
 0x308   :  { %v7244_v34 = vpop.eup %6385  ;;  %v785_v40 = vmul.f32 1.442695, %v729_v21  ;;  %v783_v33 = vmul.f32 1.442695, %v728_v46 }
 0x309   :  { %v7246_v0 = vpop.eup %6387  ;;  %v695_v50 = vpop.xlane.xlu1 %694  ;;  %v852_v49 = vsel %vm608_vm1, %v7244_v34, 0.0 }
 0x30a   :  { %v686_v3 = vpop.xlane.xlu0 %685  ;;  %6397 = vpow2.f32 %v785_v40  ;;  %v733_v47 = vsub.f32 %v7088_v27, %v695_v50  ;;  %853 = vadd.xlane.f32.xlu0 %v852_v49  ;;  %v861_v57 = vsel %vm608_vm1, %v7246_v0, 0.0 }
 0x30b   :  { %v730_v62 = vsub.f32 %v7082_v17, %v686_v3  ;;  %6399 = vpow2.f32 %v783_v33  ;;  %862 = vadd.xlane.f32.xlu1 %v861_v57 }
 0x30c   :  { %v7254_v28 = vpop.eup %6389  ;;  %v793_v45 = vmul.f32 1.442695, %v733_v47 }
 0x30d   :  { %v787_v44 = vmul.f32 1.442695, %v730_v62  ;;  %v7256_v29 = vpop.eup %6391  ;;  %v689_v7 = vpop.xlane.xlu1 %688  ;;  %v864_v60 = vsel %vm608_vm1, %v7254_v28, 0.0 }
 0x30e   :  { %v698_v26 = vpop.xlane.xlu0 %697  ;;  %6401 = vpow2.f32 %v793_v45  ;;  %v731_v17 = vsub.f32 %v7105_v39, %v689_v7  ;;  %865 = vadd.xlane.f32.xlu0 %v864_v60  ;;  %v855_v12 = vsel %vm608_vm1, %v7256_v29, 0.0 }
 0x30f   :  { %v734_v27 = vsub.f32 %v7098_v43, %v698_v26  ;;  %6403 = vpow2.f32 %v787_v44  ;;  %856 = vadd.xlane.f32.xlu1 %v855_v12 }
 0x310   :  { %v7264_v13 = vpop.eup %6393  ;;  %v789_v18 = vmul.f32 1.442695, %v731_v17 }
 0x311   :  { %v795_v30 = vmul.f32 1.442695, %v734_v27  ;;  %v7266_v16 = vpop.eup %6395  ;;  %v701_v21 = vpop.xlane.xlu1 %700  ;;  %v858_v40 = vsel %vm608_vm1, %v7264_v13, 0.0 }
 0x312   :  { %v692_v46 = vpop.xlane.xlu0 %691  ;;  %6405 = vpow2.f32 %v789_v18  ;;  %v735_v43 = vsub.f32 %v7122_v5, %v701_v21  ;;  %859 = vadd.xlane.f32.xlu0 %v858_v40  ;;  %v867_v33 = vsel %vm608_vm1, %v7266_v16, 0.0 }
 0x313   :  { %v732_v39 = vsub.f32 %v7115_v59, %v692_v46  ;;  %6407 = vpow2.f32 %v795_v30  ;;  %868 = vadd.xlane.f32.xlu1 %v867_v33 }
 0x314   :  { %v7274_v50 = vpop.eup %6397  ;;  %v797_v3 = vmul.f32 1.442695, %v735_v43 }
 0x315   :  { %v791_v49 = vmul.f32 1.442695, %v732_v39  ;;  %v7276_v47 = vpop.eup %6399  ;;  %v873_v57 = vsel %vm608_vm1, %v7274_v50, 0.0 }
 0x316   :  { %v704_v62 = vpop.xlane.xlu0 %703  ;;  %6409 = vpow2.f32 %v797_v3  ;;  %v870_v59 = vsel %vm608_vm1, %v7276_v47, 0.0 }
 0x317   :  { %v736_v5 = vsub.f32 %v7132_v25, %v704_v62  ;;  %6411 = vpow2.f32 %v791_v49  ;;  %874 = vadd.xlane.f32.xlu1 %v873_v57  ;;  %871 = vadd.xlane.f32.xlu0 %v870_v59  ;;  %v7313_v62 = vpop.permute.xlu1 %6224 }
 0x318   :  { %v7283_v45 = vpop.eup %6401 }
 0x319   :  { %v799_v44 = vmul.f32 1.442695, %v736_v5  ;;  %v7285_v7 = vpop.eup %6403  ;;  %v885_v26 = vsel %vm608_vm1, %v7283_v45, 0.0 }
 0x31a   :  { %v876_v60 = vsel %vm608_vm1, %v7285_v7, 0.0  ;;  %v614_v39 = vpop.xlane.xlu0 %613 }
 0x31b   :  { %6413 = vpow2.f32 %v799_v44  ;;  %886 = vadd.xlane.f32.xlu1 %v885_v26  ;;  %877 = vadd.xlane.f32.xlu0 %v876_v60  ;;  %v706_v57 = vsub.f32 %v7139_v37, %v614_v39 }
 0x31c   :  { %v7291_v25 = vpop.eup %6405 }
 0x31d   :  { %v7293_v17 = vpop.eup %6407  ;;  %v879_v27 = vsel %vm608_vm1, %v7291_v25, 0.0  ;;  %v739_v60 = vmul.f32 1.442695, %v706_v57 }
 0x31e   :  { %v888_v12 = vsel %vm608_vm1, %v7293_v17, 0.0  ;;  %v626_v33 = vpop.xlane.xlu0 %625 }
 0x31f   :  { %880 = vadd.xlane.f32.xlu1 %v879_v27  ;;  %889 = vadd.xlane.f32.xlu0 %v888_v12  ;;  %v710_v27 = vsub.f32 %v7146_v51, %v626_v33 }
 0x320   :  { %v7299_v18 = vpop.eup %6409 }
 0x321   :  { %v7301_v30 = vpop.eup %6411  ;;  %v891_v21 = vsel %vm608_vm1, %v7299_v18, 0.0  ;;  %v747_v15 = vmul.f32 1.442695, %v710_v27 }
 0x322   :  { %v882_v46 = vsel %vm608_vm1, %v7301_v30, 0.0  ;;  %v620_v3 = vpop.xlane.xlu0 %619 }
 0x323   :  { %892 = vadd.xlane.f32.xlu1 %v891_v21  ;;  %883 = vadd.xlane.f32.xlu0 %v882_v46 }
 0x325   :  { %v7307_v40 = vpop.eup %6413 }
 0x326   :  { %v894_v43 = vsel %vm608_vm1, %v7307_v40, 0.0  ;;  %v632_v49 = vpop.xlane.xlu0 %631 }
 0x327   :  { %895 = vadd.xlane.f32.xlu0 %v894_v43 }
 0x32a   :  { %v638_v5 = vpop.xlane.xlu0 %637 }
 0x32b   :  { %v714_v37 = vsub.f32 %v7171_v58, %v638_v5 }
 0x32e   :  { %v650_v46 = vpop.xlane.xlu0 %649 }
 0x332   :  { %v644_v51 = vpop.xlane.xlu0 %643 }
 0x33d   :  { %6229 = vrot.lane.b32.xlu0 %v6960_v23, %s6879_s20  ;;  %v708_v23 = vsub.f32 %v7156_v14, %v620_v3 }
 0x33f   :  { %v743_v39 = vmul.f32 1.442695, %v708_v23 }
 0x346   :  { %v611_v59 = vpop.xlane.xlu1 %610 }
 0x347   :  { %v705_v44 = vsub.f32 %v7195_v32, %v611_v59  ;;  %v755_v59 = vmul.f32 1.442695, %v714_v37 }
 0x349   :  { %v737_v26 = vmul.f32 1.442695, %v705_v44  ;;  %v712_v44 = vsub.f32 %v7164_v24, %v632_v49 }
 0x34a   :  { %v623_v12 = vpop.xlane.xlu1 %622 }
 0x34b   :  { %6415 = vpow2.f32 %v737_v26  ;;  %v709_v21 = vsub.f32 %v7200_v9, %v623_v12  ;;  %v718_v9 = vsub.f32 %v7176_v20, %v650_v46  ;;  %v656_v20 = vpop.xlane.xlu0 %655 }
 0x34c   :  { %6417 = vpow2.f32 %v739_v60 }
 0x34d   :  { %v745_v43 = vmul.f32 1.442695, %v709_v21  ;;  %v720_v21 = vsub.f32 %v7184_v53, %v656_v20 }
 0x34e   :  { %v617_v10 = vpop.xlane.xlu1 %616 }
 0x34f   :  { %6419 = vpow2.f32 %v745_v43  ;;  %v707_v32 = vsub.f32 %v7205_v1, %v617_v10  ;;  %v716_v1 = vsub.f32 %v7180_v41, %v644_v51  ;;  %v767_v53 = vmul.f32 1.442695, %v720_v21 }
 0x350   :  { %6421 = vpow2.f32 %v747_v15  ;;  %v763_v15 = vmul.f32 1.442695, %v718_v9 }
 0x351   :  { %v741_v57 = vmul.f32 1.442695, %v707_v32  ;;  %v759_v12 = vmul.f32 1.442695, %v716_v1 }
 0x352   :  { %v629_v33 = vpop.xlane.xlu1 %628 }
 0x353   :  { %6423 = vpow2.f32 %v741_v57  ;;  %v711_v14 = vsub.f32 %v7207_v11, %v629_v33  ;;  %v751_v11 = vmul.f32 1.442695, %v712_v44 }
 0x354   :  { %6425 = vpow2.f32 %v743_v39 }
 0x355   :  { %v7324_v3 = vpop.eup %6415  ;;  %v749_v58 = vmul.f32 1.442695, %v711_v14  ;;  %6427 = vpow2.f32 %v755_v59 }
 0x356   :  { %v635_v5 = vpop.xlane.xlu1 %634  ;;  %v801_v10 = vsel %vm608_vm1, %v7324_v3, 0.0  ;;  %v7330_v26 = vpop.eup %6417 }
 0x357   :  { %802 = vadd.xlane.f32.xlu1 %v801_v10  ;;  %6429 = vpow2.f32 %v749_v58  ;;  %v713_v27 = vsub.f32 %v7215_v48, %v635_v5  ;;  %v804_v46 = vsel %vm608_vm1, %v7330_v26, 0.0 }
 0x358   :  { %6431 = vpow2.f32 %v763_v15 }
 0x359   :  { %v7332_v60 = vpop.eup %6419  ;;  %6433 = vpow2.f32 %v751_v11  ;;  %v753_v43 = vmul.f32 1.442695, %v713_v27 }
 0x35a   :  { %v647_v24 = vpop.xlane.xlu1 %646  ;;  %v813_v49 = vsel %vm608_vm1, %v7332_v60, 0.0  ;;  %v7338_v41 = vpop.eup %6421  ;;  %6435 = vpow2.f32 %v759_v12 }
 0x35b   :  { %814 = vadd.xlane.f32.xlu1 %v813_v49  ;;  %v717_v48 = vsub.f32 %v7219_v36, %v647_v24  ;;  %v816_v57 = vsel %vm608_vm1, %v7338_v41, 0.0  ;;  %6437 = vpow2.f32 %v753_v43 }
 0x35c   :  { %805 = vadd.xlane.f32.xlu0 %v804_v46  ;;  %6439 = vpow2.f32 %v767_v53 }
 0x35d   :  { %v7342_v23 = vpop.eup %6423  ;;  %v761_v33 = vmul.f32 1.442695, %v717_v48 }
 0x35e   :  { %v641_v37 = vpop.xlane.xlu1 %640  ;;  %v807_v32 = vsel %vm608_vm1, %v7342_v23, 0.0  ;;  %v7347_v39 = vpop.eup %6425 }
 0x35f   :  { %808 = vadd.xlane.f32.xlu1 %v807_v32  ;;  %v7351_v51 = vpop.eup %6427  ;;  %v715_v59 = vsub.f32 %v7223_v38, %v641_v37  ;;  %v810_v9 = vsel %vm608_vm1, %v7347_v39, 0.0  ;;  %6441 = vpow2.f32 %v761_v33 }
 0x360   :  { %817 = vadd.xlane.f32.xlu0 %v816_v57  ;;  %v828_v44 = vsel %vm608_vm1, %v7351_v51, 0.0 }
 0x361   :  { %v7356_v14 = vpop.eup %6429  ;;  %v757_v5 = vmul.f32 1.442695, %v715_v59 }
 0x362   :  { %v653_v36 = vpop.xlane.xlu1 %652  ;;  %v7360_v58 = vpop.eup %6431  ;;  %v819_v38 = vsel %vm608_vm1, %v7356_v14, 0.0 }
 0x363   :  { %811 = vadd.xlane.f32.xlu1 %v810_v9  ;;  %v719_v10 = vsub.f32 %v7227_v61, %v653_v36  ;;  %v7365_v15 = vpop.eup %6433  ;;  %v840_v1 = vsel %vm608_vm1, %v7360_v58, 0.0  ;;  %6443 = vpow2.f32 %v757_v5 }
 0x364   :  { %829 = vadd.xlane.f32.xlu0 %v828_v44  ;;  %v7369_v20 = vpop.eup %6435  ;;  %v822_v27 = vsel %vm608_vm1, %v7365_v15, 0.0 }
 0x365   :  { %v765_v11 = vmul.f32 1.442695, %v719_v10  ;;  %v7373_v24 = vpop.eup %6437  ;;  %v834_v61 = vsel %vm608_vm1, %v7369_v20, 0.0 }
 0x366   :  { %v7377_v49 = vpop.eup %6439  ;;  %v825_v12 = vsel %vm608_vm1, %v7373_v24, 0.0 }
 0x367   :  { %820 = vadd.xlane.f32.xlu1 %v819_v38  ;;  %6445 = vpow2.f32 %v765_v11  ;;  %v846_v46 = vsel %vm608_vm1, %v7377_v49, 0.0 }
 0x368   :  { %841 = vadd.xlane.f32.xlu0 %v840_v1 }
 0x369   :  { %v7381_v21 = vpop.eup %6441 }
 0x36a   :  { %v837_v43 = vsel %vm608_vm1, %v7381_v21, 0.0 }
 0x36b   :  { %823 = vadd.xlane.f32.xlu1 %v822_v27 }
 0x36c   :  { %835 = vadd.xlane.f32.xlu0 %v834_v61 }
 0x36d   :  { %v7387_v48 = vpop.eup %6443 }
 0x36e   :  { %v831_v37 = vsel %vm608_vm1, %v7387_v48, 0.0 }
 0x36f   :  { %826 = vadd.xlane.f32.xlu1 %v825_v12 }
 0x370   :  { %847 = vadd.xlane.f32.xlu0 %v846_v46 }
 0x371   :  { %v7391_v32 = vpop.eup %6445 }
 0x372   :  { %v843_v53 = vsel %vm608_vm1, %v7391_v32, 0.0 }
 0x373   :  { %838 = vadd.xlane.f32.xlu1 %v837_v43 }
 0x377   :  { %832 = vadd.xlane.f32.xlu1 %v831_v37 }
 0x37b   :  { %844 = vadd.xlane.f32.xlu1 %v843_v53 }
 0x393   :  { %v851_v57 = vpop.xlane.xlu1 %850 }
 0x394   :  { %6447 = vrcp.f32 %v851_v57 }
 0x397   :  { %v854_v33 = vpop.xlane.xlu0 %853 }
 0x398   :  { %6449 = vrcp.f32 %v854_v33  ;;  %v863_v59 = vpop.xlane.xlu1 %862 }
 0x399   :  { %6451 = vrcp.f32 %v863_v59 }
 0x39b   :  { %v866_v36 = vpop.xlane.xlu0 %865 }
 0x39c   :  { %6453 = vrcp.f32 %v866_v36  ;;  %v857_v9 = vpop.xlane.xlu1 %856 }
 0x39d   :  { %6455 = vrcp.f32 %v857_v9 }
 0x39e   :  { %v6448_v44 = vpop.eup %6447 }
 0x39f   :  { %v860_v5 = vpop.xlane.xlu0 %859  ;;  %v945_v10 = vmul.f32 %v6448_v44, %v7238_v54 }
 0x3a0   :  { %v869_v38 = vpop.xlane.xlu1 %868 }
 0x3a1   :  { %6457 = vrcp.f32 %v869_v38  ;;  %965 = vrot.lane.b32.xlu1 %v945_v10, %s6879_s20 }
 0x3a2   :  { %v6450_v1 = vpop.eup %6449  ;;  %6459 = vrcp.f32 %v860_v5 }
 0x3a3   :  { %v946_v11 = vmul.f32 %v6450_v1, %v7244_v34  ;;  %v6452_v27 = vpop.eup %6451 }
 0x3a4   :  { %v875_v61 = vpop.xlane.xlu1 %874  ;;  %v872_v12 = vpop.xlane.xlu0 %871  ;;  %v949_v54 = vmul.f32 %v6452_v27, %v7246_v0 }
 0x3a5   :  { %6461 = vrcp.f32 %v875_v61  ;;  %967 = vrot.lane.b32.xlu0 %v946_v11, %s6879_s20 }
 0x3a6   :  { %v6454_v46 = vpop.eup %6453  ;;  %6463 = vrcp.f32 %v872_v12 }
 0x3a7   :  { %v950_v43 = vmul.f32 %v6454_v46, %v7254_v28  ;;  %v6456_v37 = vpop.eup %6455 }
 0x3a8   :  { %v887_v53 = vpop.xlane.xlu1 %886  ;;  %v878_v57 = vpop.xlane.xlu0 %877  ;;  %v947_v33 = vmul.f32 %v6456_v37, %v7256_v29 }
 0x3a9   :  { %6465 = vrcp.f32 %v887_v53  ;;  %1085 = vrot.lane.b32.xlu1 %v950_v43, %s6879_s20  ;;  %1083 = vrot.lane.b32.xlu0 %v949_v54, %s6879_s20 }
 0x3aa   :  { %6467 = vrcp.f32 %v878_v57 }
 0x3ab   :  { %v6458_v34 = vpop.eup %6457 }
 0x3ac   :  { %v6460_v59 = vpop.eup %6459  ;;  %v881_v36 = vpop.xlane.xlu1 %880  ;;  %v951_v9 = vmul.f32 %v6458_v34, %v7266_v16 }
 0x3ad   :  { %v890_v44 = vpop.xlane.xlu0 %889  ;;  %6469 = vrcp.f32 %v881_v36  ;;  %969 = vrot.lane.b32.xlu0 %v947_v33, %s6879_s20  ;;  %v948_v28 = vmul.f32 %v6460_v59, %v7264_v13 }
 0x3ae   :  { %6471 = vrcp.f32 %v890_v44  ;;  %1087 = vrot.lane.b32.xlu1 %v951_v9, %s6879_s20 }
 0x3af   :  { %v6462_v0 = vpop.eup %6461 }
 0x3b0   :  { %v6464_v5 = vpop.eup %6463  ;;  %v893_v10 = vpop.xlane.xlu1 %892  ;;  %v953_v1 = vmul.f32 %v6462_v0, %v7274_v50 }
 0x3b1   :  { %v884_v38 = vpop.xlane.xlu0 %883  ;;  %6473 = vrcp.f32 %v893_v10  ;;  %971 = vrot.lane.b32.xlu0 %v948_v28, %s6879_s20  ;;  %v952_v29 = vmul.f32 %v6464_v5, %v7276_v47 }
 0x3b2   :  { %6475 = vrcp.f32 %v884_v38 }
 0x3b3   :  { %v6466_v16 = vpop.eup %6465  ;;  %1089 = vrot.lane.b32.xlu1 %v952_v29, %s6879_s20 }
 0x3b4   :  { %v6468_v11 = vpop.eup %6467  ;;  %v957_v12 = vmul.f32 %v6466_v16, %v7283_v45 }
 0x3b5   :  { %v896_v27 = vpop.xlane.xlu0 %895  ;;  %v954_v61 = vmul.f32 %v6468_v11, %v7285_v7  ;;  %1232 = vrot.lane.b32.xlu0 %v953_v1, %s6879_s20 }
 0x3b6   :  { %6477 = vrcp.f32 %v896_v27 }
 0x3b7   :  { %v6470_v13 = vpop.eup %6469  ;;  %1234 = vrot.lane.b32.xlu1 %v954_v61, %s6879_s20  ;;  %v6212_v61 = vunpack.i.h.bf16 %v7017_v22 }
 0x3b8   :  { %v6472_v46 = vpop.eup %6471  ;;  %v955_v50 = vmul.f32 %v6470_v13, %v7291_v25  ;;  %v6211_v13 = vunpack.i.l.bf16 %v7017_v22  ;;  %v6217_v22 = vunpack.i.h.bf16 %v6975_v42 }
 0x3b9   :  { %v958_v47 = vmul.f32 %v6472_v46, %v7293_v17  ;;  %1373 = vrot.lane.b32.xlu0 %v957_v12, %s6879_s20  ;;  %v7427_v33 = vpop.permute.xlu0 %6229 }
 0x3bb   :  { %v6474_v43 = vpop.eup %6473  ;;  %1375 = vrot.lane.b32.xlu1 %v958_v47, %s6879_s20 }
 0x3bc   :  { %v6476_v54 = vpop.eup %6475  ;;  %v959_v37 = vmul.f32 %v6474_v43, %v7299_v18 }
 0x3bd   :  { %v956_v7 = vmul.f32 %v6476_v54, %v7301_v30  ;;  %1236 = vrot.lane.b32.xlu0 %v955_v50, %s6879_s20  ;;  %v6197_v50 = vunpack.i.h.bf16 %v7011_v19  ;;  %v6196_v54 = vunpack.i.l.bf16 %v7011_v19 }
 0x3bf   :  { %1238 = vrot.lane.b32.xlu1 %v956_v7, %s6879_s20  ;;  %v5897_v7 = vpack.c.bf16 %v6212_v61, %v6211_v13 }
 0x3c0   :  { %v6478_v45 = vpop.eup %6477 }
 0x3c1   :  { %v960_v53 = vmul.f32 %v6478_v45, %v7307_v40  ;;  %1377 = vrot.lane.b32.xlu0 %v959_v37, %s6879_s20  ;;  %v6216_v37 = vunpack.i.l.bf16 %v6975_v42  ;;  %v6226_v42 = vunpack.i.l.bf16 %v7313_v62 }
 0x3c3   :  { %1379 = vrot.lane.b32.xlu1 %v960_v53, %s6879_s20 }
 0x3e4   :  { %v803_v17 = vpop.xlane.xlu1 %802 }
 0x3e5   :  { %6479 = vrcp.f32 %v803_v17 }
 0x3e8   :  { %v815_v57 = vpop.xlane.xlu1 %814 }
 0x3e9   :  { %v806_v59 = vpop.xlane.xlu0 %805 }
 0x3ea   :  { %6481 = vrcp.f32 %v806_v59 }
 0x3eb   :  { %6483 = vrcp.f32 %v815_v57 }
 0x3ec   :  { %v809_v34 = vpop.xlane.xlu1 %808 }
 0x3ed   :  { %v818_v9 = vpop.xlane.xlu0 %817 }
 0x3ee   :  { %6485 = vrcp.f32 %v818_v9 }
 0x3ef   :  { %v6480_v10 = vpop.eup %6479  ;;  %6487 = vrcp.f32 %v809_v34 }
 0x3f0   :  { %v812_v25 = vpop.xlane.xlu1 %811  ;;  %v929_v29 = vmul.f32 %v6480_v10, %v7324_v3 }
 0x3f1   :  { %v830_v0 = vpop.xlane.xlu0 %829 }
 0x3f4   :  { %v821_v30 = vpop.xlane.xlu1 %820  ;;  %v6482_v16 = vpop.eup %6481 }
 0x3f5   :  { %v842_v28 = vpop.xlane.xlu0 %841  ;;  %6489 = vrcp.f32 %v821_v30  ;;  %v6484_v12 = vpop.eup %6483  ;;  %v930_v46 = vmul.f32 %v6482_v16, %v7330_v26  ;;  %v6227_v30 = vunpack.i.h.bf16 %v7313_v62  ;;  %v6231_v16 = vunpack.i.l.bf16 %v7427_v33 }
 0x3f6   :  { %6491 = vrcp.f32 %v812_v25  ;;  %v933_v26 = vmul.f32 %v6484_v12, %v7332_v60  ;;  %v6202_v60 = vunpack.i.h.bf16 %v6970_v31 }
 0x3f8   :  { %v824_v36 = vpop.xlane.xlu1 %823  ;;  %v6486_v47 = vpop.eup %6485 }
 0x3f9   :  { %v7429_v5 = vpop.xlane.xlu0 %835  ;;  %6493 = vrcp.f32 %v824_v36  ;;  %v934_v45 = vmul.f32 %v6486_v47, %v7338_v41  ;;  %v6488_v53 = vpop.eup %6487  ;;  %v6201_v41 = vunpack.i.l.bf16 %v6970_v31  ;;  %v5913_v36 = vpack.c.bf16 %v6217_v22, %v6216_v37 }
 0x3fa   :  { %v931_v59 = vmul.f32 %v6488_v53, %v7342_v23  ;;  %v5905_v23 = vpack.c.bf16 %v6227_v30, %v6226_v42 }
 0x3fc   :  { %v827_v44 = vpop.xlane.xlu1 %826 }
 0x3fd   :  { %v7434_v1 = vpop.xlane.xlu0 %847  ;;  %6495 = vrcp.f32 %v827_v44 }
 0x3fe   :  { %6497 = vrcp.f32 %v830_v0 }
 0x3ff   :  { %v6490_v19 = vpop.eup %6489 }
 0x400   :  { %v839_v18 = vpop.xlane.xlu1 %838  ;;  %v6492_v9 = vpop.eup %6491  ;;  %v935_v44 = vmul.f32 %v6490_v19, %v7356_v14  ;;  %v6232_v14 = vunpack.i.h.bf16 %v7427_v33 }
 0x401   :  { %6499 = vrcp.f32 %v839_v18 }
 0x402   :  { %6501 = vrcp.f32 %v842_v28  ;;  %v932_v28 = vmul.f32 %v6492_v9, %v7347_v39  ;;  %v1583_v9 = vld [vmem:[#allocation4 + $0x80] sm:$0xff] }
 0x403   :  { %v6494_v10 = vpop.eup %6493 }
 0x404   :  { %v833_v40 = vpop.xlane.xlu1 %832 }
 0x405   :  { %6503 = vrcp.f32 %v833_v40 }
 0x406   :  { %6505 = vrcp.f32 %v7429_v5 }
 0x408   :  { %v7431_v38 = vpop.xlane.xlu1 %844 }
 0x409   :  { %6507 = vrcp.f32 %v7431_v38 }
 0x40a   :  { %6509 = vrcp.f32 %v7434_v1 }
 0x413   :  { %v966_v11 = vpop.permute.xlu1 %965 }
 0x414   :  { %v977_v27 = vsel %vm608_vm1, %v929_v29, %v966_v11  ;;  %v6496_v29 = vpop.eup %6495 }
 0x415   :  { %5476 = vmatprep.mubr.msk.f32.mxu0 %vm981_vm2, %v977_v27  ;;  %v936_v27 = vmul.f32 %v6494_v10, %v7365_v15  ;;  %v6498_v61 = vpop.eup %6497  ;;  %v937_v33 = vmul.f32 %v6496_v29, %v7373_v24  ;;  %v1587_v10 = vld [vmem:[#allocation4 + $0xc0] sm:$0xff] }
 0x416   :  { %v6500_v5 = vpop.eup %6499  ;;  %v938_v38 = vmul.f32 %v6498_v61, %v7351_v51  ;;  %v1589_v29 = vld [vmem:[#allocation4 + $0xe0] sm:$0xff]  ;;  %v1592_v61 = vld [vmem:[#allocation4 + $0x110] sm:$0xff] }
 0x417   :  { %v968_v3 = vpop.permute.xlu0 %967  ;;  %v6502_v47 = vpop.eup %6501  ;;  %v941_v24 = vmul.f32 %v6500_v5, %v7381_v21 }
 0x418   :  { %v978_v43 = vsel %vm608_vm1, %v930_v46, %v968_v3  ;;  %v5921_v46 = vpack.c.bf16 %v6232_v14, %v6231_v16  ;;  %v1590_v14 = vld [vmem:[#allocation4 + $0xf0] sm:$0xff] }
 0x419   :  { %5477 = vmatmul.mubr.msk.f32.vlgmr.msra.gmra.mrb[0].mxu0 %vm981_vm2, %v978_v43  ;;  %v5945_v16 = vpack.c.bf16 %v1590_v14, %v1589_v29 }
 0x41a   :  { %5896 = vmatpush3.bf16.msra.mxu0 %v6972_v35  ;;  %v5901_v35 = vpack.c.bf16 %v6197_v50, %v6196_v54  ;;  %v6504_v50 = vpop.eup %6503 }
 0x41b   :  { %5898 = vmatprep.subr.bf16.mxu0 %v5897_v7  ;;  %v1084_v17 = vpop.permute.xlu0 %1083  ;;  %v1086_v57 = vpop.permute.xlu1 %1085 }
 0x41c   :  { %v1095_v34 = vsel %vm608_vm1, %v933_v26, %v1084_v17  ;;  %v1096_v25 = vsel %vm608_vm1, %v934_v45, %v1086_v57  ;;  %v6506_v22 = vpop.eup %6505  ;;  %v939_v26 = vmul.f32 %v6504_v50, %v7387_v48 }
 0x41d   :  { %5498 = vmatprep.mubr.msk.f32.mxu1 %vm981_vm2, %v1095_v34  ;;  %v6508_v45 = vpop.eup %6507  ;;  %v940_v17 = vmul.f32 %v6506_v22, %v7369_v20 }
 0x41e   :  { %5900 = vmatpush3.bf16.msra.mxu0 %v5897_v7  ;;  %5499 = vmatmul.mubr.msk.f32.vlgmr.msra.gmra.mrb[12].mxu1 %vm981_vm2, %v1096_v25  ;;  %v942_v7 = vmul.f32 %v6502_v47, %v7360_v58  ;;  %v6510_v57 = vpop.eup %6509  ;;  %v943_v34 = vmul.f32 %v6508_v45, %v7391_v32 }
 0x41f   :  { %5902 = vmatprep.subr.bf16.mxu0 %v5901_v35  ;;  %5912 = vmatpush3.bf16.msra.mxu1 %v6977_v52  ;;  %v970_v62 = vpop.permute.xlu0 %969  ;;  %v5917_v52 = vpack.c.bf16 %v6202_v60, %v6201_v41  ;;  %v944_v30 = vmul.f32 %v6510_v57, %v7377_v49  ;;  %v1580_v60 = vld [vmem:[#allocation4 + $0x50] sm:$0xff]  ;;  %v1581_v41 = vld [vmem:[#allocation4 + $0x60] sm:$0xff] }
 0x420   :  { %v979_v0 = vsel %vm608_vm1, %v931_v59, %v970_v62  ;;  %5914 = vmatprep.subr.bf16.mxu1 %v5913_v36  ;;  %v1088_v18 = vpop.permute.xlu1 %1087  ;;  %v1584_v62 = vld [vmem:[#allocation4 + $0x90] sm:$0xff]  ;;  %v1585_v49 = vld [vmem:[#allocation4 + $0xa0] sm:$0xff] }
 0x421   :  { %v1097_v31 = vsel %vm608_vm1, %v935_v44, %v1088_v18  ;;  %5479 = vmatprep.mubr.msk.f32.mxu0 %vm981_vm2, %v979_v0  ;;  %v5933_v44 = vpack.c.bf16 %v1584_v62, %v1583_v9  ;;  %v1586_v0 = vld [vmem:[#allocation4 + $0xb0] sm:$0xff] }
 0x422   :  { %5501 = vmatprep.mubr.msk.f32.mxu1 %vm981_vm2, %v1097_v31  ;;  %5904 = vmatpush3.bf16.msra.mxu0 %v5901_v35  ;;  %v1579_v35 = vld [vmem:[#allocation4 + $0x40] sm:$0xff]  ;;  %v5937_v18 = vpack.c.bf16 %v1586_v0, %v1585_v49  ;;  %v1588_v31 = vld [vmem:[#allocation4 + $0xd0] sm:$0xff] }
 0x423   :  { %5906 = vmatprep.subr.bf16.mxu0 %v5905_v23  ;;  %5916 = vmatpush3.bf16.msra.mxu1 %v5913_v36  ;;  %v972_v40 = vpop.permute.xlu0 %971  ;;  %v5925_v59 = vpack.c.bf16 %v1580_v60, %v1579_v35  ;;  %v1582_v36 = vld [vmem:[#allocation4 + $0x70] sm:$0xff] }
 0x424   :  { %v980_v11 = vsel %vm608_vm1, %v932_v28, %v972_v40  ;;  %5918 = vmatprep.subr.bf16.mxu1 %v5917_v52  ;;  %v5929_v32 = vpack.c.bf16 %v1582_v36, %v1581_v41  ;;  %v5941_v28 = vpack.c.bf16 %v1588_v31, %v1587_v10 }
 0x425   :  { %v1090_v39 = vpop.permute.xlu1 %1089  ;;  %5480 = vmatmul.mubr.msk.f32.gmra.mrb[2].mxu0 %vm981_vm2, %v980_v11 }
 0x426   :  { %v1098_v13 = vsel %vm608_vm1, %v936_v27, %v1090_v39  ;;  %5908 = vmatpush3.bf16.msra.mxu0 %v5905_v23  ;;  %v1591_v27 = vld [vmem:[#allocation4 + $0x100] sm:$0xff] }
 0x427   :  { %5502 = vmatmul.mubr.msk.f32.gmra.mrb[14].mxu1 %vm981_vm2, %v1098_v13  ;;  %v1233_v12 = vpop.permute.xlu0 %1232  ;;  %5926 = vmatprep.subr.bf16.mxu0 %v5925_v59  ;;  %v5949_v39 = vpack.c.bf16 %v1592_v61, %v1591_v27  ;;  %v1593_v13 = vld [vmem:[#allocation4 + $0x120] sm:$0xff] }
 0x428   :  { %5920 = vmatpush3.bf16.msra.mxu1 %v5917_v52  ;;  %v1244_v15 = vsel %vm608_vm1, %v937_v33, %v1233_v12  ;;  %v1594_v33 = vld [vmem:[#allocation4 + $0x130] sm:$0xff] }
 0x429   :  { %5922 = vmatprep.subr.bf16.mxu1 %v5921_v46  ;;  %v1235_v3 = vpop.permute.xlu1 %1234  ;;  %5520 = vmatprep.mubr.msk.f32.mxu0 %vm981_vm2, %v1244_v15  ;;  %v5953_v12 = vpack.c.bf16 %v1594_v33, %v1593_v13  ;;  %v1596_v13 = vld [vmem:[#allocation4 + $0x150] sm:$0xff] }
 0x42a   :  { %v1245_v43 = vsel %vm608_vm1, %v938_v38, %v1235_v3 }
 0x42b   :  { %5521 = vmatmul.mubr.msk.f32.vlgmr.msra.gmra.mrb[4].mxu0 %vm981_vm2, %v1245_v43  ;;  %v1374_v1 = vpop.permute.xlu0 %1373 }
 0x42c   :  { %5924 = vmatpush3.bf16.msra.mxu1 %v5921_v46  ;;  %v1385_v54 = vsel %vm608_vm1, %v941_v24, %v1374_v1  ;;  %5928 = vmatpush3.bf16.msra.mxu0 %v5925_v59 }
 0x42d   :  { %v1376_v51 = vpop.permute.xlu1 %1375  ;;  %5542 = vmatprep.mubr.msk.f32.mxu1 %vm981_vm2, %v1385_v54  ;;  %5930 = vmatprep.subr.bf16.mxu0 %v5929_v32 }
 0x42e   :  { %v1386_v37 = vsel %vm608_vm1, %v942_v7, %v1376_v51 }
 0x42f   :  { %5543 = vmatmul.mubr.msk.f32.vlgmr.msra.gmra.mrb[16].mxu1 %vm981_vm2, %v1386_v37  ;;  %v1237_v21 = vpop.permute.xlu0 %1236 }
 0x430   :  { %v1246_v53 = vsel %vm608_vm1, %v939_v26, %v1237_v21  ;;  %5932 = vmatpush3.bf16.msra.mxu0 %v5929_v32 }
 0x431   :  { %v1239_v19 = vpop.permute.xlu1 %1238  ;;  %5523 = vmatprep.mubr.msk.f32.mxu0 %vm981_vm2, %v1246_v53  ;;  %5934 = vmatprep.subr.bf16.mxu0 %v5933_v44 }
 0x432   :  { %v1247_v58 = vsel %vm608_vm1, %v940_v17, %v1239_v19  ;;  %v60_v17 = vld [vmem:[#allocation4 + $0x30] ss:$0 sm:$0xff] }
 0x433   :  { %5524 = vmatmul.mubr.msk.f32.gmra.mrb[6].mxu0 %vm981_vm2, %v1247_v58  ;;  %v1378_v25 = vpop.permute.xlu0 %1377 }
 0x434   :  { %v1387_v48 = vsel %vm608_vm1, %v943_v34, %v1378_v25  ;;  %5936 = vmatpush3.bf16.msra.mxu0 %v5933_v44 }
 0x435   :  { %v1380_v42 = vpop.permute.xlu1 %1379  ;;  %5545 = vmatprep.mubr.msk.f32.mxu1 %vm981_vm2, %v1387_v48  ;;  %5938 = vmatprep.subr.bf16.mxu0 %v5937_v18 }
 0x436   :  { %v1388_v20 = vsel %vm608_vm1, %v944_v30, %v1380_v42 }
 0x437   :  { %5546 = vmatmul.mubr.msk.f32.gmra.mrb[18].mxu1 %vm981_vm2, %v1388_v20 }
 0x438   :  { %5940 = vmatpush3.bf16.msra.mxu0 %v5937_v18 }
 0x439   :  { %5942 = vmatprep.subr.bf16.mxu0 %v5941_v28 }
 0x43c   :  { %5944 = vmatpush3.bf16.msra.mxu0 %v5941_v28 }
 0x43d   :  { %5946 = vmatprep.subr.bf16.mxu0 %v5945_v16 }
 0x440   :  { %5948 = vmatpush3.bf16.msra.mxu0 %v5945_v16 }
 0x441   :  { %5950 = vmatprep.subr.bf16.mxu0 %v5949_v39 }
 0x444   :  { %5952 = vmatpush3.bf16.msra.mxu0 %v5949_v39 }
 0x445   :  { %5954 = vmatprep.subr.bf16.mxu0 %v5953_v12 }
 0x448   :  { %5956 = vmatpush3.bf16.msra.mxu0 %v5953_v12 }
 0x4ec   :  { %v5478_v23 = vpop.f32.mrb[0].mxu0 }
 0x4ed   :  { %v1060_v52 = vpop.f32.mrb[1].mxu0 }
 0x4f1   :  { %v5500_v40 = vpop.f32.mrb[12].mxu1 }
 0x4f2   :  { %1516 = vrot.lane.b32.xlu1 %v5500_v40, %s6879_s20  ;;  %v1209_v11 = vpop.f32.mrb[13].mxu1 }
 0x4f3   :  { %1514 = vrot.lane.b32.xlu0 %v1209_v11, %s6879_s20 }
 0x4f8   :  { %v5481_v5 = vpop.f32.mrb[2].mxu0 }
 0x4f9   :  { %v1070_v46 = vpop.f32.mrb[3].mxu0 }
 0x4fa   :  { %v5503_v15 = vpop.f32.mrb[14].mxu1 }
 0x4fb   :  { %1520 = vrot.lane.b32.xlu1 %v5503_v15, %s6879_s20  ;;  %v1219_v38 = vpop.f32.mrb[15].mxu1 }
 0x4fc   :  { %1518 = vrot.lane.b32.xlu0 %v1219_v38, %s6879_s20 }
 0x4fe   :  { %v5522_v47 = vpop.f32.mrb[4].mxu0 }
 0x4ff   :  { %1532 = vrot.lane.b32.xlu1 %v5522_v47, %s6880_s0  ;;  %v1350_v3 = vpop.f32.mrb[5].mxu0 }
 0x500   :  { %1530 = vrot.lane.b32.xlu0 %v1350_v3, %s6880_s0 }
 0x502   :  { %v5544_v43 = vpop.f32.mrb[16].mxu1 }
 0x503   :  { %1548 = vrot.lane.b32.xlu1 %v5544_v43, %s6878_s19  ;;  %v1491_v24 = vpop.f32.mrb[17].mxu1 }
 0x504   :  { %1546 = vrot.lane.b32.xlu0 %v1491_v24, %s6878_s19 }
 0x506   :  { %v5525_v50 = vpop.f32.mrb[6].mxu0 }
 0x507   :  { %1536 = vrot.lane.b32.xlu1 %v5525_v50, %s6880_s0  ;;  %v1360_v1 = vpop.f32.mrb[7].mxu0 }
 0x508   :  { %1534 = vrot.lane.b32.xlu0 %v1360_v1, %s6880_s0 }
 0x50a   :  { %v5547_v54 = vpop.f32.mrb[18].mxu1 }
 0x50b   :  { %1552 = vrot.lane.b32.xlu1 %v5547_v54, %s6878_s19  ;;  %v1501_v7 = vpop.f32.mrb[19].mxu1 }
 0x50c   :  { %1550 = vrot.lane.b32.xlu0 %v1501_v7, %s6878_s19 }
 0x564   :  { %v1517_v22 = vpop.permute.xlu1 %1516 }
 0x565   :  { %v1515_v51 = vpop.permute.xlu0 %1514  ;;  %v1559_v53 = vsel %vm608_vm1, %v5478_v23, %v1517_v22 }
 0x566   :  { %v1558_v57 = vsel %vm608_vm1, %v1060_v52, %v1515_v51  ;;  %v1595_v52 = vld [vmem:[#allocation4 + $0x140] sm:$0xff] }
 0x567   :  { %5594 = vmatprep.mubr.f32.mxu1 %v1595_v52  ;;  %v8739_v52 = vld [vmem:[#allocation9_spill] sm:$0xff] }
 0x56d   :  { %v1521_v37 = vpop.permute.xlu1 %1520 }
 0x56e   :  { %v1519_v26 = vpop.permute.xlu0 %1518  ;;  %v1561_v36 = vsel %vm608_vm1, %v5481_v5, %v1521_v37 }
 0x56f   :  { %v1560_v32 = vsel %vm608_vm1, %v1070_v46, %v1519_v26 }
 0x571   :  { %v1533_v45 = vpop.permute.xlu1 %1532 }
 0x572   :  { %v1531_v21 = vpop.permute.xlu0 %1530  ;;  %v1563_v19 = vsel %vm981_vm2, %v1559_v53, %v1533_v45 }
 0x573   :  { %v1562_v34 = vsel %vm981_vm2, %v1558_v57, %v1531_v21 }
 0x575   :  { %v1549_v58 = vpop.permute.xlu1 %1548 }
 0x576   :  { %v1568_v25 = vsel %vm1566_vm3, %v1563_v19, %v1549_v58  ;;  %v1547_v48 = vpop.permute.xlu0 %1546 }
 0x577   :  { %v1572_v30 = vadd.f32 %v1568_v25, %v60_v17  ;;  %v1567_v42 = vsel %vm1566_vm3, %v1562_v34, %v1547_v48 }
 0x578   :  { %v1571_v20 = vadd.f32 %v1567_v42, %v60_v17 }
 0x579   :  { %v1537_v35 = vpop.permute.xlu1 %1536  ;;  %v1576_v59 = vmax.f32 %v1572_v30, 0.0 }
 0x57a   :  { %v1575_v60 = vmax.f32 %v1571_v20, 0.0  ;;  %v1535_v41 = vpop.permute.xlu0 %1534  ;;  %v1565_v9 = vsel %vm981_vm2, %v1561_v36, %v1537_v35 }
 0x57b   :  { %v1564_v44 = vsel %vm981_vm2, %v1560_v32, %v1535_v41 }
 0x57c   :  { %5580 = vmatprep.mubr.f32.mxu0 %v1575_v60 }
 0x57d   :  { %5581 = vmatmul.mubr.f32.vlgmr.msra.gmra.mrb[8].mxu0 %v1576_v59  ;;  %v1553_v62 = vpop.permute.xlu1 %1552 }
 0x57e   :  { %v1570_v49 = vsel %vm1566_vm3, %v1565_v9, %v1553_v62  ;;  %v1551_v0 = vpop.permute.xlu0 %1550 }
 0x57f   :  { %v1574_v18 = vadd.f32 %v1570_v49, %v60_v17  ;;  %v1569_v10 = vsel %vm1566_vm3, %v1564_v44, %v1551_v0 }
 0x580   :  { %v1573_v31 = vadd.f32 %v1569_v10, %v60_v17 }
 0x581   :  { %v1578_v28 = vmax.f32 %v1574_v18, 0.0 }
 0x582   :  { %v1577_v23 = vmax.f32 %v1573_v31, 0.0  ;;  %v8738_v31 = vld [vmem:[#allocation8_spill] sm:$0xff] }
 0x584   :  { %5583 = vmatprep.mubr.f32.mxu0 %v1577_v23 }
 0x585   :  { %5584 = vmatmul.mubr.f32.gmra.mrb[10].mxu0 %v1578_v28 }
 0x650   :  { %v5582_v29 = vpop.f32.mrb[8].mxu0 }
 0x651   :  { %v1664_v14 = vpop.f32.mrb[9].mxu0 }
 0x652   :  { %v6238_v16 = vpack.i.bf16 %v5582_v29, %v1664_v14  ;;  %v5957_v40 = vpack.c.bf16 %v5582_v29, %v1664_v14 }
 0x654   :  { %6239 = vrot.lane.b32.xlu0 %v6238_v16, %s6882_s21  ;;  %6234 = vrot.lane.b32.xlu1 %v6238_v16, %s6880_s0 }
 0x655   :  { %5958 = vmatprep.subr.bf16.mxu1 %v5957_v40 }
 0x656   :  { %5960 = vmatpush3.bf16.xpose.msra.mxu1 %v5957_v40 }
 0x658   :  { %6244 = vrot.lane.b32.xlu0 %v6238_v16, %s6878_s19  ;;  %v5585_v11 = vpop.f32.mrb[10].mxu0 }
 0x659   :  { %v1674_v27 = vpop.f32.mrb[11].mxu0 }
 0x65a   :  { %v6258_v61 = vpack.i.bf16 %v5585_v11, %v1674_v27  ;;  %v5961_v39 = vpack.c.bf16 %v5585_v11, %v1674_v27 }
 0x65c   :  { %6249 = vrot.lane.b32.xlu0 %v6238_v16, %s6883_s22  ;;  %6259 = vrot.lane.b32.xlu1 %v6258_v61, %s6882_s21 }
 0x65d   :  { %5962 = vmatprep.subr.bf16.mxu1 %v5961_v39 }
 0x65e   :  { %5964 = vmatpush3.bf16.xpose.msra.mxu1 %v5961_v39 }
 0x65f   :  { %5966 = vmatprep.subr.bf16.mxu1 %v5957_v40 }
 0x660   :  { %6269 = vrot.lane.b32.xlu1 %v6258_v61, %s6883_s22  ;;  %6254 = vrot.lane.b32.xlu0 %v6258_v61, %s6880_s0 }
 0x664   :  { %6264 = vrot.lane.b32.xlu0 %v6258_v61, %s6878_s19 }
 0x665   :  { %5595 = vmatmul.mubr.f32.vlgmr.msra.gmra.mrb[20].mxu1 %v1596_v13 }
 0x666   :  { %5968 = vmatpush3.bf16.msra.mxu1 %v5957_v40 }
 0x667   :  { %5970 = vmatprep.subr.bf16.mxu1 %v5961_v39 }
 0x66a   :  { %5972 = vmatpush3.bf16.msra.mxu1 %v5961_v39 }
 0x6c6   :  { %v6240_v33 = vpop.permute.xlu0 %6239  ;;  %v6235_v5 = vpop.permute.xlu1 %6234 }
 0x6c7   :  { %v6242_v12 = vunpack.i.h.bf16 %v6240_v33  ;;  %v6241_v46 = vunpack.i.l.bf16 %v6240_v33  ;;  %v6237_v15 = vunpack.i.h.bf16 %v6235_v5  ;;  %v6236_v38 = vunpack.i.l.bf16 %v6235_v5  ;;  %6284 = vrot.lane.b32.xlu1 %v6235_v5, %s6883_s22  ;;  %6274 = vrot.lane.b32.xlu0 %v6235_v5, %s6882_s21 }
 0x6c9   :  { %v5973_v47 = vpack.c.bf16 %v6237_v15, %v6236_v38  ;;  %v5981_v3 = vpack.c.bf16 %v6242_v12, %v6241_v46 }
 0x6ca   :  { %v6245_v43 = vpop.permute.xlu0 %6244 }
 0x6cb   :  { %5974 = vmatprep.subr.bf16.mxu1 %v5973_v47  ;;  %5982 = vmatprep.subr.bf16.mxu0 %v5981_v3  ;;  %v6247_v51 = vunpack.i.h.bf16 %v6245_v43  ;;  %v6246_v37 = vunpack.i.l.bf16 %v6245_v43 }
 0x6cc   :  { %5976 = vmatpush3.bf16.msra.mxu1 %v5973_v47  ;;  %5984 = vmatpush3.bf16.msra.mxu0 %v5981_v3 }
 0x6cd   :  { %6279 = vrot.lane.b32.xlu0 %v6235_v5, %s6878_s19  ;;  %v7541_v53 = vpack.c.bf16 %v6247_v51, %v6246_v37  ;;  %v7580_v51 = vld [vmem:[#allocation2 + $0x20] sm:$0xff] }
 0x6ce   :  { %v6250_v24 = vpop.permute.xlu0 %6249  ;;  %v6260_v50 = vpop.permute.xlu1 %6259 }
 0x6cf   :  { %v6262_v1 = vunpack.i.h.bf16 %v6260_v50  ;;  %v6261_v54 = vunpack.i.l.bf16 %v6260_v50  ;;  %v6252_v32 = vunpack.i.h.bf16 %v6250_v24  ;;  %v6251_v9 = vunpack.i.l.bf16 %v6250_v24 }
 0x6d1   :  { %v5985_v7 = vpack.c.bf16 %v6262_v1, %v6261_v54  ;;  %v7556_v49 = vpack.c.bf16 %v6252_v32, %v6251_v9  ;;  %v7575_v54 = vld [vmem:[#allocation2 + $0x28] sm:$0xff] }
 0x6d2   :  { %v7535_v22 = vpop.permute.xlu0 %6254  ;;  %v7550_v48 = vpop.permute.xlu1 %6269 }
 0x6d3   :  { %v6257_v26 = vunpack.i.h.bf16 %v7535_v22  ;;  %v6256_v45 = vunpack.i.l.bf16 %v7535_v22  ;;  %5986 = vmatprep.subr.bf16.mxu0 %v5985_v7  ;;  %6289 = vrot.lane.b32.xlu1 %v7535_v22, %s6882_s21 }
 0x6d4   :  { %5988 = vmatpush3.bf16.msra.mxu0 %v5985_v7 }
 0x6d5   :  { %v5977_v21 = vpack.c.bf16 %v6257_v26, %v6256_v45 }
 0x6d6   :  { %v7546_v19 = vpop.permute.xlu0 %6264 }
 0x6d7   :  { %5978 = vmatprep.subr.bf16.mxu1 %v5977_v21 }
 0x6d8   :  { %5980 = vmatpush3.bf16.msra.mxu1 %v5977_v21 }
 0x6d9   :  { %5998 = vmatprep.subr.bf16.mxu1 %v7541_v53 }
 0x738   :  { %v7544_v17 = vpop.f32.mrb[20].mxu1 }
 0x739   :  { %v1749_v57 = vpop.f32.mrb[21].mxu1  ;;  %v6275_v34 = vpop.permute.xlu0 %6274  ;;  %v1911_v28 = vcombine.high %v7544_v17, %v7544_v17 }
 0x73a   :  { %v1837_v58 = vrot.slane %v1749_v57, %v6982_v56  ;;  %v1856_v25 = vrot.slane %v1749_v57, %v6980_v55  ;;  %v6277_v30 = vunpack.i.h.bf16 %v6275_v34  ;;  %v6276_v42 = vunpack.i.l.bf16 %v6275_v34  ;;  %v7552_v35 = vpop.permute.xlu1 %6284 }
 0x73b   :  { %v1875_v36 = vrot.slane %v1749_v57, %v6988_v63  ;;  %v1894_v44 = vrot.slane %v1749_v57, %v6991_v2  ;;  %v1761_v0 = vrot.slane %v1749_v57, %v6994_v4  ;;  %v1780_v18 = vrot.slane %v1749_v57, %v6997_v6 }
 0x73c   :  { %1843 = vbcast.lane.b32.xlu1 %v1837_v58, 264  ;;  %1839 = vbcast.lane.b32.xlu0 %v1837_v58, 256  ;;  %v5989_v20 = vpack.c.bf16 %v6277_v30, %v6276_v42  ;;  %v1799_v10 = vrot.slane %v1749_v57, %v7000_v8  ;;  %v1818_v23 = vrot.slane %v1749_v57, %v8738_v31 }
 0x73d   :  { %v1925_v29 = vrot.slane %v1911_v28, %v8739_v52 }
 0x73e   :  { %5990 = vmatprep.subr.bf16.mxu0 %v5989_v20 }
 0x73f   :  { %5992 = vmatpush3.bf16.msra.mxu0 %v5989_v20  ;;  %v1927_v14 = vcombine.high %v1925_v29, %v1925_v29  ;;  %v1941_v16 = vrot.slane %v1925_v29, %v8739_v52  ;;  %v7567_v40 = vpop.permute.xlu0 %6279 }
 0x740   :  { %1862 = vbcast.lane.b32.xlu1 %v1856_v25, 264  ;;  %1858 = vbcast.lane.b32.xlu0 %v1856_v25, 256 }
 0x741   :  { %v7570_v11 = vrot.slane %v1927_v14, %v8739_v52  ;;  %v1979_v27 = vrot.slane %v1941_v16, %v6994_v4 }
 0x743   :  { %v1983_v46 = vrot.slane %v7570_v11, %v6994_v4 }
 0x744   :  { %1851 = vbcast.lane.b32.xlu1 %v1837_v58, 280  ;;  %1847 = vbcast.lane.b32.xlu0 %v1837_v58, 272 }
 0x745   :  { %v6290_v60 = vpop.permute.xlu1 %6289 }
 0x746   :  { %v6292_v41 = vunpack.i.h.bf16 %v6290_v60  ;;  %v6291_v59 = vunpack.i.l.bf16 %v6290_v60 }
 0x748   :  { %1870 = vbcast.lane.b32.xlu1 %v1856_v25, 280  ;;  %1866 = vbcast.lane.b32.xlu0 %v1856_v25, 272  ;;  %v5993_v62 = vpack.c.bf16 %v6292_v41, %v6291_v59  ;;  %v1957_v25 = vcombine.high %v1941_v16, %v1941_v16  ;;  %v7602_v16 = vld [vmem:[#allocation2 + $0x38] sm:$0xff] }
 0x74a   :  { %5994 = vmatprep.subr.bf16.mxu0 %v5993_v62  ;;  %v1987_v28 = vrot.slane %v1957_v25, %v6994_v4 }
 0x74b   :  { %5996 = vmatpush3.bf16.msra.mxu0 %v5993_v62 }
 0x74c   :  { %1881 = vbcast.lane.b32.xlu1 %v1875_v36, 264  ;;  %1877 = vbcast.lane.b32.xlu0 %v1875_v36, 256 }
 0x74d   :  { %6014 = vmatprep.subr.bf16.mxu0 %v7556_v49 }
 0x750   :  { %1900 = vbcast.lane.b32.xlu1 %v1894_v44, 264  ;;  %1896 = vbcast.lane.b32.xlu0 %v1894_v44, 256 }
 0x754   :  { %1889 = vbcast.lane.b32.xlu1 %v1875_v36, 280  ;;  %1885 = vbcast.lane.b32.xlu0 %v1875_v36, 272 }
 0x758   :  { %1908 = vbcast.lane.b32.xlu1 %v1894_v44, 280  ;;  %1904 = vbcast.lane.b32.xlu0 %v1894_v44, 272 }
 0x75c   :  { %1767 = vbcast.lane.b32.xlu1 %v1761_v0, 264  ;;  %1763 = vbcast.lane.b32.xlu0 %v1761_v0, 256 }
 0x760   :  { %1786 = vbcast.lane.b32.xlu1 %v1780_v18, 264  ;;  %1782 = vbcast.lane.b32.xlu0 %v1780_v18, 256 }
 0x764   :  { %1775 = vbcast.lane.b32.xlu1 %v1761_v0, 280  ;;  %1771 = vbcast.lane.b32.xlu0 %v1761_v0, 272 }
 0x768   :  { %1794 = vbcast.lane.b32.xlu1 %v1780_v18, 280  ;;  %1790 = vbcast.lane.b32.xlu0 %v1780_v18, 272  ;;  %v1959_v18 = vcombine.high %v7570_v11, %v7570_v11 }
 0x76c   :  { %1805 = vbcast.lane.b32.xlu1 %v1799_v10, 264  ;;  %1801 = vbcast.lane.b32.xlu0 %v1799_v10, 256 }
 0x770   :  { %1824 = vbcast.lane.b32.xlu1 %v1818_v23, 264  ;;  %1820 = vbcast.lane.b32.xlu0 %v1818_v23, 256 }
 0x774   :  { %1809 = vbcast.lane.b32.xlu1 %v1799_v10, 272  ;;  %1813 = vbcast.lane.b32.xlu0 %v1799_v10, 280 }
 0x778   :  { %1828 = vbcast.lane.b32.xlu1 %v1818_v23, 272  ;;  %1832 = vbcast.lane.b32.xlu0 %v1818_v23, 280 }
 0x7ae   :  { %v1844_v61 = vpop.permute.xlu1 %1843  ;;  %v1840_v39 = vpop.permute.xlu0 %1839 }
 0x7af   :  { %v2017_v13 = vadd.f32 %v1979_v27, %v1844_v61  ;;  %v2016_v33 = vadd.f32 %v1979_v27, %v1840_v39  ;;  %v7607_v61 = vld [vmem:[#allocation2 + $0x30] sm:$0xff] }
 0x7b1   :  { %v2049_v5 = vmul.f32 0.2, %v2017_v13  ;;  %v2048_v12 = vmul.f32 0.2, %v2016_v33 }
 0x7b2   :  { %v1863_v15 = vpop.permute.xlu1 %1862  ;;  %v1859_v38 = vpop.permute.xlu0 %1858 }
 0x7b3   :  { %v2081_v47 = vmax.f32 %v2017_v13, %v2049_v5  ;;  %v2080_v3 = vmax.f32 %v2016_v33, %v2048_v12  ;;  %v2021_v43 = vadd.f32 %v1983_v46, %v1863_v15  ;;  %v2020_v24 = vadd.f32 %v1983_v46, %v1859_v38 }
 0x7b5   :  { %v2053_v50 = vmul.f32 0.2, %v2021_v43  ;;  %v2052_v1 = vmul.f32 0.2, %v2020_v24  ;;  %v7578_v7 = vadd.f32 %v7575_v54, %v2081_v47  ;;  %v7583_v37 = vadd.f32 %v7580_v51, %v2080_v3 }
 0x7b6   :  { %v1852_v26 = vpop.permute.xlu1 %1851  ;;  %v1848_v45 = vpop.permute.xlu0 %1847 }
 0x7b7   :  { %v2085_v21 = vmax.f32 %v2021_v43, %v2053_v50  ;;  %v2084_v57 = vmax.f32 %v2020_v24, %v2052_v1  ;;  %v2019_v58 = vadd.f32 %v1979_v27, %v1852_v26  ;;  %v2018_v34 = vadd.f32 %v1979_v27, %v1848_v45 }
 0x7b8   :  { %v2179_v30 = vsel %vm608_vm1, %v7578_v7, -inf  ;;  %v2176_v42 = vsel %vm608_vm1, %v7583_v37, -inf  ;;  %v1991_v43 = vrot.slane %v1959_v18, %v6994_v4  ;;  %v1918_v26 = vrot.slane %v7544_v17, %v8739_v52 }
 0x7b9   :  { %v2051_v20 = vmul.f32 0.2, %v2019_v58  ;;  %v2050_v60 = vmul.f32 0.2, %v2018_v34  ;;  %2180 = vmax.xlane.f32.xlu1 %v2179_v30  ;;  %2177 = vmax.xlane.f32.xlu0 %v2176_v42  ;;  %v7590_v41 = vadd.f32 %v7575_v54, %v2085_v21  ;;  %v7593_v59 = vadd.f32 %v7580_v51, %v2084_v57 }
 0x7ba   :  { %v1871_v36 = vpop.permute.xlu1 %1870  ;;  %v1867_v32 = vpop.permute.xlu0 %1866 }
 0x7bb   :  { %v2083_v9 = vmax.f32 %v2019_v58, %v2051_v20  ;;  %v2082_v62 = vmax.f32 %v2018_v34, %v2050_v60  ;;  %v2023_v44 = vadd.f32 %v1983_v46, %v1871_v36  ;;  %v2022_v0 = vadd.f32 %v1983_v46, %v1867_v32 }
 0x7bc   :  { %v2191_v10 = vsel %vm608_vm1, %v7590_v41, -inf  ;;  %v2188_v23 = vsel %vm608_vm1, %v7593_v59, -inf  ;;  %v1926_v32 = vcombine.high %v1918_v26, %v1918_v26 }
 0x7bd   :  { %v2055_v29 = vmul.f32 0.2, %v2023_v44  ;;  %v2054_v14 = vmul.f32 0.2, %v2022_v0  ;;  %2192 = vmax.xlane.f32.xlu1 %v2191_v10  ;;  %2189 = vmax.xlane.f32.xlu0 %v2188_v23  ;;  %v7605_v27 = vadd.f32 %v7602_v16, %v2083_v9  ;;  %v7610_v11 = vadd.f32 %v7607_v61, %v2082_v62 }
 0x7be   :  { %v1882_v39 = vpop.permute.xlu1 %1881  ;;  %v1878_v13 = vpop.permute.xlu0 %1877  ;;  %v7638_v23 = vrot.slane %v1918_v26, %v8739_v52 }
 0x7bf   :  { %v2086_v33 = vmax.f32 %v2022_v0, %v2054_v14  ;;  %v2025_v5 = vadd.f32 %v1987_v28, %v1882_v39  ;;  %v2024_v12 = vadd.f32 %v1987_v28, %v1878_v13  ;;  %v2087_v46 = vmax.f32 %v2023_v44, %v2055_v29 }
 0x7c0   :  { %v2185_v15 = vsel %vm608_vm1, %v7605_v27, -inf  ;;  %v2182_v38 = vsel %vm608_vm1, %v7610_v11, -inf }
 0x7c1   :  { %v2057_v47 = vmul.f32 0.2, %v2025_v5  ;;  %v2056_v3 = vmul.f32 0.2, %v2024_v12  ;;  %2186 = vmax.xlane.f32.xlu1 %v2185_v15  ;;  %2183 = vmax.xlane.f32.xlu0 %v2182_v38  ;;  %v7618_v24 = vadd.f32 %v7607_v61, %v2086_v33  ;;  %v7625_v25 = vadd.f32 %v7602_v16, %v2087_v46 }
 0x7c2   :  { %v1901_v50 = vpop.permute.xlu1 %1900  ;;  %v1897_v1 = vpop.permute.xlu0 %1896  ;;  %v7644_v33 = vrot.slane %v1926_v32, %v8739_v52 }
 0x7c3   :  { %v2088_v45 = vmax.f32 %v2024_v12, %v2056_v3  ;;  %v2029_v21 = vadd.f32 %v1991_v43, %v1901_v50  ;;  %v2028_v57 = vadd.f32 %v1991_v43, %v1897_v1  ;;  %v2089_v58 = vmax.f32 %v2025_v5, %v2057_v47 }
 0x7c4   :  { %v2194_v34 = vsel %vm608_vm1, %v7618_v24, -inf  ;;  %v2197_v0 = vsel %vm608_vm1, %v7625_v25, -inf }
 0x7c5   :  { %v2061_v30 = vmul.f32 0.2, %v2029_v21  ;;  %v2060_v42 = vmul.f32 0.2, %v2028_v57  ;;  %2195 = vmax.xlane.f32.xlu0 %v2194_v34  ;;  %v7628_v20 = vadd.f32 %v7580_v51, %v2088_v45  ;;  %v7635_v10 = vadd.f32 %v7575_v54, %v2089_v58 }
 0x7c6   :  { %v1890_v60 = vpop.permute.xlu1 %1889  ;;  %v1886_v36 = vpop.permute.xlu0 %1885 }
 0x7c7   :  { %v2092_v17 = vmax.f32 %v2028_v57, %v2060_v42  ;;  %v2027_v9 = vadd.f32 %v1987_v28, %v1890_v60  ;;  %v2026_v62 = vadd.f32 %v1987_v28, %v1886_v36  ;;  %v2093_v44 = vmax.f32 %v2029_v21, %v2061_v30 }
 0x7c8   :  { %v2200_v18 = vsel %vm608_vm1, %v7628_v20, -inf  ;;  %v2203_v38 = vsel %vm608_vm1, %v7635_v10, -inf  ;;  %v7672_v42 = vrot.slane %v7644_v33, %v6994_v4 }
 0x7c9   :  { %v2059_v29 = vmul.f32 0.2, %v2027_v9  ;;  %v2058_v14 = vmul.f32 0.2, %v2026_v62  ;;  %2198 = vmax.xlane.f32.xlu0 %v2197_v0  ;;  %2201 = vmax.xlane.f32.xlu1 %v2200_v18  ;;  %v7641_v39 = vadd.f32 %v7580_v51, %v2092_v17  ;;  %v7651_v3 = vadd.f32 %v7575_v54, %v2093_v44 }
 0x7ca   :  { %v1909_v28 = vpop.permute.xlu1 %1908  ;;  %v1905_v13 = vpop.permute.xlu0 %1904  ;;  %v7655_v51 = vrot.slane %v7638_v23, %v6994_v4 }
 0x7cb   :  { %v2090_v5 = vmax.f32 %v2026_v62, %v2058_v14  ;;  %v2031_v12 = vadd.f32 %v1991_v43, %v1909_v28  ;;  %v2030_v46 = vadd.f32 %v1991_v43, %v1905_v13  ;;  %v2091_v15 = vmax.f32 %v2027_v9, %v2059_v29 }
 0x7cc   :  { %v2212_v47 = vsel %vm608_vm1, %v7641_v39, -inf  ;;  %v2215_v54 = vsel %vm608_vm1, %v7651_v3, -inf }
 0x7cd   :  { %v2063_v50 = vmul.f32 0.2, %v2031_v12  ;;  %v2062_v1 = vmul.f32 0.2, %v2030_v46  ;;  %2204 = vmax.xlane.f32.xlu0 %v2203_v38  ;;  %2213 = vmax.xlane.f32.xlu1 %v2212_v47  ;;  %v7658_v43 = vadd.f32 %v7607_v61, %v2090_v5  ;;  %v7668_v30 = vadd.f32 %v7602_v16, %v2091_v15 }
 0x7ce   :  { %v1768_v26 = vpop.permute.xlu1 %1767  ;;  %v7660_v45 = vpop.permute.xlu0 %1763  ;;  %v1956_v15 = vcombine.high %v7638_v23, %v7638_v23 }
 0x7cf   :  { %v2094_v21 = vmax.f32 %v2030_v46, %v2062_v1  ;;  %v2001_v57 = vadd.f32 %v7655_v51, %v1768_v26  ;;  %v2095_v58 = vmax.f32 %v2031_v12, %v2063_v50  ;;  %v2206_v34 = vsel %vm608_vm1, %v7658_v43, -inf  ;;  %v6803_v12 = vld [vmem:[#allocation2 + $0x8] sm:$0xff] }
 0x7d0   :  { %v2209_v44 = vsel %vm608_vm1, %v7668_v30, -inf }
 0x7d1   :  { %v2033_v60 = vmul.f32 0.2, %v2001_v57  ;;  %2216 = vmax.xlane.f32.xlu0 %v2215_v54  ;;  %2207 = vmax.xlane.f32.xlu1 %v2206_v34  ;;  %v7675_v36 = vadd.f32 %v7607_v61, %v2094_v21  ;;  %v7685_v18 = vadd.f32 %v7602_v16, %v2095_v58  ;;  %v7704_v58 = vrot.slane %v1956_v15, %v6994_v4 }
 0x7d2   :  { %v1787_v32 = vpop.permute.xlu1 %1786  ;;  %v7677_v17 = vpop.permute.xlu0 %1782 }
 0x7d3   :  { %v2005_v9 = vadd.f32 %v7672_v42, %v1787_v32  ;;  %v2065_v62 = vmax.f32 %v2001_v57, %v2033_v60  ;;  %v2218_v0 = vsel %vm608_vm1, %v7675_v36, -inf  ;;  %v2221_v5 = vsel %vm608_vm1, %v7685_v18, -inf }
 0x7d4   :  { %v1958_v57 = vcombine.high %v7644_v33, %v7644_v33 }
 0x7d5   :  { %v2037_v29 = vmul.f32 0.2, %v2005_v9  ;;  %2210 = vmax.xlane.f32.xlu0 %v2209_v44  ;;  %2219 = vmax.xlane.f32.xlu1 %v2218_v0  ;;  %v7692_v46 = vadd.f32 %v6803_v12, %v2065_v62  ;;  %v6804_v62 = vld [vmem:[#allocation2 + $0x18] sm:$0xff] }
 0x7d6   :  { %v1776_v61 = vpop.permute.xlu1 %1775  ;;  %v7687_v14 = vpop.permute.xlu0 %1771  ;;  %v7712_v33 = vrot.slane %v1958_v57, %v6994_v4 }
 0x7d7   :  { %v2003_v28 = vadd.f32 %v7655_v51, %v1776_v61  ;;  %v2069_v13 = vmax.f32 %v2005_v9, %v2037_v29  ;;  %v2131_v26 = vsel %vm608_vm1, %v7692_v46, -inf }
 0x7d9   :  { %v2035_v16 = vmul.f32 0.2, %v2003_v28  ;;  %2222 = vmax.xlane.f32.xlu0 %v2221_v5  ;;  %v7699_v21 = vadd.f32 %v6803_v12, %v2069_v13 }
 0x7da   :  { %v1795_v38 = vpop.permute.xlu1 %1794  ;;  %v1791_v47 = vpop.permute.xlu0 %1790 }
 0x7db   :  { %v2007_v50 = vadd.f32 %v7672_v42, %v1795_v38  ;;  %v2067_v1 = vmax.f32 %v2003_v28, %v2035_v16  ;;  %v2143_v9 = vsel %vm608_vm1, %v7699_v21, -inf }
 0x7dd   :  { %v2039_v54 = vmul.f32 0.2, %v2007_v50  ;;  %2132 = vmax.xlane.f32.xlu0 %v2131_v26  ;;  %v7709_v44 = vadd.f32 %v6804_v62, %v2067_v1 }
 0x7de   :  { %v1806_v23 = vpop.permute.xlu1 %1805  ;;  %v1802_v34 = vpop.permute.xlu0 %1801 }
 0x7df   :  { %v2009_v60 = vadd.f32 %v7704_v58, %v1806_v23  ;;  %v2071_v32 = vmax.f32 %v2007_v50, %v2039_v54  ;;  %v2137_v5 = vsel %vm608_vm1, %v7709_v44, -inf }
 0x7e1   :  { %v2041_v0 = vmul.f32 0.2, %v2009_v60  ;;  %2144 = vmax.xlane.f32.xlu0 %v2143_v9  ;;  %v7717_v15 = vadd.f32 %v6804_v62, %v2071_v32 }
 0x7e2   :  { %v1825_v29 = vpop.permute.xlu1 %1824  ;;  %v1821_v61 = vpop.permute.xlu0 %1820 }
 0x7e3   :  { %v2013_v28 = vadd.f32 %v7712_v33, %v1825_v29  ;;  %v2073_v13 = vmax.f32 %v2009_v60, %v2041_v0  ;;  %v2149_v26 = vsel %vm608_vm1, %v7717_v15, -inf }
 0x7e5   :  { %v2045_v16 = vmul.f32 0.2, %v2013_v28  ;;  %2138 = vmax.xlane.f32.xlu0 %v2137_v5  ;;  %v7724_v57 = vadd.f32 %v6803_v12, %v2073_v13 }
 0x7e6   :  { %6294 = vrot.lane.b32.xlu1 %v7535_v22, %s6878_s19  ;;  %v1814_v38 = vpop.permute.xlu0 %1813 }
 0x7e7   :  { %v2011_v50 = vadd.f32 %v7704_v58, %v1814_v38  ;;  %v2077_v1 = vmax.f32 %v2013_v28, %v2045_v16  ;;  %v2155_v9 = vsel %vm608_vm1, %v7724_v57, -inf }
 0x7e9   :  { %v2043_v54 = vmul.f32 0.2, %v2011_v50  ;;  %2150 = vmax.xlane.f32.xlu0 %v2149_v26  ;;  %v7729_v0 = vadd.f32 %v6803_v12, %v2077_v1  ;;  %v2000_v12 = vadd.f32 %v7655_v51, %v7660_v45  ;;  %v2004_v26 = vadd.f32 %v7672_v42, %v7677_v17 }
 0x7ea   :  { %v1833_v23 = vpop.permute.xlu0 %1832  ;;  %v2008_v45 = vadd.f32 %v7704_v58, %v1802_v34 }
 0x7eb   :  { %v2015_v60 = vadd.f32 %v7712_v33, %v1833_v23  ;;  %v2075_v32 = vmax.f32 %v2011_v50, %v2043_v54  ;;  %v2167_v28 = vsel %vm608_vm1, %v7729_v0, -inf  ;;  %v2032_v1 = vmul.f32 0.2, %v2000_v12 }
 0x7ec   :  { %v2036_v23 = vmul.f32 0.2, %v2004_v26 }
 0x7ed   :  { %v2047_v29 = vmul.f32 0.2, %v2015_v60  ;;  %2156 = vmax.xlane.f32.xlu0 %v2155_v9  ;;  %v7733_v16 = vadd.f32 %v6804_v62, %v2075_v32  ;;  %v2064_v54 = vmax.f32 %v2000_v12, %v2032_v1  ;;  %v1810_v1 = vpop.permute.xlu1 %1809 }
 0x7ee   :  { %v2068_v32 = vmax.f32 %v2004_v26, %v2036_v23 }
 0x7ef   :  { %v2079_v5 = vmax.f32 %v2015_v60, %v2047_v29  ;;  %v2161_v13 = vsel %vm608_vm1, %v7733_v16, -inf  ;;  %v2002_v60 = vadd.f32 %v7655_v51, %v7687_v14  ;;  %v6805_v29 = vld [vmem:[#allocation2] sm:$0xff]  ;;  %v2040_v51 = vmul.f32 0.2, %v2008_v45 }
 0x7f0   :  { %v7753_v17 = vadd.f32 %v6805_v29, %v2068_v32 }
 0x7f1   :  { %2168 = vmax.xlane.f32.xlu0 %v2167_v28  ;;  %v7737_v38 = vadd.f32 %v6804_v62, %v2079_v5  ;;  %v2006_v62 = vadd.f32 %v7672_v42, %v1791_v47  ;;  %v2034_v9 = vmul.f32 0.2, %v2002_v60  ;;  %v7748_v5 = vadd.f32 %v6805_v29, %v2064_v54  ;;  %v6806_v47 = vld [vmem:[#allocation2 + $0x10] sm:$0xff]  ;;  %v1829_v32 = vpop.permute.xlu1 %1828 }
 0x7f2   :  { %v2012_v42 = vadd.f32 %v7712_v33, %v1821_v61  ;;  %v2140_v14 = vsel %vm608_vm1, %v7753_v17, -inf  ;;  %v2072_v34 = vmax.f32 %v2008_v45, %v2040_v51 }
 0x7f3   :  { %v2173_v50 = vsel %vm608_vm1, %v7737_v38, -inf  ;;  %v2038_v28 = vmul.f32 0.2, %v2006_v62 }
 0x7f4   :  { %v2044_v23 = vmul.f32 0.2, %v2012_v42 }
 0x7f5   :  { %2162 = vmax.xlane.f32.xlu0 %v2161_v13  ;;  %v2066_v13 = vmax.f32 %v2002_v60, %v2034_v9  ;;  %v2070_v12 = vmax.f32 %v2006_v62, %v2038_v28  ;;  %v2010_v60 = vadd.f32 %v7704_v58, %v1810_v1 }
 0x7f6   :  { %v2076_v9 = vmax.f32 %v2012_v42, %v2044_v23 }
 0x7f7   :  { %v7758_v26 = vadd.f32 %v6806_v47, %v2066_v13  ;;  %v7760_v54 = vadd.f32 %v6806_v47, %v2070_v12  ;;  %v2042_v28 = vmul.f32 0.2, %v2010_v60  ;;  %v2014_v13 = vadd.f32 %v7712_v33, %v1829_v32 }
 0x7f8   :  { %v7772_v1 = vadd.f32 %v6805_v29, %v2076_v9 }
 0x7f9   :  { %2174 = vmax.xlane.f32.xlu0 %v2173_v50  ;;  %v2128_v50 = vsel %vm608_vm1, %v7748_v5, -inf  ;;  %v2134_v62 = vsel %vm608_vm1, %v7758_v26, -inf  ;;  %v2146_v61 = vsel %vm608_vm1, %v7760_v54, -inf  ;;  %v2074_v12 = vmax.f32 %v2010_v60, %v2042_v28 }
 0x7fa   :  { %v2046_v45 = vmul.f32 0.2, %v2014_v13 }
 0x7fc   :  { %v2078_v51 = vmax.f32 %v2014_v13, %v2046_v45 }
 0x7fe   :  { %v7780_v42 = vadd.f32 %v6806_v47, %v2078_v51 }
 0x80a   :  { %2129 = vmax.xlane.f32.xlu1 %v2128_v50  ;;  %v7768_v50 = vadd.f32 %v6805_v29, %v2072_v34  ;;  %v2170_v34 = vsel %vm608_vm1, %v7780_v42, -inf }
 0x80c   :  { %v2152_v58 = vsel %vm608_vm1, %v7768_v50, -inf }
 0x80e   :  { %2141 = vmax.xlane.f32.xlu1 %v2140_v14  ;;  %v2164_v14 = vsel %vm608_vm1, %v7772_v1, -inf }
 0x812   :  { %2135 = vmax.xlane.f32.xlu1 %v2134_v62  ;;  %v7776_v62 = vadd.f32 %v6806_v47, %v2074_v12 }
 0x814   :  { %v2158_v33 = vsel %vm608_vm1, %v7776_v62, -inf }
 0x816   :  { %2147 = vmax.xlane.f32.xlu1 %v2146_v61 }
 0x81a   :  { %2153 = vmax.xlane.f32.xlu1 %v2152_v58 }
 0x81e   :  { %2165 = vmax.xlane.f32.xlu1 %v2164_v14 }
 0x822   :  { %2159 = vmax.xlane.f32.xlu1 %v2158_v33 }
 0x826   :  { %2171 = vmax.xlane.f32.xlu1 %v2170_v34 }
 0x846   :  { %v2181_v29 = vpop.xlane.xlu1 %2180  ;;  %v2178_v23 = vpop.xlane.xlu0 %2177 }
 0x847   :  { %v2241_v60 = vsub.f32 %v7578_v7, %v2181_v29  ;;  %v2240_v32 = vsub.f32 %v7583_v37, %v2178_v23 }
 0x849   :  { %v2290_v61 = vmul.f32 1.442695, %v2241_v60  ;;  %v2288_v9 = vmul.f32 1.442695, %v2240_v32 }
 0x84a   :  { %v2193_v28 = vpop.xlane.xlu1 %2192  ;;  %v2190_v13 = vpop.xlane.xlu0 %2189 }
 0x84b   :  { %6511 = vpow2.f32 %v2290_v61  ;;  %v2245_v12 = vsub.f32 %v7590_v41, %v2193_v28  ;;  %v2244_v47 = vsub.f32 %v7593_v59, %v2190_v13 }
 0x84c   :  { %6513 = vpow2.f32 %v2288_v9 }
 0x84d   :  { %v2298_v45 = vmul.f32 1.442695, %v2245_v12  ;;  %v2296_v58 = vmul.f32 1.442695, %v2244_v47 }
 0x84e   :  { %v2187_v51 = vpop.xlane.xlu1 %2186  ;;  %v2184_v14 = vpop.xlane.xlu0 %2183 }
 0x84f   :  { %6515 = vpow2.f32 %v2298_v45  ;;  %v2243_v33 = vsub.f32 %v7605_v27, %v2187_v51  ;;  %v2242_v7 = vsub.f32 %v7610_v11, %v2184_v14 }
 0x850   :  { %6517 = vpow2.f32 %v2296_v58 }
 0x851   :  { %v2294_v37 = vmul.f32 1.442695, %v2243_v33  ;;  %v2292_v34 = vmul.f32 1.442695, %v2242_v7 }
 0x852   :  { %v2196_v29 = vpop.xlane.xlu0 %2195 }
 0x853   :  { %6519 = vpow2.f32 %v2294_v37  ;;  %v2246_v23 = vsub.f32 %v7618_v24, %v2196_v29 }
 0x854   :  { %6521 = vpow2.f32 %v2292_v34 }
 0x855   :  { %v7791_v41 = vpop.eup %6511  ;;  %v2300_v59 = vmul.f32 1.442695, %v2246_v23 }
 0x856   :  { %v7793_v60 = vpop.eup %6513  ;;  %v2202_v32 = vpop.xlane.xlu1 %2201  ;;  %v2371_v27 = vsel %vm608_vm1, %v7791_v41, 0.0 }
 0x857   :  { %v2199_v61 = vpop.xlane.xlu0 %2198  ;;  %6523 = vpow2.f32 %v2300_v59  ;;  %v2248_v11 = vsub.f32 %v7628_v20, %v2202_v32  ;;  %2372 = vadd.xlane.f32.xlu0 %v2371_v27  ;;  %v2368_v24 = vsel %vm608_vm1, %v7793_v60, 0.0 }
 0x858   :  { %v2247_v9 = vsub.f32 %v7625_v25, %v2199_v61  ;;  %2369 = vadd.xlane.f32.xlu1 %v2368_v24 }
 0x859   :  { %v7801_v28 = vpop.eup %6515  ;;  %v2304_v13 = vmul.f32 1.442695, %v2248_v11 }
 0x85a   :  { %v2302_v12 = vmul.f32 1.442695, %v2247_v9  ;;  %v7803_v47 = vpop.eup %6517  ;;  %v2214_v45 = vpop.xlane.xlu1 %2213  ;;  %v2383_v51 = vsel %vm608_vm1, %v7801_v28, 0.0 }
 0x85b   :  { %v2205_v58 = vpop.xlane.xlu0 %2204  ;;  %6525 = vpow2.f32 %v2304_v13  ;;  %v2252_v20 = vsub.f32 %v7641_v39, %v2214_v45  ;;  %2384 = vadd.xlane.f32.xlu0 %v2383_v51  ;;  %v2380_v14 = vsel %vm608_vm1, %v7803_v47, 0.0 }
 0x85c   :  { %v2249_v25 = vsub.f32 %v7635_v10, %v2205_v58  ;;  %6527 = vpow2.f32 %v2302_v12  ;;  %2381 = vadd.xlane.f32.xlu1 %v2380_v14 }
 0x85d   :  { %v7811_v33 = vpop.eup %6519  ;;  %v2312_v7 = vmul.f32 1.442695, %v2252_v20 }
 0x85e   :  { %v2306_v37 = vmul.f32 1.442695, %v2249_v25  ;;  %v7813_v34 = vpop.eup %6521  ;;  %v2208_v29 = vpop.xlane.xlu1 %2207  ;;  %v2377_v59 = vsel %vm608_vm1, %v7811_v33, 0.0 }
 0x85f   :  { %v2217_v23 = vpop.xlane.xlu0 %2216  ;;  %6529 = vpow2.f32 %v2312_v7  ;;  %v2250_v10 = vsub.f32 %v7658_v43, %v2208_v29  ;;  %2378 = vadd.xlane.f32.xlu0 %v2377_v59  ;;  %v2374_v32 = vsel %vm608_vm1, %v7813_v34, 0.0 }
 0x860   :  { %v2253_v39 = vsub.f32 %v7651_v3, %v2217_v23  ;;  %6531 = vpow2.f32 %v2306_v37  ;;  %2375 = vadd.xlane.f32.xlu1 %v2374_v32 }
 0x861   :  { %v7821_v61 = vpop.eup %6523  ;;  %v2308_v13 = vmul.f32 1.442695, %v2250_v10 }
 0x862   :  { %v2314_v27 = vmul.f32 1.442695, %v2253_v39  ;;  %v2220_v11 = vpop.xlane.xlu1 %2219  ;;  %v2386_v24 = vsel %vm608_vm1, %v7821_v61, 0.0 }
 0x863   :  { %v2211_v9 = vpop.xlane.xlu0 %2210  ;;  %v2254_v12 = vsub.f32 %v7675_v36, %v2220_v11 }
 0x864   :  { %v2251_v43 = vsub.f32 %v7668_v30, %v2211_v9  ;;  %6533 = vpow2.f32 %v2314_v27  ;;  %2387 = vadd.xlane.f32.xlu1 %v2386_v24 }
 0x865   :  { %v7827_v3 = vpop.eup %6525  ;;  %v2316_v51 = vmul.f32 1.442695, %v2254_v12  ;;  %6535 = vpow2.f32 %v2308_v13 }
 0x866   :  { %v2310_v45 = vmul.f32 1.442695, %v2251_v43  ;;  %v7829_v58 = vpop.eup %6527  ;;  %v2392_v25 = vsel %vm608_vm1, %v7827_v3, 0.0 }
 0x867   :  { %v2223_v20 = vpop.xlane.xlu0 %2222  ;;  %v2389_v30 = vsel %vm608_vm1, %v7829_v58, 0.0 }
 0x868   :  { %v2255_v14 = vsub.f32 %v7685_v18, %v2223_v20  ;;  %6537 = vpow2.f32 %v2310_v45  ;;  %2393 = vadd.xlane.f32.xlu1 %v2392_v25  ;;  %2390 = vadd.xlane.f32.xlu0 %v2389_v30  ;;  %v7866_v20 = vpop.permute.xlu1 %6294 }
 0x869   :  { %v7836_v36 = vpop.eup %6529  ;;  %6539 = vpow2.f32 %v2316_v51 }
 0x86a   :  { %v2318_v7 = vmul.f32 1.442695, %v2255_v14  ;;  %v7838_v37 = vpop.eup %6531  ;;  %v2404_v29 = vsel %vm608_vm1, %v7836_v36, 0.0 }
 0x86b   :  { %v2395_v23 = vsel %vm608_vm1, %v7838_v37, 0.0  ;;  %v2133_v12 = vpop.xlane.xlu0 %2132 }
 0x86c   :  { %6541 = vpow2.f32 %v2318_v7  ;;  %2405 = vadd.xlane.f32.xlu1 %v2404_v29  ;;  %2396 = vadd.xlane.f32.xlu0 %v2395_v23  ;;  %v2225_v25 = vsub.f32 %v7692_v46, %v2133_v12 }
 0x86e   :  { %v7844_v18 = vpop.eup %6533  ;;  %v2258_v23 = vmul.f32 1.442695, %v2225_v25 }
 0x86f   :  { %v2407_v59 = vsel %vm608_vm1, %v7844_v18, 0.0  ;;  %v7848_v10 = vpop.eup %6535  ;;  %v2145_v43 = vpop.xlane.xlu0 %2144 }
 0x870   :  { %2408 = vadd.xlane.f32.xlu0 %v2407_v59  ;;  %v2398_v11 = vsel %vm608_vm1, %v7848_v10, 0.0  ;;  %v2229_v59 = vsub.f32 %v7699_v21, %v2145_v43 }
 0x872   :  { %v7850_v39 = vpop.eup %6537  ;;  %v2266_v52 = vmul.f32 1.442695, %v2229_v59 }
 0x873   :  { %v2401_v32 = vsel %vm608_vm1, %v7850_v39, 0.0  ;;  %v7854_v27 = vpop.eup %6539  ;;  %v2139_v45 = vpop.xlane.xlu0 %2138 }
 0x874   :  { %2402 = vadd.xlane.f32.xlu1 %v2401_v32  ;;  %2399 = vadd.xlane.f32.xlu0 %v2398_v11  ;;  %v2410_v13 = vsel %vm608_vm1, %v7854_v27, 0.0 }
 0x876   :  { %v7858_v9 = vpop.eup %6541 }
 0x877   :  { %v2413_v24 = vsel %vm608_vm1, %v7858_v9, 0.0  ;;  %v2151_v51 = vpop.xlane.xlu0 %2150 }
 0x878   :  { %2414 = vadd.xlane.f32.xlu1 %v2413_v24  ;;  %2411 = vadd.xlane.f32.xlu0 %v2410_v13 }
 0x87b   :  { %v2157_v14 = vpop.xlane.xlu0 %2156 }
 0x87c   :  { %v2233_v46 = vsub.f32 %v7724_v57, %v2157_v14 }
 0x87f   :  { %v2169_v24 = vpop.xlane.xlu0 %2168 }
 0x883   :  { %v2163_v21 = vpop.xlane.xlu0 %2162 }
 0x88e   :  { %6299 = vrot.lane.b32.xlu0 %v7535_v22, %s6883_s22  ;;  %v2227_v22 = vsub.f32 %v7709_v44, %v2139_v45 }
 0x890   :  { %v2262_v12 = vmul.f32 1.442695, %v2227_v22 }
 0x897   :  { %v2130_v30 = vpop.xlane.xlu1 %2129 }
 0x898   :  { %v2224_v7 = vsub.f32 %v7748_v5, %v2130_v30  ;;  %v2274_v30 = vmul.f32 1.442695, %v2233_v46 }
 0x89a   :  { %v2256_v29 = vmul.f32 1.442695, %v2224_v7  ;;  %v2231_v7 = vsub.f32 %v7717_v15, %v2151_v51 }
 0x89b   :  { %v2142_v32 = vpop.xlane.xlu1 %2141 }
 0x89c   :  { %6543 = vpow2.f32 %v2256_v29  ;;  %v2228_v11 = vsub.f32 %v7753_v17, %v2142_v32  ;;  %v2237_v17 = vsub.f32 %v7729_v0, %v2169_v24  ;;  %v2175_v0 = vpop.xlane.xlu0 %2174 }
 0x89d   :  { %6545 = vpow2.f32 %v2258_v23 }
 0x89e   :  { %v2264_v13 = vmul.f32 1.442695, %v2228_v11  ;;  %v2239_v11 = vsub.f32 %v7737_v38, %v2175_v0 }
 0x89f   :  { %v2136_v31 = vpop.xlane.xlu1 %2135 }
 0x8a0   :  { %6547 = vpow2.f32 %v2264_v13  ;;  %v2226_v5 = vsub.f32 %v7758_v26, %v2136_v31  ;;  %v2235_v26 = vsub.f32 %v7733_v16, %v2163_v21  ;;  %v2286_v38 = vmul.f32 1.442695, %v2239_v11 }
 0x8a1   :  { %6549 = vpow2.f32 %v2266_v52  ;;  %v2282_v52 = vmul.f32 1.442695, %v2237_v17 }
 0x8a2   :  { %v2260_v25 = vmul.f32 1.442695, %v2226_v5  ;;  %v2278_v32 = vmul.f32 1.442695, %v2235_v26 }
 0x8a3   :  { %v2148_v43 = vpop.xlane.xlu1 %2147 }
 0x8a4   :  { %6551 = vpow2.f32 %v2260_v25  ;;  %v2230_v44 = vsub.f32 %v7760_v54, %v2148_v43  ;;  %v2270_v54 = vmul.f32 1.442695, %v2231_v7 }
 0x8a5   :  { %6553 = vpow2.f32 %v2262_v12 }
 0x8a6   :  { %v7877_v45 = vpop.eup %6543  ;;  %v2268_v57 = vmul.f32 1.442695, %v2230_v44  ;;  %6555 = vpow2.f32 %v2274_v30 }
 0x8a7   :  { %v2154_v14 = vpop.xlane.xlu1 %2153  ;;  %v2320_v31 = vsel %vm608_vm1, %v7877_v45, 0.0  ;;  %v7883_v29 = vpop.eup %6545 }
 0x8a8   :  { %2321 = vadd.xlane.f32.xlu1 %v2320_v31  ;;  %6557 = vpow2.f32 %v2268_v57  ;;  %v2232_v59 = vsub.f32 %v7768_v50, %v2154_v14  ;;  %v2323_v24 = vsel %vm608_vm1, %v7883_v29, 0.0 }
 0x8a9   :  { %6559 = vpow2.f32 %v2282_v52 }
 0x8aa   :  { %v7885_v23 = vpop.eup %6547  ;;  %6561 = vpow2.f32 %v2270_v54  ;;  %v2272_v13 = vmul.f32 1.442695, %v2232_v59 }
 0x8ab   :  { %v2166_v15 = vpop.xlane.xlu1 %2165  ;;  %v2332_v51 = vsel %vm608_vm1, %v7885_v23, 0.0  ;;  %v7891_v16 = vpop.eup %6549  ;;  %6563 = vpow2.f32 %v2278_v32 }
 0x8ac   :  { %2333 = vadd.xlane.f32.xlu1 %v2332_v51  ;;  %v2236_v50 = vsub.f32 %v7772_v1, %v2166_v15  ;;  %v2335_v25 = vsel %vm608_vm1, %v7891_v16, 0.0  ;;  %6565 = vpow2.f32 %v2272_v13 }
 0x8ad   :  { %2324 = vadd.xlane.f32.xlu0 %v2323_v24  ;;  %6567 = vpow2.f32 %v2286_v38 }
 0x8ae   :  { %v7895_v22 = vpop.eup %6551  ;;  %v2280_v43 = vmul.f32 1.442695, %v2236_v50 }
 0x8af   :  { %v2160_v46 = vpop.xlane.xlu1 %2159  ;;  %v2326_v5 = vsel %vm608_vm1, %v7895_v22, 0.0  ;;  %v7900_v12 = vpop.eup %6553 }
 0x8b0   :  { %2327 = vadd.xlane.f32.xlu1 %v2326_v5  ;;  %v7904_v21 = vpop.eup %6555  ;;  %v2234_v30 = vsub.f32 %v7776_v62, %v2160_v46  ;;  %v2329_v17 = vsel %vm608_vm1, %v7900_v12, 0.0  ;;  %6569 = vpow2.f32 %v2280_v43 }
 0x8b1   :  { %2336 = vadd.xlane.f32.xlu0 %v2335_v25  ;;  %v2347_v7 = vsel %vm608_vm1, %v7904_v21, 0.0 }
 0x8b2   :  { %v7909_v44 = vpop.eup %6557  ;;  %v2276_v14 = vmul.f32 1.442695, %v2234_v30 }
 0x8b3   :  { %v2172_v1 = vpop.xlane.xlu1 %2171  ;;  %v7913_v57 = vpop.eup %6559  ;;  %v2338_v62 = vsel %vm608_vm1, %v7909_v44, 0.0 }
 0x8b4   :  { %2330 = vadd.xlane.f32.xlu1 %v2329_v17  ;;  %v2238_v31 = vsub.f32 %v7780_v42, %v2172_v1  ;;  %v7918_v52 = vpop.eup %6561  ;;  %v2359_v26 = vsel %vm608_vm1, %v7913_v57, 0.0  ;;  %6571 = vpow2.f32 %v2276_v14 }
 0x8b5   :  { %2348 = vadd.xlane.f32.xlu0 %v2347_v7  ;;  %v7922_v0 = vpop.eup %6563  ;;  %v2341_v59 = vsel %vm608_vm1, %v7918_v52, 0.0 }
 0x8b6   :  { %v2284_v54 = vmul.f32 1.442695, %v2238_v31  ;;  %v7926_v15 = vpop.eup %6565  ;;  %v2353_v42 = vsel %vm608_vm1, %v7922_v0, 0.0 }
 0x8b7   :  { %v7930_v51 = vpop.eup %6567  ;;  %v2344_v32 = vsel %vm608_vm1, %v7926_v15, 0.0 }
 0x8b8   :  { %2339 = vadd.xlane.f32.xlu1 %v2338_v62  ;;  %6573 = vpow2.f32 %v2284_v54  ;;  %v2365_v24 = vsel %vm608_vm1, %v7930_v51, 0.0 }
 0x8b9   :  { %2360 = vadd.xlane.f32.xlu0 %v2359_v26 }
 0x8ba   :  { %v7934_v11 = vpop.eup %6569 }
 0x8bb   :  { %v2356_v13 = vsel %vm608_vm1, %v7934_v11, 0.0 }
 0x8bc   :  { %2342 = vadd.xlane.f32.xlu1 %v2341_v59 }
 0x8bd   :  { %2354 = vadd.xlane.f32.xlu0 %v2353_v42 }
 0x8be   :  { %v7940_v50 = vpop.eup %6571 }
 0x8bf   :  { %v2350_v46 = vsel %vm608_vm1, %v7940_v50, 0.0 }
 0x8c0   :  { %2345 = vadd.xlane.f32.xlu1 %v2344_v32 }
 0x8c1   :  { %2366 = vadd.xlane.f32.xlu0 %v2365_v24 }
 0x8c2   :  { %v7944_v5 = vpop.eup %6573 }
 0x8c3   :  { %v2362_v38 = vsel %vm608_vm1, %v7944_v5, 0.0 }
 0x8c4   :  { %2357 = vadd.xlane.f32.xlu1 %v2356_v13 }
 0x8c8   :  { %2351 = vadd.xlane.f32.xlu1 %v2350_v46 }
 0x8cc   :  { %2363 = vadd.xlane.f32.xlu1 %v2362_v38 }
 0x8e4   :  { %v2373_v25 = vpop.xlane.xlu0 %2372 }
 0x8e5   :  { %v2370_v43 = vpop.xlane.xlu1 %2369  ;;  %6575 = vrcp.f32 %v2373_v25 }
 0x8e6   :  { %6577 = vrcp.f32 %v2370_v43 }
 0x8e8   :  { %v2385_v30 = vpop.xlane.xlu0 %2384 }
 0x8e9   :  { %v2382_v1 = vpop.xlane.xlu1 %2381  ;;  %6579 = vrcp.f32 %v2385_v30 }
 0x8ea   :  { %6581 = vrcp.f32 %v2382_v1 }
 0x8ec   :  { %v2379_v7 = vpop.xlane.xlu0 %2378 }
 0x8ed   :  { %v2376_v17 = vpop.xlane.xlu1 %2375 }
 0x8ee   :  { %6583 = vrcp.f32 %v2376_v17 }
 0x8ef   :  { %v6576_v14 = vpop.eup %6575  ;;  %6585 = vrcp.f32 %v2379_v7 }
 0x8f0   :  { %v6578_v31 = vpop.eup %6577  ;;  %v2465_v62 = vmul.f32 %v6576_v14, %v7791_v41 }
 0x8f1   :  { %v2388_v26 = vpop.xlane.xlu1 %2387  ;;  %v2464_v54 = vmul.f32 %v6578_v31, %v7793_v60 }
 0x8f2   :  { %6587 = vrcp.f32 %v2388_v26  ;;  %2486 = vrot.lane.b32.xlu0 %v2465_v62, %s6879_s20 }
 0x8f3   :  { %v6580_v59 = vpop.eup %6579  ;;  %2484 = vrot.lane.b32.xlu1 %v2464_v54, %s6879_s20 }
 0x8f4   :  { %v6582_v42 = vpop.eup %6581  ;;  %v2469_v32 = vmul.f32 %v6580_v59, %v7801_v28 }
 0x8f5   :  { %v2394_v24 = vpop.xlane.xlu1 %2393  ;;  %v2468_v13 = vmul.f32 %v6582_v42, %v7803_v47  ;;  %v2391_v46 = vpop.xlane.xlu0 %2390 }
 0x8f6   :  { %6589 = vrcp.f32 %v2394_v24 }
 0x8f7   :  { %6591 = vrcp.f32 %v2391_v46  ;;  %2617 = vrot.lane.b32.xlu0 %v2468_v13, %s6879_s20  ;;  %2619 = vrot.lane.b32.xlu1 %v2469_v32, %s6879_s20 }
 0x8f8   :  { %v6584_v41 = vpop.eup %6583 }
 0x8f9   :  { %v2406_v60 = vpop.xlane.xlu1 %2405  ;;  %v2466_v38 = vmul.f32 %v6584_v41, %v7813_v34  ;;  %v6586_v25 = vpop.eup %6585 }
 0x8fa   :  { %6593 = vrcp.f32 %v2406_v60  ;;  %v2397_v43 = vpop.xlane.xlu0 %2396  ;;  %v2467_v30 = vmul.f32 %v6586_v25, %v7811_v33 }
 0x8fb   :  { %6595 = vrcp.f32 %v2397_v43  ;;  %2488 = vrot.lane.b32.xlu0 %v2466_v38, %s6879_s20 }
 0x8fc   :  { %v6588_v28 = vpop.eup %6587 }
 0x8fd   :  { %v2470_v47 = vmul.f32 %v6588_v28, %v7821_v61 }
 0x8fe   :  { %v2409_v1 = vpop.xlane.xlu0 %2408 }
 0x8ff   :  { %6597 = vrcp.f32 %v2409_v1  ;;  %2621 = vrot.lane.b32.xlu1 %v2470_v47, %s6879_s20  ;;  %2490 = vrot.lane.b32.xlu0 %v2467_v30, %s6879_s20 }
 0x900   :  { %v6590_v17 = vpop.eup %6589 }
 0x901   :  { %v6592_v7 = vpop.eup %6591  ;;  %v2403_v34 = vpop.xlane.xlu1 %2402  ;;  %v2472_v14 = vmul.f32 %v6590_v17, %v7827_v3 }
 0x902   :  { %6599 = vrcp.f32 %v2403_v34  ;;  %v2400_v31 = vpop.xlane.xlu0 %2399  ;;  %v2471_v62 = vmul.f32 %v6592_v7, %v7829_v58 }
 0x903   :  { %6601 = vrcp.f32 %v2400_v31  ;;  %2758 = vrot.lane.b32.xlu0 %v2472_v14, %s6879_s20 }
 0x904   :  { %v6594_v61 = vpop.eup %6593  ;;  %2623 = vrot.lane.b32.xlu1 %v2471_v62, %s6879_s20 }
 0x905   :  { %v6596_v33 = vpop.eup %6595  ;;  %v2415_v26 = vpop.xlane.xlu1 %2414  ;;  %v2476_v54 = vmul.f32 %v6594_v61, %v7836_v36 }
 0x906   :  { %6603 = vrcp.f32 %v2415_v26  ;;  %v2412_v59 = vpop.xlane.xlu0 %2411  ;;  %v2473_v42 = vmul.f32 %v6596_v33, %v7838_v37  ;;  %v6267_v33 = vunpack.i.h.bf16 %v7546_v19  ;;  %v6266_v26 = vunpack.i.l.bf16 %v7546_v19 }
 0x907   :  { %6605 = vrcp.f32 %v2412_v59  ;;  %2899 = vrot.lane.b32.xlu0 %v2476_v54, %s6879_s20 }
 0x908   :  { %2760 = vrot.lane.b32.xlu1 %v2473_v42, %s6879_s20  ;;  %v6001_v19 = vpack.c.bf16 %v6267_v33, %v6266_v26 }
 0x909   :  { %v6598_v3 = vpop.eup %6597 }
 0x90a   :  { %v2477_v58 = vmul.f32 %v6598_v3, %v7844_v18 }
 0x90c   :  { %v6600_v32 = vpop.eup %6599  ;;  %2901 = vrot.lane.b32.xlu1 %v2477_v58, %s6879_s20 }
 0x90d   :  { %v6602_v24 = vpop.eup %6601  ;;  %v2475_v13 = vmul.f32 %v6600_v32, %v7850_v39  ;;  %v7980_v39 = vpop.permute.xlu0 %6299 }
 0x90e   :  { %v2474_v36 = vmul.f32 %v6602_v24, %v7848_v10 }
 0x910   :  { %v6604_v46 = vpop.eup %6603  ;;  %2764 = vrot.lane.b32.xlu1 %v2475_v13, %s6879_s20  ;;  %2762 = vrot.lane.b32.xlu0 %v2474_v36, %s6879_s20  ;;  %v6272_v13 = vunpack.i.h.bf16 %v7550_v48 }
 0x911   :  { %v6606_v37 = vpop.eup %6605  ;;  %v2479_v41 = vmul.f32 %v6604_v46, %v7858_v9  ;;  %v6271_v46 = vunpack.i.l.bf16 %v7550_v48 }
 0x912   :  { %v2478_v60 = vmul.f32 %v6606_v37, %v7854_v27  ;;  %v6282_v37 = vunpack.i.h.bf16 %v7567_v40 }
 0x914   :  { %2905 = vrot.lane.b32.xlu1 %v2479_v41, %s6879_s20  ;;  %2903 = vrot.lane.b32.xlu0 %v2478_v60, %s6879_s20 }
 0x935   :  { %v2322_v18 = vpop.xlane.xlu1 %2321 }
 0x939   :  { %v2334_v38 = vpop.xlane.xlu1 %2333 }
 0x93a   :  { %v2325_v43 = vpop.xlane.xlu0 %2324 }
 0x93b   :  { %6607 = vrcp.f32 %v2325_v43  ;;  %v6297_v43 = vunpack.i.h.bf16 %v7866_v20 }
 0x93c   :  { %6609 = vrcp.f32 %v2322_v18 }
 0x93d   :  { %v2328_v25 = vpop.xlane.xlu1 %2327  ;;  %6611 = vrcp.f32 %v2334_v38  ;;  %v6287_v38 = vunpack.i.h.bf16 %v7552_v35 }
 0x93e   :  { %v2337_v47 = vpop.xlane.xlu0 %2336 }
 0x93f   :  { %6613 = vrcp.f32 %v2337_v47  ;;  %v6017_v47 = vpack.c.bf16 %v6272_v13, %v6271_v46 }
 0x940   :  { %6615 = vrcp.f32 %v2328_v25 }
 0x941   :  { %v2331_v10 = vpop.xlane.xlu1 %2330 }
 0x942   :  { %v2349_v1 = vpop.xlane.xlu0 %2348  ;;  %6617 = vrcp.f32 %v2331_v10 }
 0x945   :  { %v2340_v28 = vpop.xlane.xlu1 %2339  ;;  %v6608_v14 = vpop.eup %6607 }
 0x946   :  { %v7982_v7 = vpop.xlane.xlu0 %2360  ;;  %v6610_v62 = vpop.eup %6609  ;;  %6619 = vrcp.f32 %v2340_v28  ;;  %v2449_v54 = vmul.f32 %v6608_v14, %v7883_v29  ;;  %v6281_v29 = vunpack.i.l.bf16 %v7567_v40  ;;  %v6286_v40 = vunpack.i.l.bf16 %v7552_v35 }
 0x947   :  { %v6612_v59 = vpop.eup %6611  ;;  %v2448_v42 = vmul.f32 %v6610_v62, %v7877_v45  ;;  %v6301_v14 = vunpack.i.l.bf16 %v7980_v39 }
 0x948   :  { %v2452_v41 = vmul.f32 %v6612_v59, %v7885_v23  ;;  %v6005_v28 = vpack.c.bf16 %v6282_v37, %v6281_v29 }
 0x949   :  { %v2343_v30 = vpop.xlane.xlu1 %2342  ;;  %v6614_v58 = vpop.eup %6613 }
 0x94a   :  { %v7984_v27 = vpop.xlane.xlu0 %2354  ;;  %v2453_v45 = vmul.f32 %v6614_v58, %v7891_v16  ;;  %v6616_v60 = vpop.eup %6615  ;;  %v6296_v16 = vunpack.i.l.bf16 %v7866_v20  ;;  %v6302_v20 = vunpack.i.h.bf16 %v7980_v39 }
 0x94c   :  { %v6618_v23 = vpop.eup %6617 }
 0x94d   :  { %v2346_v17 = vpop.xlane.xlu1 %2345  ;;  %v2451_v62 = vmul.f32 %v6618_v23, %v7900_v12  ;;  %v3107_v23 = vld [vmem:[#allocation4 + $0x180] sm:$0xff] }
 0x94e   :  { %v7988_v31 = vpop.xlane.xlu0 %2366  ;;  %6621 = vrcp.f32 %v2346_v17 }
 0x94f   :  { %6623 = vrcp.f32 %v2343_v30 }
 0x950   :  { %v6620_v30 = vpop.eup %6619 }
 0x951   :  { %v2358_v9 = vpop.xlane.xlu1 %2357 }
 0x952   :  { %6625 = vrcp.f32 %v2358_v9  ;;  %v6021_v9 = vpack.c.bf16 %v6287_v38, %v6286_v40 }
 0x953   :  { %6627 = vrcp.f32 %v2349_v1  ;;  %v6009_v1 = vpack.c.bf16 %v6297_v43, %v6296_v16  ;;  %v3106_v16 = vld [vmem:[#allocation4 + $0x170] sm:$0xff] }
 0x954   :  { %6629 = vrcp.f32 %v7982_v7 }
 0x955   :  { %v7986_v34 = vpop.xlane.xlu1 %2351  ;;  %6631 = vrcp.f32 %v7984_v27 }
 0x956   :  { %6633 = vrcp.f32 %v7986_v34 }
 0x957   :  { %6635 = vrcp.f32 %v7988_v31 }
 0x959   :  { %v7990_v61 = vpop.xlane.xlu1 %2363 }
 0x95a   :  { %6637 = vrcp.f32 %v7990_v61 }
 0x964   :  { %v2487_v3 = vpop.permute.xlu0 %2486 }
 0x965   :  { %v2485_v32 = vpop.permute.xlu1 %2484  ;;  %v2497_v24 = vsel %vm608_vm1, %v2449_v54, %v2487_v3 }
 0x966   :  { %v2496_v36 = vsel %vm608_vm1, %v2448_v42, %v2485_v32 }
 0x967   :  { %5613 = vmatprep.mubr.msk.f32.mxu1 %vm981_vm2, %v2496_v36 }
 0x968   :  { %5614 = vmatmul.mubr.msk.f32.vlgmr.msra.gmra.mrb[22].mxu1 %vm981_vm2, %v2497_v24 }
 0x969   :  { %6000 = vmatpush3.bf16.msra.mxu1 %v7541_v53  ;;  %v2620_v18 = vpop.permute.xlu1 %2619  ;;  %v2618_v48 = vpop.permute.xlu0 %2617  ;;  %v2450_v53 = vmul.f32 %v6616_v60, %v7895_v22  ;;  %v2454_v22 = vmul.f32 %v6620_v30, %v7909_v44  ;;  %v6025_v44 = vpack.c.bf16 %v6302_v20, %v6301_v14  ;;  %v3108_v30 = vld [vmem:[#allocation4 + $0x190] sm:$0xff] }
 0x96a   :  { %v2630_v25 = vsel %vm608_vm1, %v2453_v45, %v2620_v18  ;;  %6002 = vmatprep.subr.bf16.mxu1 %v6001_v19  ;;  %v2629_v10 = vsel %vm608_vm1, %v2452_v41, %v2618_v48  ;;  %v3110_v20 = vld [vmem:[#allocation4 + $0x1b0] sm:$0xff] }
 0x96b   :  { %5635 = vmatprep.mubr.msk.f32.mxu0 %vm981_vm2, %v2629_v10 }
 0x96c   :  { %5636 = vmatmul.mubr.msk.f32.vlgmr.msra.gmra.mrb[12].mxu0 %vm981_vm2, %v2630_v25 }
 0x96d   :  { %6004 = vmatpush3.bf16.msra.mxu1 %v6001_v19  ;;  %6016 = vmatpush3.bf16.msra.mxu0 %v7556_v49  ;;  %v2489_v35 = vpop.permute.xlu0 %2488  ;;  %v6622_v49 = vpop.eup %6621 }
 0x96e   :  { %v2498_v17 = vsel %vm608_vm1, %v2450_v53, %v2489_v35  ;;  %6006 = vmatprep.subr.bf16.mxu1 %v6005_v28  ;;  %6018 = vmatprep.subr.bf16.mxu0 %v6017_v47  ;;  %v6624_v54 = vpop.eup %6623  ;;  %v2456_v12 = vmul.f32 %v6622_v49, %v7926_v15  ;;  %v6029_v53 = vpack.c.bf16 %v3107_v23, %v3106_v16  ;;  %v3113_v49 = vld [vmem:[#allocation4 + $0x1e0] sm:$0xff] }
 0x96f   :  { %5616 = vmatprep.mubr.msk.f32.mxu1 %vm981_vm2, %v2498_v17  ;;  %v6626_v39 = vpop.eup %6625  ;;  %v2455_v7 = vmul.f32 %v6624_v54, %v7918_v52 }
 0x970   :  { %v6628_v58 = vpop.eup %6627  ;;  %v2460_v15 = vmul.f32 %v6626_v39, %v7934_v11 }
 0x971   :  { %6008 = vmatpush3.bf16.msra.mxu1 %v6005_v28  ;;  %6020 = vmatpush3.bf16.msra.mxu0 %v6017_v47  ;;  %v2622_v33 = vpop.permute.xlu1 %2621  ;;  %v2491_v26 = vpop.permute.xlu0 %2490  ;;  %v2457_v52 = vmul.f32 %v6628_v58, %v7904_v21 }
 0x972   :  { %v2631_v59 = vsel %vm608_vm1, %v2454_v22, %v2622_v33  ;;  %v2499_v42 = vsel %vm608_vm1, %v2451_v62, %v2491_v26  ;;  %6010 = vmatprep.subr.bf16.mxu1 %v6009_v1  ;;  %6022 = vmatprep.subr.bf16.mxu0 %v6021_v9  ;;  %v6630_v13 = vpop.eup %6629  ;;  %v3112_v62 = vld [vmem:[#allocation4 + $0x1d0] sm:$0xff] }
 0x973   :  { %5617 = vmatmul.mubr.msk.f32.gmra.mrb[24].mxu1 %vm981_vm2, %v2499_v42  ;;  %5638 = vmatprep.mubr.msk.f32.mxu0 %vm981_vm2, %v2631_v59  ;;  %v6632_v37 = vpop.eup %6631  ;;  %v2461_v61 = vmul.f32 %v6630_v13, %v7913_v57  ;;  %v6041_v33 = vpack.c.bf16 %v3113_v49, %v3112_v62 }
 0x974   :  { %v6634_v19 = vpop.eup %6633  ;;  %v2459_v45 = vmul.f32 %v6632_v37, %v7922_v0 }
 0x975   :  { %6012 = vmatpush3.bf16.msra.mxu1 %v6009_v1  ;;  %6024 = vmatpush3.bf16.msra.mxu0 %v6021_v9  ;;  %v2759_v3 = vpop.permute.xlu0 %2758  ;;  %v6636_v21 = vpop.eup %6635  ;;  %v2458_v41 = vmul.f32 %v6634_v19, %v7940_v50  ;;  %v3111_v1 = vld [vmem:[#allocation4 + $0x1c0] sm:$0xff] }
 0x976   :  { %v2624_v32 = vpop.permute.xlu1 %2623  ;;  %v2770_v24 = vsel %vm608_vm1, %v2456_v12, %v2759_v3  ;;  %6026 = vmatprep.subr.bf16.mxu0 %v6025_v44  ;;  %v6638_v60 = vpop.eup %6637  ;;  %v2463_v57 = vmul.f32 %v6636_v21, %v7930_v51  ;;  %6030 = vmatprep.subr.bf16.mxu1 %v6029_v53  ;;  %v6037_v9 = vpack.c.bf16 %v3111_v1, %v3110_v20 }
 0x977   :  { %v2632_v27 = vsel %vm608_vm1, %v2455_v7, %v2624_v32  ;;  %5657 = vmatprep.mubr.msk.f32.mxu1 %vm981_vm2, %v2770_v24  ;;  %v2462_v10 = vmul.f32 %v6638_v60, %v7944_v5  ;;  %v3109_v5 = vld [vmem:[#allocation4 + $0x1a0] sm:$0xff] }
 0x978   :  { %5639 = vmatmul.mubr.msk.f32.gmra.mrb[14].mxu0 %vm981_vm2, %v2632_v27  ;;  %v6033_v17 = vpack.c.bf16 %v3109_v5, %v3108_v30 }
 0x979   :  { %6028 = vmatpush3.bf16.msra.mxu0 %v6025_v44  ;;  %v2900_v34 = vpop.permute.xlu0 %2899 }
 0x97a   :  { %v2761_v36 = vpop.permute.xlu1 %2760  ;;  %v2911_v46 = vsel %vm608_vm1, %v2460_v15, %v2900_v34 }
 0x97b   :  { %v2771_v31 = vsel %vm608_vm1, %v2457_v52, %v2761_v36  ;;  %5679 = vmatprep.mubr.msk.f32.mxu0 %vm981_vm2, %v2911_v46  ;;  %v1597_v36 = vld [vmem:[#allocation4 + $0x160] ss:$0 sm:$0xff] }
 0x97c   :  { %5658 = vmatmul.mubr.msk.f32.vlgmr.msra.gmra.mrb[26].mxu1 %vm981_vm2, %v2771_v31 }
 0x97d   :  { %6032 = vmatpush3.bf16.msra.mxu1 %v6029_v53 }
 0x97e   :  { %v2902_v29 = vpop.permute.xlu1 %2901  ;;  %6034 = vmatprep.subr.bf16.mxu1 %v6033_v17 }
 0x97f   :  { %v2912_v11 = vsel %vm608_vm1, %v2461_v61, %v2902_v29 }
 0x980   :  { %5680 = vmatmul.mubr.msk.f32.vlgmr.msra.gmra.mrb[16].mxu0 %vm981_vm2, %v2912_v11 }
 0x981   :  { %6036 = vmatpush3.bf16.msra.mxu1 %v6033_v17 }
 0x982   :  { %v2765_v18 = vpop.permute.xlu1 %2764  ;;  %v2763_v48 = vpop.permute.xlu0 %2762  ;;  %6038 = vmatprep.subr.bf16.mxu1 %v6037_v9 }
 0x983   :  { %v2773_v38 = vsel %vm608_vm1, %v2459_v45, %v2765_v18  ;;  %v2772_v25 = vsel %vm608_vm1, %v2458_v41, %v2763_v48 }
 0x984   :  { %5660 = vmatprep.mubr.msk.f32.mxu1 %vm981_vm2, %v2772_v25 }
 0x985   :  { %5661 = vmatmul.mubr.msk.f32.gmra.mrb[28].mxu1 %vm981_vm2, %v2773_v38 }
 0x986   :  { %v2906_v40 = vpop.permute.xlu1 %2905  ;;  %v2904_v43 = vpop.permute.xlu0 %2903  ;;  %6040 = vmatpush3.bf16.msra.mxu1 %v6037_v9 }
 0x987   :  { %v2914_v0 = vsel %vm608_vm1, %v2463_v57, %v2906_v40  ;;  %v2913_v50 = vsel %vm608_vm1, %v2462_v10, %v2904_v43  ;;  %6042 = vmatprep.subr.bf16.mxu1 %v6041_v33 }
 0x988   :  { %5682 = vmatprep.mubr.msk.f32.mxu0 %vm981_vm2, %v2913_v50 }
 0x989   :  { %5683 = vmatmul.mubr.msk.f32.gmra.mrb[18].mxu0 %vm981_vm2, %v2914_v0 }
 0x98a   :  { %6044 = vmatpush3.bf16.msra.mxu1 %v6041_v33 }
 0xa3b   :  { %v5615_v28 = vpop.f32.mrb[22].mxu1 }
 0xa3c   :  { %v2594_v47 = vpop.f32.mrb[23].mxu1 }
 0xa3f   :  { %v5637_v51 = vpop.f32.mrb[12].mxu0 }
 0xa40   :  { %3042 = vrot.lane.b32.xlu1 %v5637_v51, %s6876_s9  ;;  %v2735_v35 = vpop.f32.mrb[13].mxu0 }
 0xa41   :  { %3040 = vrot.lane.b32.xlu0 %v2735_v35, %s6876_s9 }
 0xa46   :  { %v5618_v14 = vpop.f32.mrb[24].mxu1 }
 0xa47   :  { %v2604_v22 = vpop.f32.mrb[25].mxu1 }
 0xa4b   :  { %v5640_v26 = vpop.f32.mrb[14].mxu0 }
 0xa4c   :  { %3046 = vrot.lane.b32.xlu1 %v5640_v26, %s6876_s9  ;;  %v2745_v54 = vpop.f32.mrb[15].mxu0 }
 0xa4d   :  { %3044 = vrot.lane.b32.xlu0 %v2745_v54, %s6876_s9 }
 0xa4f   :  { %v5659_v59 = vpop.f32.mrb[26].mxu1 }
 0xa50   :  { %v2876_v42 = vpop.f32.mrb[27].mxu1  ;;  %3058 = vrot.lane.b32.xlu1 %v5659_v59, %s6879_s20 }
 0xa51   :  { %3056 = vrot.lane.b32.xlu0 %v2876_v42, %s6879_s20 }
 0xa53   :  { %v5681_v12 = vpop.f32.mrb[16].mxu0 }
 0xa54   :  { %3074 = vrot.lane.b32.xlu1 %v5681_v12, %s6884_s24  ;;  %v3017_v44 = vpop.f32.mrb[17].mxu0 }
 0xa55   :  { %3072 = vrot.lane.b32.xlu0 %v3017_v44, %s6884_s24 }
 0xa58   :  { %v5662_v39 = vpop.f32.mrb[28].mxu1 }
 0xa59   :  { %v2886_v7 = vpop.f32.mrb[29].mxu1  ;;  %3062 = vrot.lane.b32.xlu1 %v5662_v39, %s6879_s20 }
 0xa5a   :  { %3060 = vrot.lane.b32.xlu0 %v2886_v7, %s6879_s20 }
 0xa5c   :  { %v5684_v3 = vpop.f32.mrb[18].mxu0 }
 0xa5d   :  { %3078 = vrot.lane.b32.xlu1 %v5684_v3, %s6884_s24  ;;  %v3027_v58 = vpop.f32.mrb[19].mxu0 }
 0xa5e   :  { %3076 = vrot.lane.b32.xlu0 %v3027_v58, %s6884_s24 }
 0xab2   :  { %v3043_v32 = vpop.permute.xlu1 %3042 }
 0xab3   :  { %v3041_v24 = vpop.permute.xlu0 %3040  ;;  %v3086_v13 = vsel %vm3084_vm4, %v5615_v28, %v3043_v32 }
 0xab4   :  { %v3085_v46 = vsel %vm3084_vm4, %v2594_v47, %v3041_v24  ;;  %v3114_v47 = vld [vmem:[#allocation4 + $0x1f0] sm:$0xff] }
 0xab5   :  { %5715 = vmatprep.mubr.msk.f32.mxu0 %vm981_vm2, %v3114_v47 }
 0xabe   :  { %v3047_v27 = vpop.permute.xlu1 %3046 }
 0xabf   :  { %v3045_v15 = vpop.permute.xlu0 %3044  ;;  %v3088_v38 = vsel %vm3084_vm4, %v5618_v14, %v3047_v27 }
 0xac0   :  { %v3087_v25 = vsel %vm3084_vm4, %v2604_v22, %v3045_v15  ;;  %v3115_v22 = vld [vmem:[#allocation4 + $0x200] sm:$0xff] }
 0xac2   :  { %v3059_v52 = vpop.permute.xlu1 %3058 }
 0xac3   :  { %v3057_v34 = vpop.permute.xlu0 %3056  ;;  %v3090_v31 = vsel %vm608_vm1, %v3086_v13, %v3059_v52 }
 0xac4   :  { %v3089_v61 = vsel %vm608_vm1, %v3085_v46, %v3057_v34 }
 0xac6   :  { %v3075_v37 = vpop.permute.xlu1 %3074 }
 0xac7   :  { %v3095_v19 = vsel %vm3093_vm5, %v3090_v31, %v3075_v37  ;;  %v3073_v29 = vpop.permute.xlu0 %3072 }
 0xac8   :  { %v3099_v11 = vadd.f32 %v3095_v19, %v1597_v36  ;;  %v3094_v21 = vsel %vm3093_vm5, %v3089_v61, %v3073_v29 }
 0xac9   :  { %v3098_v45 = vadd.f32 %v3094_v21, %v1597_v36 }
 0xaca   :  { %v3103_v18 = vmax.f32 %v3099_v11, 0.0 }
 0xacb   :  { %v3102_v41 = vmax.f32 %v3098_v45, 0.0  ;;  %v3063_v60 = vpop.permute.xlu1 %3062 }
 0xacc   :  { %v3061_v48 = vpop.permute.xlu0 %3060  ;;  %v3092_v57 = vsel %vm608_vm1, %v3088_v38, %v3063_v60 }
 0xacd   :  { %5701 = vmatprep.mubr.msk.f32.mxu1 %vm981_vm2, %v3102_v41  ;;  %v3091_v40 = vsel %vm608_vm1, %v3087_v25, %v3061_v48 }
 0xace   :  { %5702 = vmatmul.mubr.msk.f32.vlgmr.msra.gmra.mrb[30].mxu1 %vm981_vm2, %v3103_v18 }
 0xacf   :  { %v3079_v10 = vpop.permute.xlu1 %3078 }
 0xad0   :  { %v3097_v43 = vsel %vm3093_vm5, %v3092_v57, %v3079_v10  ;;  %v3077_v0 = vpop.permute.xlu0 %3076 }
 0xad1   :  { %v3101_v50 = vadd.f32 %v3097_v43, %v1597_v36  ;;  %v3096_v16 = vsel %vm3093_vm5, %v3091_v40, %v3077_v0  ;;  %v8742_v0 = vld [vmem:[#allocation8_spill] sm:$0xff] }
 0xad2   :  { %v3100_v23 = vadd.f32 %v3096_v16, %v1597_v36 }
 0xad3   :  { %v3105_v28 = vmax.f32 %v3101_v50, 0.0 }
 0xad4   :  { %v3104_v53 = vmax.f32 %v3100_v23, 0.0  ;;  %v8743_v23 = vld [vmem:[#allocation9_spill] sm:$0xff] }
 0xad6   :  { %5704 = vmatprep.mubr.msk.f32.mxu1 %vm981_vm2, %v3104_v53 }
 0xad7   :  { %5705 = vmatmul.mubr.msk.f32.gmra.mrb[32].mxu1 %vm981_vm2, %v3105_v28 }
 0xba1   :  { %v5703_v51 = vpop.f32.mrb[30].mxu1 }
 0xba2   :  { %v3195_v30 = vpop.f32.mrb[31].mxu1 }
 0xba3   :  { %v6045_v35 = vpack.c.bf16 %v5703_v51, %v3195_v30  ;;  %v6303_v17 = vpack.i.bf16 %v5703_v51, %v3195_v30 }
 0xba5   :  { %6047 = vmatprep.subr.msk.bf16.mxu0 %vm8086_vm6, %v6045_v35  ;;  %6058 = vmatprep.subr.bf16.mxu1 %v6045_v35 }
 0xba6   :  { %6304 = vrot.lane.b32.xlu1 %v6303_v17, %s6878_s19  ;;  %6309 = vrot.lane.b32.xlu0 %v6303_v17, %s6885_s25 }
 0xba7   :  { %6050 = vmatpush3.bf16.xpose.msk.msra.mxu0 %vm8086_vm6, %v6045_v35  ;;  %6060 = vmatpush3.bf16.msra.mxu1 %v6045_v35 }
 0xbaa   :  { %6314 = vrot.lane.b32.xlu0 %v6303_v17, %s6882_s21  ;;  %v5706_v20 = vpop.f32.mrb[32].mxu1 }
 0xbab   :  { %v3205_v1 = vpop.f32.mrb[33].mxu1 }
 0xbac   :  { %v6328_v9 = vpack.i.bf16 %v5706_v20, %v3205_v1  ;;  %v6051_v14 = vpack.c.bf16 %v5706_v20, %v3205_v1 }
 0xbae   :  { %6319 = vrot.lane.b32.xlu0 %v6303_v17, %s6886_s26  ;;  %6329 = vrot.lane.b32.xlu1 %v6328_v9, %s6885_s25 }
 0xbaf   :  { %6053 = vmatprep.subr.msk.bf16.mxu0 %vm8086_vm6, %v6051_v14  ;;  %6062 = vmatprep.subr.bf16.mxu1 %v6051_v14 }
 0xbb0   :  { %6056 = vmatpush3.bf16.xpose.msk.msra.mxu0 %vm8086_vm6, %v6051_v14  ;;  %6064 = vmatpush3.bf16.msra.mxu1 %v6051_v14 }
 0xbb2   :  { %6324 = vrot.lane.b32.xlu0 %v6328_v9, %s6878_s19  ;;  %6339 = vrot.lane.b32.xlu1 %v6328_v9, %s6886_s26 }
 0xbb6   :  { %6334 = vrot.lane.b32.xlu0 %v6328_v9, %s6882_s21 }
 0xbb7   :  { %5716 = vmatmul.mubr.msk.f32.vlgmr.msra.gmra.mrb[20].mxu0 %vm981_vm2, %v3115_v22 }
 0xc18   :  { %v6305_v62 = vpop.permute.xlu1 %6304  ;;  %v6310_v49 = vpop.permute.xlu0 %6309 }
 0xc19   :  { %v6307_v33 = vunpack.i.h.bf16 %v6305_v62  ;;  %v6306_v26 = vunpack.i.l.bf16 %v6305_v62  ;;  %v6312_v54 = vunpack.i.h.bf16 %v6310_v49  ;;  %v6311_v59 = vunpack.i.l.bf16 %v6310_v49  ;;  %6354 = vrot.lane.b32.xlu1 %v6305_v62, %s6886_s26  ;;  %6344 = vrot.lane.b32.xlu0 %v6305_v62, %s6885_s25 }
 0xc1b   :  { %v6065_v42 = vpack.c.bf16 %v6307_v33, %v6306_v26  ;;  %v6073_v12 = vpack.c.bf16 %v6312_v54, %v6311_v59 }
 0xc1c   :  { %v6315_v44 = vpop.permute.xlu0 %6314 }
 0xc1d   :  { %6066 = vmatprep.subr.bf16.mxu1 %v6065_v42  ;;  %6074 = vmatprep.subr.bf16.mxu0 %v6073_v12  ;;  %v6317_v27 = vunpack.i.h.bf16 %v6315_v44  ;;  %v6316_v15 = vunpack.i.l.bf16 %v6315_v44 }
 0xc1e   :  { %6068 = vmatpush3.bf16.msra.mxu1 %v6065_v42  ;;  %6076 = vmatpush3.bf16.msra.mxu0 %v6073_v12  ;;  %v8150_v12 = vld [vmem:[#allocation2 + $0x20] sm:$0xff] }
 0xc1f   :  { %6349 = vrot.lane.b32.xlu0 %v6305_v62, %s6882_s21  ;;  %v8116_v36 = vpack.c.bf16 %v6317_v27, %v6316_v15 }
 0xc20   :  { %v6320_v39 = vpop.permute.xlu0 %6319  ;;  %v6330_v7 = vpop.permute.xlu1 %6329 }
 0xc21   :  { %v6332_v3 = vunpack.i.h.bf16 %v6330_v7  ;;  %v6331_v58 = vunpack.i.l.bf16 %v6330_v7  ;;  %v6321_v48 = vunpack.i.l.bf16 %v6320_v39 }
 0xc23   :  { %v6077_v32 = vpack.c.bf16 %v6332_v3, %v6331_v58 }
 0xc24   :  { %v8110_v24 = vpop.permute.xlu0 %6324  ;;  %v8125_v45 = vpop.permute.xlu1 %6339 }
 0xc25   :  { %v6327_v52 = vunpack.i.h.bf16 %v8110_v24  ;;  %v6326_v34 = vunpack.i.l.bf16 %v8110_v24  ;;  %6078 = vmatprep.subr.bf16.mxu0 %v6077_v32  ;;  %6359 = vrot.lane.b32.xlu1 %v8110_v24, %s6885_s25 }
 0xc26   :  { %6080 = vmatpush3.bf16.msra.mxu0 %v6077_v32 }
 0xc27   :  { %v6069_v13 = vpack.c.bf16 %v6327_v52, %v6326_v34 }
 0xc28   :  { %v8121_v31 = vpop.permute.xlu0 %6334 }
 0xc29   :  { %6070 = vmatprep.subr.bf16.mxu1 %v6069_v13 }
 0xc2a   :  { %6072 = vmatpush3.bf16.msra.mxu1 %v6069_v13 }
 0xc2b   :  { %6090 = vmatprep.subr.bf16.mxu1 %v8116_v36 }
 0xc8a   :  { %v8119_v46 = vpop.f32.mrb[20].mxu0 }
 0xc8b   :  { %v3298_v37 = vpop.f32.mrb[21].mxu0  ;;  %v6345_v19 = vpop.permute.xlu0 %6344  ;;  %v3460_v16 = vcombine.high %v8119_v46, %v8119_v46 }
 0xc8c   :  { %v3386_v61 = vrot.slane %v3298_v37, %v6982_v56  ;;  %v6347_v29 = vunpack.i.h.bf16 %v6345_v19  ;;  %v3405_v11 = vrot.slane %v3298_v37, %v6980_v55  ;;  %v6346_v21 = vunpack.i.l.bf16 %v6345_v19  ;;  %v8127_v60 = vpop.permute.xlu1 %6354 }
 0xc8d   :  { %v6322_v56 = vunpack.i.h.bf16 %v6320_v39  ;;  %v3424_v55 = vrot.slane %v3298_v37, %v6988_v63  ;;  %v3443_v10 = vrot.slane %v3298_v37, %v6991_v2  ;;  %v3310_v43 = vrot.slane %v3298_v37, %v6994_v4  ;;  %v8155_v39 = vld [vmem:[#allocation2 + $0x28] sm:$0xff] }
 0xc8e   :  { %3388 = vbcast.lane.b32.xlu0 %v3386_v61, 256  ;;  %3392 = vbcast.lane.b32.xlu1 %v3386_v61, 264  ;;  %v6081_v41 = vpack.c.bf16 %v6347_v29, %v6346_v21  ;;  %v3329_v63 = vrot.slane %v3298_v37, %v6997_v6  ;;  %v3348_v2 = vrot.slane %v3298_v37, %v7000_v8 }
 0xc8f   :  { %v8131_v40 = vpack.c.bf16 %v6322_v56, %v6321_v48  ;;  %v3367_v50 = vrot.slane %v3298_v37, %v8742_v0  ;;  %v3474_v53 = vrot.slane %v3460_v16, %v8743_v23  ;;  %v8182_v16 = vld [vmem:[#allocation2 + $0x38] sm:$0xff] }
 0xc90   :  { %6082 = vmatprep.subr.bf16.mxu0 %v6081_v41 }
 0xc91   :  { %6084 = vmatpush3.bf16.msra.mxu0 %v6081_v41  ;;  %v3476_v28 = vcombine.high %v3474_v53, %v3474_v53  ;;  %v3490_v47 = vrot.slane %v3474_v53, %v8743_v23  ;;  %v8142_v51 = vpop.permute.xlu0 %6349 }
 0xc92   :  { %3407 = vbcast.lane.b32.xlu0 %v3405_v11, 256  ;;  %3411 = vbcast.lane.b32.xlu1 %v3405_v11, 264 }
 0xc93   :  { %v8145_v8 = vrot.slane %v3476_v28, %v8743_v23  ;;  %v3528_v30 = vrot.slane %v3490_v47, %v6994_v4  ;;  %v3506_v37 = vcombine.high %v3490_v47, %v3490_v47 }
 0xc95   :  { %v3532_v14 = vrot.slane %v8145_v8, %v6994_v4 }
 0xc96   :  { %3396 = vbcast.lane.b32.xlu0 %v3386_v61, 272  ;;  %3400 = vbcast.lane.b32.xlu1 %v3386_v61, 280 }
 0xc97   :  { %v6360_v18 = vpop.permute.xlu1 %6359 }
 0xc98   :  { %v6362_v38 = vunpack.i.h.bf16 %v6360_v18  ;;  %v6361_v25 = vunpack.i.l.bf16 %v6360_v18 }
 0xc9a   :  { %3415 = vbcast.lane.b32.xlu0 %v3405_v11, 272  ;;  %3419 = vbcast.lane.b32.xlu1 %v3405_v11, 280  ;;  %v6085_v57 = vpack.c.bf16 %v6362_v38, %v6361_v25 }
 0xc9c   :  { %6086 = vmatprep.subr.bf16.mxu0 %v6085_v57 }
 0xc9d   :  { %6088 = vmatpush3.bf16.msra.mxu0 %v6085_v57  ;;  %v3508_v57 = vcombine.high %v8145_v8, %v8145_v8 }
 0xc9e   :  { %3426 = vbcast.lane.b32.xlu0 %v3424_v55, 256  ;;  %3430 = vbcast.lane.b32.xlu1 %v3424_v55, 264 }
 0xc9f   :  { %6106 = vmatprep.subr.bf16.mxu0 %v8131_v40 }
 0xca2   :  { %3445 = vbcast.lane.b32.xlu0 %v3443_v10, 256  ;;  %3449 = vbcast.lane.b32.xlu1 %v3443_v10, 264 }
 0xca6   :  { %3434 = vbcast.lane.b32.xlu0 %v3424_v55, 272  ;;  %3438 = vbcast.lane.b32.xlu1 %v3424_v55, 280 }
 0xcaa   :  { %3453 = vbcast.lane.b32.xlu0 %v3443_v10, 272  ;;  %3457 = vbcast.lane.b32.xlu1 %v3443_v10, 280 }
 0xcae   :  { %3312 = vbcast.lane.b32.xlu0 %v3310_v43, 256  ;;  %3316 = vbcast.lane.b32.xlu1 %v3310_v43, 264 }
 0xcb2   :  { %3331 = vbcast.lane.b32.xlu0 %v3329_v63, 256  ;;  %3335 = vbcast.lane.b32.xlu1 %v3329_v63, 264 }
 0xcb6   :  { %3320 = vbcast.lane.b32.xlu0 %v3310_v43, 272  ;;  %3324 = vbcast.lane.b32.xlu1 %v3310_v43, 280  ;;  %v3536_v43 = vrot.slane %v3506_v37, %v6994_v4 }
 0xcba   :  { %3339 = vbcast.lane.b32.xlu0 %v3329_v63, 272  ;;  %3343 = vbcast.lane.b32.xlu1 %v3329_v63, 280  ;;  %v8177_v63 = vld [vmem:[#allocation2 + $0x30] sm:$0xff] }
 0xcbe   :  { %3350 = vbcast.lane.b32.xlu0 %v3348_v2, 256  ;;  %3354 = vbcast.lane.b32.xlu1 %v3348_v2, 264 }
 0xcc2   :  { %3369 = vbcast.lane.b32.xlu0 %v3367_v50, 256  ;;  %3373 = vbcast.lane.b32.xlu1 %v3367_v50, 264 }
 0xcc6   :  { %3362 = vbcast.lane.b32.xlu0 %v3348_v2, 280  ;;  %3358 = vbcast.lane.b32.xlu1 %v3348_v2, 272 }
 0xcca   :  { %3381 = vbcast.lane.b32.xlu0 %v3367_v50, 280  ;;  %3377 = vbcast.lane.b32.xlu1 %v3367_v50, 272 }
 0xd00   :  { %v3389_v5 = vpop.permute.xlu0 %3388  ;;  %v3393_v35 = vpop.permute.xlu1 %3392 }
 0xd01   :  { %v3565_v17 = vadd.f32 %v3528_v30, %v3389_v5  ;;  %v3566_v20 = vadd.f32 %v3528_v30, %v3393_v35 }
 0xd03   :  { %v3597_v1 = vmul.f32 0.2, %v3565_v17  ;;  %v3598_v9 = vmul.f32 0.2, %v3566_v20 }
 0xd04   :  { %v3408_v22 = vpop.permute.xlu0 %3407  ;;  %v3412_v62 = vpop.permute.xlu1 %3411 }
 0xd05   :  { %v3629_v49 = vmax.f32 %v3565_v17, %v3597_v1  ;;  %v3630_v33 = vmax.f32 %v3566_v20, %v3598_v9  ;;  %v3569_v26 = vadd.f32 %v3532_v14, %v3408_v22  ;;  %v3570_v54 = vadd.f32 %v3532_v14, %v3412_v62 }
 0xd06   :  { %v3540_v1 = vrot.slane %v3508_v57, %v6994_v4 }
 0xd07   :  { %v3601_v59 = vmul.f32 0.2, %v3569_v26  ;;  %v3602_v42 = vmul.f32 0.2, %v3570_v54  ;;  %v8153_v44 = vadd.f32 %v8150_v12, %v3629_v49  ;;  %v8158_v7 = vadd.f32 %v8155_v39, %v3630_v33 }
 0xd08   :  { %v3397_v3 = vpop.permute.xlu0 %3396  ;;  %v3401_v15 = vpop.permute.xlu1 %3400 }
 0xd09   :  { %v3633_v58 = vmax.f32 %v3569_v26, %v3601_v59  ;;  %v3634_v32 = vmax.f32 %v3570_v54, %v3602_v42  ;;  %v3567_v27 = vadd.f32 %v3528_v30, %v3397_v3  ;;  %v3725_v52 = vsel %vm608_vm1, %v8153_v44, -inf }
 0xd0a   :  { %v3568_v34 = vadd.f32 %v3528_v30, %v3401_v15  ;;  %3726 = vmax.xlane.f32.xlu0 %v3725_v52  ;;  %v3728_v13 = vsel %vm608_vm1, %v8158_v7, -inf }
 0xd0b   :  { %v3599_v61 = vmul.f32 0.2, %v3567_v27  ;;  %3729 = vmax.xlane.f32.xlu1 %v3728_v13  ;;  %v8165_v19 = vadd.f32 %v8150_v12, %v3633_v58  ;;  %v8168_v29 = vadd.f32 %v8155_v39, %v3634_v32  ;;  %v3467_v32 = vrot.slane %v8119_v46, %v8743_v23 }
 0xd0c   :  { %v3600_v11 = vmul.f32 0.2, %v3568_v34  ;;  %v3416_v21 = vpop.permute.xlu0 %3415  ;;  %v3420_v18 = vpop.permute.xlu1 %3419 }
 0xd0d   :  { %v3631_v41 = vmax.f32 %v3567_v27, %v3599_v61  ;;  %v3571_v56 = vadd.f32 %v3532_v14, %v3416_v21  ;;  %v3737_v48 = vsel %vm608_vm1, %v8165_v19, -inf  ;;  %v3740_v38 = vsel %vm608_vm1, %v8168_v29, -inf }
 0xd0e   :  { %v3632_v25 = vmax.f32 %v3568_v34, %v3600_v11  ;;  %v3572_v55 = vadd.f32 %v3532_v14, %v3420_v18  ;;  %3738 = vmax.xlane.f32.xlu0 %v3737_v48  ;;  %v3475_v18 = vcombine.high %v3467_v32, %v3467_v32  ;;  %v3483_v48 = vrot.slane %v3467_v32, %v8743_v23 }
 0xd0f   :  { %v3603_v10 = vmul.f32 0.2, %v3571_v56  ;;  %3741 = vmax.xlane.f32.xlu1 %v3740_v38  ;;  %v8180_v2 = vadd.f32 %v8177_v63, %v3631_v41 }
 0xd10   :  { %v3604_v0 = vmul.f32 0.2, %v3572_v55  ;;  %v3427_v50 = vpop.permute.xlu0 %3426  ;;  %v8185_v53 = vadd.f32 %v8182_v16, %v3632_v25  ;;  %v3431_v30 = vpop.permute.xlu1 %3430 }
 0xd11   :  { %v3635_v28 = vmax.f32 %v3571_v56, %v3603_v10  ;;  %v3573_v47 = vadd.f32 %v3536_v43, %v3427_v50  ;;  %v3731_v8 = vsel %vm608_vm1, %v8180_v2, -inf  ;;  %v3574_v35 = vadd.f32 %v3536_v43, %v3431_v30 }
 0xd12   :  { %v3636_v5 = vmax.f32 %v3572_v55, %v3604_v0  ;;  %3732 = vmax.xlane.f32.xlu0 %v3731_v8  ;;  %v3734_v17 = vsel %vm608_vm1, %v8185_v53, -inf  ;;  %v3497_v8 = vrot.slane %v3475_v18, %v8743_v23 }
 0xd13   :  { %v3605_v20 = vmul.f32 0.2, %v3573_v47  ;;  %3735 = vmax.xlane.f32.xlu1 %v3734_v17  ;;  %v8193_v9 = vadd.f32 %v8177_v63, %v3635_v28  ;;  %v3606_v14 = vmul.f32 0.2, %v3574_v35 }
 0xd14   :  { %v3446_v22 = vpop.permute.xlu0 %3445  ;;  %v3450_v33 = vpop.permute.xlu1 %3449  ;;  %v8198_v54 = vadd.f32 %v8182_v16, %v3636_v5  ;;  %v8228_v5 = vrot.slane %v3483_v48, %v6994_v4 }
 0xd15   :  { %v3637_v62 = vmax.f32 %v3573_v47, %v3605_v20  ;;  %v3577_v49 = vadd.f32 %v3540_v1, %v3446_v22  ;;  %v3743_v26 = vsel %vm608_vm1, %v8193_v9, -inf  ;;  %v3638_v59 = vmax.f32 %v3574_v35, %v3606_v14 }
 0xd16   :  { %v3578_v42 = vadd.f32 %v3540_v1, %v3450_v33  ;;  %3744 = vmax.xlane.f32.xlu0 %v3743_v26  ;;  %v3746_v11 = vsel %vm608_vm1, %v8198_v54, -inf  ;;  %v8244_v26 = vrot.slane %v3497_v8, %v6994_v4 }
 0xd17   :  { %v3609_v3 = vmul.f32 0.2, %v3577_v49  ;;  %v8201_v58 = vadd.f32 %v8150_v12, %v3637_v62  ;;  %v8206_v52 = vadd.f32 %v8155_v39, %v3638_v59 }
 0xd18   :  { %v3610_v27 = vmul.f32 0.2, %v3578_v42  ;;  %v3435_v15 = vpop.permute.xlu0 %3434  ;;  %v3439_v37 = vpop.permute.xlu1 %3438 }
 0xd19   :  { %v3641_v34 = vmax.f32 %v3577_v49, %v3609_v3  ;;  %v3575_v13 = vadd.f32 %v3536_v43, %v3435_v15  ;;  %v3749_v61 = vsel %vm608_vm1, %v8201_v58, -inf  ;;  %v3576_v41 = vadd.f32 %v3536_v43, %v3439_v37 }
 0xd1a   :  { %v3642_v21 = vmax.f32 %v3578_v42, %v3610_v27  ;;  %3750 = vmax.xlane.f32.xlu1 %v3749_v61  ;;  %3747 = vmax.xlane.f32.xlu0 %v3746_v11  ;;  %v3752_v55 = vsel %vm608_vm1, %v8206_v52, -inf }
 0xd1b   :  { %v3607_v56 = vmul.f32 0.2, %v3575_v13  ;;  %v8213_v46 = vadd.f32 %v8150_v12, %v3641_v34  ;;  %v3608_v38 = vmul.f32 0.2, %v3576_v41 }
 0xd1c   :  { %v3454_v25 = vpop.permute.xlu0 %3453  ;;  %v3458_v0 = vpop.permute.xlu1 %3457  ;;  %v8221_v50 = vadd.f32 %v8155_v39, %v3642_v21  ;;  %v6811_v21 = vld [vmem:[#allocation2 + $0x8] sm:$0xff] }
 0xd1d   :  { %v3639_v57 = vmax.f32 %v3575_v13, %v3607_v56  ;;  %v3579_v10 = vadd.f32 %v3540_v1, %v3454_v25  ;;  %v3761_v43 = vsel %vm608_vm1, %v8213_v46, -inf  ;;  %v3640_v28 = vmax.f32 %v3576_v41, %v3608_v38 }
 0xd1e   :  { %v3580_v12 = vadd.f32 %v3540_v1, %v3458_v0  ;;  %3762 = vmax.xlane.f32.xlu1 %v3761_v43  ;;  %3753 = vmax.xlane.f32.xlu0 %v3752_v55  ;;  %v3764_v1 = vsel %vm608_vm1, %v8221_v50, -inf }
 0xd1f   :  { %v3611_v47 = vmul.f32 0.2, %v3579_v10  ;;  %v8224_v30 = vadd.f32 %v8177_v63, %v3639_v57  ;;  %v8237_v22 = vadd.f32 %v8182_v16, %v3640_v28  ;;  %v3507_v28 = vcombine.high %v3497_v8, %v3497_v8 }
 0xd20   :  { %v3612_v35 = vmul.f32 0.2, %v3580_v12  ;;  %v8230_v17 = vpop.permute.xlu0 %3312  ;;  %v3317_v14 = vpop.permute.xlu1 %3316 }
 0xd21   :  { %v3643_v20 = vmax.f32 %v3579_v10, %v3611_v47  ;;  %v3755_v39 = vsel %vm608_vm1, %v8224_v30, -inf  ;;  %v3550_v49 = vadd.f32 %v8228_v5, %v3317_v14  ;;  %v3758_v27 = vsel %vm608_vm1, %v8237_v22, -inf  ;;  %v6812_v14 = vld [vmem:[#allocation2 + $0x18] sm:$0xff] }
 0xd22   :  { %v3644_v62 = vmax.f32 %v3580_v12, %v3612_v35  ;;  %3756 = vmax.xlane.f32.xlu1 %v3755_v39  ;;  %3765 = vmax.xlane.f32.xlu0 %v3764_v1 }
 0xd23   :  { %v8241_v33 = vadd.f32 %v8177_v63, %v3643_v20  ;;  %v3582_v59 = vmul.f32 0.2, %v3550_v49 }
 0xd24   :  { %v8246_v42 = vpop.permute.xlu0 %3331  ;;  %v3336_v3 = vpop.permute.xlu1 %3335  ;;  %v8253_v15 = vadd.f32 %v8182_v16, %v3644_v62  ;;  %v3505_v16 = vcombine.high %v3483_v48, %v3483_v48 }
 0xd25   :  { %v3767_v32 = vsel %vm608_vm1, %v8241_v33, -inf  ;;  %v3614_v34 = vmax.f32 %v3550_v49, %v3582_v59  ;;  %v3554_v63 = vadd.f32 %v8244_v26, %v3336_v3  ;;  %v8277_v59 = vrot.slane %v3507_v28, %v6994_v4 }
 0xd26   :  { %3768 = vmax.xlane.f32.xlu1 %v3767_v32  ;;  %3759 = vmax.xlane.f32.xlu0 %v3758_v27  ;;  %v3770_v11 = vsel %vm608_vm1, %v8253_v15, -inf  ;;  %v8269_v12 = vrot.slane %v3505_v16, %v6994_v4 }
 0xd27   :  { %v3586_v13 = vmul.f32 0.2, %v3554_v63  ;;  %v8260_v41 = vadd.f32 %v6811_v21, %v3614_v34 }
 0xd28   :  { %v8256_v37 = vpop.permute.xlu0 %3320  ;;  %v3325_v61 = vpop.permute.xlu1 %3324 }
 0xd29   :  { %v3618_v56 = vmax.f32 %v3554_v63, %v3586_v13  ;;  %v3552_v18 = vadd.f32 %v8228_v5, %v3325_v61  ;;  %v3680_v57 = vsel %vm608_vm1, %v8260_v41, -inf }
 0xd2a   :  { %3771 = vmax.xlane.f32.xlu0 %v3770_v11 }
 0xd2b   :  { %v3584_v38 = vmul.f32 0.2, %v3552_v18  ;;  %v8265_v10 = vadd.f32 %v6811_v21, %v3618_v56 }
 0xd2c   :  { %v3340_v25 = vpop.permute.xlu0 %3339  ;;  %v3344_v55 = vpop.permute.xlu1 %3343 }
 0xd2d   :  { %v3616_v0 = vmax.f32 %v3552_v18, %v3584_v38  ;;  %v3556_v43 = vadd.f32 %v8244_v26, %v3344_v55  ;;  %v3692_v48 = vsel %vm608_vm1, %v8265_v10, -inf }
 0xd2e   :  { %3681 = vmax.xlane.f32.xlu0 %v3680_v57 }
 0xd2f   :  { %v3588_v47 = vmul.f32 0.2, %v3556_v43  ;;  %v8273_v39 = vadd.f32 %v6812_v14, %v3616_v0 }
 0xd30   :  { %v3351_v35 = vpop.permute.xlu0 %3350  ;;  %v3355_v20 = vpop.permute.xlu1 %3354 }
 0xd31   :  { %v3620_v1 = vmax.f32 %v3556_v43, %v3588_v47  ;;  %v3558_v62 = vadd.f32 %v8269_v12, %v3355_v20  ;;  %v3686_v32 = vsel %vm608_vm1, %v8273_v39, -inf }
 0xd32   :  { %3693 = vmax.xlane.f32.xlu0 %v3692_v48 }
 0xd33   :  { %v3590_v49 = vmul.f32 0.2, %v3558_v62  ;;  %v8281_v27 = vadd.f32 %v6812_v14, %v3620_v1 }
 0xd34   :  { %v3370_v8 = vpop.permute.xlu0 %3369  ;;  %v3374_v3 = vpop.permute.xlu1 %3373 }
 0xd35   :  { %v3622_v34 = vmax.f32 %v3558_v62, %v3590_v49  ;;  %v3562_v63 = vadd.f32 %v8277_v59, %v3374_v3  ;;  %v3698_v56 = vsel %vm608_vm1, %v8281_v27, -inf }
 0xd36   :  { %3687 = vmax.xlane.f32.xlu0 %v3686_v32 }
 0xd37   :  { %6364 = vrot.lane.b32.xlu1 %v8110_v24, %s6882_s21  ;;  %v3594_v13 = vmul.f32 0.2, %v3562_v63  ;;  %v8289_v18 = vadd.f32 %v6811_v21, %v3622_v34  ;;  %v3553_v34 = vadd.f32 %v8244_v26, %v8246_v42 }
 0xd38   :  { %v3363_v61 = vpop.permute.xlu0 %3362 }
 0xd39   :  { %v3560_v11 = vadd.f32 %v8269_v12, %v3363_v61  ;;  %v3626_v16 = vmax.f32 %v3562_v63, %v3594_v13  ;;  %v3704_v43 = vsel %vm608_vm1, %v8289_v18, -inf  ;;  %v3585_v13 = vmul.f32 0.2, %v3553_v34 }
 0xd3a   :  { %3699 = vmax.xlane.f32.xlu0 %v3698_v56  ;;  %v3551_v61 = vadd.f32 %v8228_v5, %v8256_v37 }
 0xd3b   :  { %v3592_v38 = vmul.f32 0.2, %v3560_v11  ;;  %v8294_v28 = vadd.f32 %v6811_v21, %v3626_v16  ;;  %v3549_v21 = vadd.f32 %v8228_v5, %v8230_v17  ;;  %v6813_v16 = vld [vmem:[#allocation2] sm:$0xff]  ;;  %v3557_v17 = vadd.f32 %v8269_v12, %v3351_v35 }
 0xd3c   :  { %v3382_v55 = vpop.permute.xlu0 %3381  ;;  %v3583_v56 = vmul.f32 0.2, %v3551_v61 }
 0xd3d   :  { %v3624_v57 = vmax.f32 %v3560_v11, %v3592_v38  ;;  %v3564_v0 = vadd.f32 %v8277_v59, %v3382_v55  ;;  %v3716_v48 = vsel %vm608_vm1, %v8294_v28, -inf  ;;  %v3581_v32 = vmul.f32 0.2, %v3549_v21 }
 0xd3e   :  { %3705 = vmax.xlane.f32.xlu0 %v3704_v43  ;;  %v3617_v11 = vmax.f32 %v3553_v34, %v3585_v13  ;;  %v3589_v5 = vmul.f32 0.2, %v3557_v17 }
 0xd3f   :  { %v3596_v47 = vmul.f32 0.2, %v3564_v0  ;;  %v8298_v1 = vadd.f32 %v6812_v14, %v3624_v57  ;;  %v3613_v63 = vmax.f32 %v3549_v21, %v3581_v32  ;;  %v3615_v57 = vmax.f32 %v3551_v61, %v3583_v56 }
 0xd40   :  { %v8318_v42 = vadd.f32 %v6813_v16, %v3617_v11  ;;  %v3621_v35 = vmax.f32 %v3557_v17, %v3589_v5 }
 0xd41   :  { %v3628_v20 = vmax.f32 %v3564_v0, %v3596_v47  ;;  %v3710_v62 = vsel %vm608_vm1, %v8298_v1, -inf  ;;  %v8313_v38 = vadd.f32 %v6813_v16, %v3613_v63  ;;  %v3359_v47 = vpop.permute.xlu1 %3358 }
 0xd42   :  { %3717 = vmax.xlane.f32.xlu0 %v3716_v48  ;;  %v3689_v37 = vsel %vm608_vm1, %v8318_v42, -inf  ;;  %v8333_v61 = vadd.f32 %v6813_v16, %v3621_v35 }
 0xd43   :  { %v8302_v49 = vadd.f32 %v6812_v14, %v3628_v20  ;;  %v3555_v14 = vadd.f32 %v8244_v26, %v3340_v25  ;;  %v3677_v0 = vsel %vm608_vm1, %v8313_v38, -inf  ;;  %v3561_v26 = vadd.f32 %v8277_v59, %v3370_v8  ;;  %v6814_v25 = vld [vmem:[#allocation2 + $0x10] sm:$0xff] }
 0xd44   :  { %v8323_v20 = vadd.f32 %v6814_v25, %v3615_v57 }
 0xd45   :  { %v3722_v3 = vsel %vm608_vm1, %v8302_v49, -inf  ;;  %v3587_v55 = vmul.f32 0.2, %v3555_v14  ;;  %v3378_v32 = vpop.permute.xlu1 %3377 }
 0xd46   :  { %3711 = vmax.xlane.f32.xlu0 %v3710_v62  ;;  %v3593_v62 = vmul.f32 0.2, %v3561_v26  ;;  %v3683_v21 = vsel %vm608_vm1, %v8323_v20, -inf  ;;  %v3563_v13 = vadd.f32 %v8277_v59, %v3378_v32 }
 0xd47   :  { %v3619_v43 = vmax.f32 %v3555_v14, %v3587_v55 }
 0xd48   :  { %v3625_v34 = vmax.f32 %v3561_v26, %v3593_v62  ;;  %v3595_v11 = vmul.f32 0.2, %v3563_v13 }
 0xd49   :  { %v8325_v48 = vadd.f32 %v6814_v25, %v3619_v43 }
 0xd4a   :  { %3723 = vmax.xlane.f32.xlu0 %v3722_v3  ;;  %v3559_v3 = vadd.f32 %v8269_v12, %v3359_v47  ;;  %v3701_v12 = vsel %vm608_vm1, %v8333_v61, -inf  ;;  %v8337_v56 = vadd.f32 %v6813_v16, %v3625_v34  ;;  %v3627_v55 = vmax.f32 %v3563_v13, %v3595_v11 }
 0xd4b   :  { %v3695_v8 = vsel %vm608_vm1, %v8325_v48, -inf }
 0xd4c   :  { %v3591_v63 = vmul.f32 0.2, %v3559_v3  ;;  %v3713_v57 = vsel %vm608_vm1, %v8337_v56, -inf }
 0xd4e   :  { %v3623_v14 = vmax.f32 %v3559_v3, %v3591_v63 }
 0xd50   :  { %v8341_v17 = vadd.f32 %v6814_v25, %v3623_v14 }
 0xd52   :  { %v3707_v59 = vsel %vm608_vm1, %v8341_v17, -inf }
 0xd5b   :  { %3678 = vmax.xlane.f32.xlu1 %v3677_v0  ;;  %v8345_v0 = vadd.f32 %v6814_v25, %v3627_v55 }
 0xd5d   :  { %v3719_v43 = vsel %vm608_vm1, %v8345_v0, -inf }
 0xd5f   :  { %3690 = vmax.xlane.f32.xlu1 %v3689_v37 }
 0xd63   :  { %3684 = vmax.xlane.f32.xlu1 %v3683_v21 }
 0xd67   :  { %3696 = vmax.xlane.f32.xlu1 %v3695_v8 }
 0xd6b   :  { %3702 = vmax.xlane.f32.xlu1 %v3701_v12 }
 0xd6f   :  { %3714 = vmax.xlane.f32.xlu1 %v3713_v57 }
 0xd73   :  { %3708 = vmax.xlane.f32.xlu1 %v3707_v59 }
 0xd77   :  { %3720 = vmax.xlane.f32.xlu1 %v3719_v43 }
 0xd97   :  { %v3727_v16 = vpop.xlane.xlu0 %3726 }
 0xd98   :  { %v3789_v47 = vsub.f32 %v8153_v44, %v3727_v16  ;;  %v3730_v5 = vpop.xlane.xlu1 %3729 }
 0xd99   :  { %v3790_v26 = vsub.f32 %v8158_v7, %v3730_v5 }
 0xd9a   :  { %v3837_v37 = vmul.f32 1.442695, %v3789_v47 }
 0xd9b   :  { %v3839_v35 = vmul.f32 1.442695, %v3790_v26  ;;  %v3739_v62 = vpop.xlane.xlu0 %3738 }
 0xd9c   :  { %6639 = vpow2.f32 %v3837_v37  ;;  %v3793_v3 = vsub.f32 %v8165_v19, %v3739_v62  ;;  %v3742_v21 = vpop.xlane.xlu1 %3741 }
 0xd9d   :  { %6641 = vpow2.f32 %v3839_v35  ;;  %v3794_v25 = vsub.f32 %v8168_v29, %v3742_v21 }
 0xd9e   :  { %v3845_v32 = vmul.f32 1.442695, %v3793_v3 }
 0xd9f   :  { %v3847_v8 = vmul.f32 1.442695, %v3794_v25  ;;  %v3733_v34 = vpop.xlane.xlu0 %3732 }
 0xda0   :  { %6643 = vpow2.f32 %v3845_v32  ;;  %v3791_v63 = vsub.f32 %v8180_v2, %v3733_v34  ;;  %v3736_v44 = vpop.xlane.xlu1 %3735 }
 0xda1   :  { %6645 = vpow2.f32 %v3847_v8  ;;  %v3792_v7 = vsub.f32 %v8185_v53, %v3736_v44 }
 0xda2   :  { %v3841_v13 = vmul.f32 1.442695, %v3791_v63 }
 0xda3   :  { %v3843_v14 = vmul.f32 1.442695, %v3792_v7  ;;  %v3745_v11 = vpop.xlane.xlu0 %3744 }
 0xda4   :  { %6647 = vpow2.f32 %v3841_v13  ;;  %v3795_v19 = vsub.f32 %v8193_v9, %v3745_v11 }
 0xda5   :  { %6649 = vpow2.f32 %v3843_v14 }
 0xda6   :  { %v8356_v12 = vpop.eup %6639  ;;  %v3849_v29 = vmul.f32 1.442695, %v3795_v19 }
 0xda7   :  { %v8358_v55 = vpop.eup %6641  ;;  %v3748_v57 = vpop.xlane.xlu0 %3747  ;;  %v3917_v2 = vsel %vm608_vm1, %v8356_v12, 0.0 }
 0xda8   :  { %v3751_v59 = vpop.xlane.xlu1 %3750  ;;  %6651 = vpow2.f32 %v3849_v29  ;;  %v3796_v53 = vsub.f32 %v8198_v54, %v3748_v57  ;;  %3918 = vadd.xlane.f32.xlu1 %v3917_v2  ;;  %v3920_v9 = vsel %vm608_vm1, %v8358_v55, 0.0 }
 0xda9   :  { %v3797_v43 = vsub.f32 %v8201_v58, %v3751_v59  ;;  %3921 = vadd.xlane.f32.xlu0 %v3920_v9 }
 0xdaa   :  { %v8366_v16 = vpop.eup %6643  ;;  %v3851_v47 = vmul.f32 1.442695, %v3796_v53 }
 0xdab   :  { %v3853_v5 = vmul.f32 1.442695, %v3797_v43  ;;  %v8368_v26 = vpop.eup %6645  ;;  %v3754_v37 = vpop.xlane.xlu0 %3753  ;;  %v3929_v62 = vsel %vm608_vm1, %v8366_v16, 0.0 }
 0xdac   :  { %v3763_v35 = vpop.xlane.xlu1 %3762  ;;  %6653 = vpow2.f32 %v3851_v47  ;;  %v3798_v54 = vsub.f32 %v8206_v52, %v3754_v37  ;;  %3930 = vadd.xlane.f32.xlu1 %v3929_v62  ;;  %v3932_v3 = vsel %vm608_vm1, %v8368_v26, 0.0 }
 0xdad   :  { %v3801_v58 = vsub.f32 %v8213_v46, %v3763_v35  ;;  %6655 = vpow2.f32 %v3853_v5  ;;  %3933 = vadd.xlane.f32.xlu0 %v3932_v3 }
 0xdae   :  { %v8376_v21 = vpop.eup %6647  ;;  %v3855_v25 = vmul.f32 1.442695, %v3798_v54 }
 0xdaf   :  { %v3861_v32 = vmul.f32 1.442695, %v3801_v58  ;;  %v8378_v8 = vpop.eup %6649  ;;  %v3766_v34 = vpop.xlane.xlu0 %3765  ;;  %v3923_v44 = vsel %vm608_vm1, %v8376_v21, 0.0 }
 0xdb0   :  { %v3757_v63 = vpop.xlane.xlu1 %3756  ;;  %6657 = vpow2.f32 %v3855_v25  ;;  %v3802_v52 = vsub.f32 %v8221_v50, %v3766_v34  ;;  %3924 = vadd.xlane.f32.xlu1 %v3923_v44  ;;  %v3926_v7 = vsel %vm608_vm1, %v8378_v8, 0.0 }
 0xdb1   :  { %v3799_v46 = vsub.f32 %v8224_v30, %v3757_v63  ;;  %6659 = vpow2.f32 %v3861_v32  ;;  %3927 = vadd.xlane.f32.xlu0 %v3926_v7 }
 0xdb2   :  { %v8386_v13 = vpop.eup %6651  ;;  %v3863_v14 = vmul.f32 1.442695, %v3802_v52 }
 0xdb3   :  { %v3857_v11 = vmul.f32 1.442695, %v3799_v46  ;;  %v3760_v19 = vpop.xlane.xlu0 %3759  ;;  %v3935_v57 = vsel %vm608_vm1, %v8386_v13, 0.0 }
 0xdb4   :  { %v3769_v29 = vpop.xlane.xlu1 %3768  ;;  %6661 = vpow2.f32 %v3863_v14  ;;  %v3800_v50 = vsub.f32 %v8237_v22, %v3760_v19  ;;  %3936 = vadd.xlane.f32.xlu1 %v3935_v57 }
 0xdb5   :  { %v3803_v30 = vsub.f32 %v8241_v33, %v3769_v29  ;;  %6663 = vpow2.f32 %v3857_v11 }
 0xdb6   :  { %v8392_v59 = vpop.eup %6653  ;;  %v3859_v2 = vmul.f32 1.442695, %v3800_v50 }
 0xdb7   :  { %v3865_v53 = vmul.f32 1.442695, %v3803_v30  ;;  %v8394_v43 = vpop.eup %6655  ;;  %v3772_v9 = vpop.xlane.xlu0 %3771  ;;  %v3938_v47 = vsel %vm608_vm1, %v8392_v59, 0.0 }
 0xdb8   :  { %6665 = vpow2.f32 %v3859_v2  ;;  %v3804_v5 = vsub.f32 %v8253_v15, %v3772_v9  ;;  %3939 = vadd.xlane.f32.xlu0 %v3938_v47  ;;  %v3941_v22 = vsel %vm608_vm1, %v8394_v43, 0.0  ;;  %v8431_v29 = vpop.permute.xlu1 %6364 }
 0xdb9   :  { %6667 = vpow2.f32 %v3865_v53  ;;  %3942 = vadd.xlane.f32.xlu1 %v3941_v22 }
 0xdba   :  { %v8401_v33 = vpop.eup %6657  ;;  %v3867_v37 = vmul.f32 1.442695, %v3804_v5 }
 0xdbb   :  { %v8403_v35 = vpop.eup %6659  ;;  %v3944_v62 = vsel %vm608_vm1, %v8401_v33, 0.0  ;;  %v3682_v7 = vpop.xlane.xlu0 %3681 }
 0xdbc   :  { %6669 = vpow2.f32 %v3867_v37  ;;  %3945 = vadd.xlane.f32.xlu0 %v3944_v62  ;;  %v3953_v54 = vsel %vm608_vm1, %v8403_v35, 0.0  ;;  %v3774_v50 = vsub.f32 %v8260_v41, %v3682_v7 }
 0xdbd   :  { %3954 = vadd.xlane.f32.xlu1 %v3953_v54 }
 0xdbe   :  { %v8409_v15 = vpop.eup %6661  ;;  %v3807_v53 = vmul.f32 1.442695, %v3774_v50 }
 0xdbf   :  { %v3956_v58 = vsel %vm608_vm1, %v8409_v15, 0.0  ;;  %v8413_v3 = vpop.eup %6663  ;;  %v3694_v14 = vpop.xlane.xlu0 %3693 }
 0xdc0   :  { %3957 = vadd.xlane.f32.xlu0 %v3956_v58  ;;  %v3947_v34 = vsel %vm608_vm1, %v8413_v3, 0.0  ;;  %v3778_v9 = vsub.f32 %v8265_v10, %v3694_v14 }
 0xdc2   :  { %v8415_v25 = vpop.eup %6665  ;;  %v3815_v62 = vmul.f32 1.442695, %v3778_v9 }
 0xdc3   :  { %v3950_v32 = vsel %vm608_vm1, %v8415_v25, 0.0  ;;  %v8421_v63 = vpop.eup %6667  ;;  %v3688_v11 = vpop.xlane.xlu0 %3687 }
 0xdc4   :  { %3951 = vadd.xlane.f32.xlu1 %v3950_v32  ;;  %3948 = vadd.xlane.f32.xlu0 %v3947_v34  ;;  %v3959_v46 = vsel %vm608_vm1, %v8421_v63, 0.0 }
 0xdc6   :  { %v8423_v44 = vpop.eup %6669 }
 0xdc7   :  { %v3962_v52 = vsel %vm608_vm1, %v8423_v44, 0.0  ;;  %v3700_v19 = vpop.xlane.xlu0 %3699 }
 0xdc8   :  { %3963 = vadd.xlane.f32.xlu1 %v3962_v52  ;;  %3960 = vadd.xlane.f32.xlu0 %v3959_v46 }
 0xdcb   :  { %v3706_v57 = vpop.xlane.xlu0 %3705 }
 0xdcc   :  { %v3782_v54 = vsub.f32 %v8289_v18, %v3706_v57 }
 0xdce   :  { %v3823_v52 = vmul.f32 1.442695, %v3782_v54 }
 0xdcf   :  { %v3718_v47 = vpop.xlane.xlu0 %3717 }
 0xdd0   :  { %v3786_v10 = vsub.f32 %v8294_v28, %v3718_v47 }
 0xdd2   :  { %v3831_v18 = vmul.f32 1.442695, %v3786_v10 }
 0xdd3   :  { %v3712_v32 = vpop.xlane.xlu0 %3711 }
 0xdde   :  { %6369 = vrot.lane.b32.xlu0 %v8110_v24, %s6886_s26  ;;  %v3776_v24 = vsub.f32 %v8273_v39, %v3688_v11  ;;  %v3784_v11 = vsub.f32 %v8298_v1, %v3712_v32 }
 0xde0   :  { %v3811_v34 = vmul.f32 1.442695, %v3776_v24 }
 0xde8   :  { %v3679_v30 = vpop.xlane.xlu1 %3678 }
 0xde9   :  { %v3773_v2 = vsub.f32 %v8313_v38, %v3679_v30 }
 0xdeb   :  { %v3805_v5 = vmul.f32 1.442695, %v3773_v2 }
 0xdec   :  { %v3691_v22 = vpop.xlane.xlu1 %3690 }
 0xded   :  { %6671 = vpow2.f32 %v3805_v5  ;;  %v3777_v37 = vsub.f32 %v8318_v42, %v3691_v22  ;;  %v3780_v42 = vsub.f32 %v8281_v27, %v3700_v19  ;;  %v3827_v19 = vmul.f32 1.442695, %v3784_v11 }
 0xdee   :  { %6673 = vpow2.f32 %v3807_v53 }
 0xdef   :  { %v3813_v58 = vmul.f32 1.442695, %v3777_v37  ;;  %v3819_v2 = vmul.f32 1.442695, %v3780_v42 }
 0xdf0   :  { %v3685_v41 = vpop.xlane.xlu1 %3684 }
 0xdf1   :  { %6675 = vpow2.f32 %v3813_v58  ;;  %v3775_v38 = vsub.f32 %v8323_v20, %v3685_v41  ;;  %v3724_v20 = vpop.xlane.xlu0 %3723 }
 0xdf2   :  { %6677 = vpow2.f32 %v3815_v62 }
 0xdf3   :  { %v3809_v46 = vmul.f32 1.442695, %v3775_v38 }
 0xdf4   :  { %v3697_v7 = vpop.xlane.xlu1 %3696 }
 0xdf5   :  { %6679 = vpow2.f32 %v3809_v46  ;;  %v3779_v39 = vsub.f32 %v8325_v48, %v3697_v7  ;;  %v3788_v48 = vsub.f32 %v8302_v49, %v3724_v20 }
 0xdf6   :  { %6681 = vpow2.f32 %v3811_v34 }
 0xdf7   :  { %v8443_v14 = vpop.eup %6671  ;;  %6683 = vpow2.f32 %v3823_v52  ;;  %v3817_v57 = vmul.f32 1.442695, %v3779_v39  ;;  %v3835_v22 = vmul.f32 1.442695, %v3788_v48 }
 0xdf8   :  { %v3703_v50 = vpop.xlane.xlu1 %3702  ;;  %v3869_v28 = vsel %vm608_vm1, %v8443_v14, 0.0  ;;  %v8448_v30 = vpop.eup %6673  ;;  %6685 = vpow2.f32 %v3831_v18 }
 0xdf9   :  { %3870 = vadd.xlane.f32.xlu1 %v3869_v28  ;;  %6687 = vpow2.f32 %v3817_v57  ;;  %v3781_v53 = vsub.f32 %v8333_v61, %v3703_v50  ;;  %v3872_v9 = vsel %vm608_vm1, %v8448_v30, 0.0 }
 0xdfa   :  { %6689 = vpow2.f32 %v3819_v2 }
 0xdfb   :  { %v8451_v27 = vpop.eup %6675  ;;  %6691 = vpow2.f32 %v3827_v19  ;;  %v3821_v37 = vmul.f32 1.442695, %v3781_v53 }
 0xdfc   :  { %v3715_v1 = vpop.xlane.xlu1 %3714  ;;  %v3881_v47 = vsel %vm608_vm1, %v8451_v27, 0.0  ;;  %v8458_v5 = vpop.eup %6677  ;;  %6693 = vpow2.f32 %v3835_v22 }
 0xdfd   :  { %3873 = vadd.xlane.f32.xlu0 %v3872_v9  ;;  %3882 = vadd.xlane.f32.xlu1 %v3881_v47  ;;  %v3785_v24 = vsub.f32 %v8337_v56, %v3715_v1  ;;  %v3884_v54 = vsel %vm608_vm1, %v8458_v5, 0.0  ;;  %6695 = vpow2.f32 %v3821_v37 }
 0xdff   :  { %v8460_v49 = vpop.eup %6679  ;;  %v3829_v32 = vmul.f32 1.442695, %v3785_v24 }
 0xe00   :  { %v8463_v61 = vpop.eup %6681  ;;  %v3709_v62 = vpop.xlane.xlu1 %3708  ;;  %v3875_v58 = vsel %vm608_vm1, %v8460_v49, 0.0 }
 0xe01   :  { %v8469_v41 = vpop.eup %6683  ;;  %3885 = vadd.xlane.f32.xlu0 %v3884_v54  ;;  %3876 = vadd.xlane.f32.xlu1 %v3875_v58  ;;  %v3783_v38 = vsub.f32 %v8341_v17, %v3709_v62  ;;  %v3878_v52 = vsel %vm608_vm1, %v8463_v61, 0.0  ;;  %6697 = vpow2.f32 %v3829_v32 }
 0xe02   :  { %v8472_v34 = vpop.eup %6685  ;;  %v3896_v10 = vsel %vm608_vm1, %v8469_v41, 0.0 }
 0xe03   :  { %v8478_v46 = vpop.eup %6687  ;;  %v3825_v7 = vmul.f32 1.442695, %v3783_v38  ;;  %v3908_v17 = vsel %vm608_vm1, %v8472_v34, 0.0 }
 0xe04   :  { %v3721_v56 = vpop.xlane.xlu1 %3720  ;;  %v8481_v42 = vpop.eup %6689  ;;  %v3887_v18 = vsel %vm608_vm1, %v8478_v46, 0.0 }
 0xe05   :  { %3897 = vadd.xlane.f32.xlu0 %v3896_v10  ;;  %3879 = vadd.xlane.f32.xlu1 %v3878_v52  ;;  %v3787_v39 = vsub.f32 %v8345_v0, %v3721_v56  ;;  %v8487_v11 = vpop.eup %6691  ;;  %6699 = vpow2.f32 %v3825_v7  ;;  %v3890_v0 = vsel %vm608_vm1, %v8481_v42, 0.0 }
 0xe06   :  { %v8489_v57 = vpop.eup %6693  ;;  %v3902_v50 = vsel %vm608_vm1, %v8487_v11, 0.0 }
 0xe07   :  { %v3833_v20 = vmul.f32 1.442695, %v3787_v39  ;;  %v8495_v28 = vpop.eup %6695  ;;  %v3914_v2 = vsel %vm608_vm1, %v8489_v57, 0.0 }
 0xe08   :  { %v3893_v48 = vsel %vm608_vm1, %v8495_v28, 0.0 }
 0xe09   :  { %3909 = vadd.xlane.f32.xlu0 %v3908_v17  ;;  %3888 = vadd.xlane.f32.xlu1 %v3887_v18  ;;  %6701 = vpow2.f32 %v3833_v20 }
 0xe0b   :  { %v8501_v19 = vpop.eup %6697 }
 0xe0c   :  { %v3905_v53 = vsel %vm608_vm1, %v8501_v19, 0.0 }
 0xe0d   :  { %3903 = vadd.xlane.f32.xlu0 %v3902_v50  ;;  %3891 = vadd.xlane.f32.xlu1 %v3890_v0 }
 0xe0f   :  { %v8505_v1 = vpop.eup %6699 }
 0xe10   :  { %v3899_v9 = vsel %vm608_vm1, %v8505_v1, 0.0 }
 0xe11   :  { %3915 = vadd.xlane.f32.xlu0 %v3914_v2  ;;  %3894 = vadd.xlane.f32.xlu1 %v3893_v48 }
 0xe13   :  { %v8509_v47 = vpop.eup %6701 }
 0xe14   :  { %v3911_v22 = vsel %vm608_vm1, %v8509_v47, 0.0 }
 0xe15   :  { %3906 = vadd.xlane.f32.xlu1 %v3905_v53 }
 0xe19   :  { %3900 = vadd.xlane.f32.xlu1 %v3899_v9 }
 0xe1d   :  { %3912 = vadd.xlane.f32.xlu1 %v3911_v22 }
 0xe35   :  { %v3919_v37 = vpop.xlane.xlu1 %3918 }
 0xe36   :  { %v3922_v24 = vpop.xlane.xlu0 %3921  ;;  %6703 = vrcp.f32 %v3919_v37 }
 0xe37   :  { %6705 = vrcp.f32 %v3922_v24 }
 0xe39   :  { %v3931_v62 = vpop.xlane.xlu1 %3930 }
 0xe3a   :  { %v3934_v54 = vpop.xlane.xlu0 %3933  ;;  %6707 = vrcp.f32 %v3931_v62 }
 0xe3b   :  { %6709 = vrcp.f32 %v3934_v54 }
 0xe3d   :  { %v3925_v58 = vpop.xlane.xlu1 %3924 }
 0xe3e   :  { %v3928_v32 = vpop.xlane.xlu0 %3927  ;;  %6711 = vrcp.f32 %v3925_v58 }
 0xe3f   :  { %6713 = vrcp.f32 %v3928_v32 }
 0xe40   :  { %v6704_v38 = vpop.eup %6703 }
 0xe41   :  { %v6706_v56 = vpop.eup %6705  ;;  %v3937_v10 = vpop.xlane.xlu1 %3936  ;;  %v4013_v52 = vmul.f32 %v6704_v38, %v8356_v12 }
 0xe42   :  { %6715 = vrcp.f32 %v3937_v10  ;;  %v4014_v7 = vmul.f32 %v6706_v56, %v8358_v55 }
 0xe43   :  { %4033 = vrot.lane.b32.xlu1 %v4013_v52, %s6879_s20 }
 0xe44   :  { %v6708_v39 = vpop.eup %6707  ;;  %4035 = vrot.lane.b32.xlu0 %v4014_v7, %s6879_s20 }
 0xe45   :  { %v6710_v17 = vpop.eup %6709  ;;  %v3940_v18 = vpop.xlane.xlu0 %3939  ;;  %v4017_v20 = vmul.f32 %v6708_v39, %v8366_v16 }
 0xe46   :  { %6717 = vrcp.f32 %v3940_v18  ;;  %v4018_v50 = vmul.f32 %v6710_v17, %v8368_v26  ;;  %v3943_v0 = vpop.xlane.xlu1 %3942 }
 0xe47   :  { %6719 = vrcp.f32 %v3943_v0 }
 0xe48   :  { %v6712_v2 = vpop.eup %6711  ;;  %4164 = vrot.lane.b32.xlu1 %v4018_v50, %s6879_s20  ;;  %4162 = vrot.lane.b32.xlu0 %v4017_v20, %s6879_s20 }
 0xe49   :  { %v3946_v12 = vpop.xlane.xlu0 %3945  ;;  %v4015_v55 = vmul.f32 %v6712_v2, %v8376_v21  ;;  %v6714_v48 = vpop.eup %6713 }
 0xe4a   :  { %6721 = vrcp.f32 %v3946_v12  ;;  %v3955_v53 = vpop.xlane.xlu1 %3954  ;;  %v4016_v22 = vmul.f32 %v6714_v48, %v8378_v8 }
 0xe4b   :  { %6723 = vrcp.f32 %v3955_v53 }
 0xe4c   :  { %v6716_v9 = vpop.eup %6715  ;;  %4037 = vrot.lane.b32.xlu0 %v4015_v55, %s6879_s20 }
 0xe4d   :  { %v3958_v16 = vpop.xlane.xlu0 %3957  ;;  %v4019_v26 = vmul.f32 %v6716_v9, %v8386_v13 }
 0xe4e   :  { %6725 = vrcp.f32 %v3958_v16 }
 0xe4f   :  { %4166 = vrot.lane.b32.xlu1 %v4019_v26, %s6879_s20 }
 0xe50   :  { %v6718_v37 = vpop.eup %6717  ;;  %4039 = vrot.lane.b32.xlu0 %v4016_v22, %s6879_s20 }
 0xe51   :  { %v3949_v24 = vpop.xlane.xlu0 %3948  ;;  %v3952_v21 = vpop.xlane.xlu1 %3951  ;;  %v4020_v62 = vmul.f32 %v6718_v37, %v8392_v59 }
 0xe52   :  { %v6720_v54 = vpop.eup %6719  ;;  %6727 = vrcp.f32 %v3949_v24 }
 0xe53   :  { %6729 = vrcp.f32 %v3952_v21  ;;  %4168 = vrot.lane.b32.xlu1 %v4020_v62, %s6879_s20  ;;  %v4021_v58 = vmul.f32 %v6720_v54, %v8394_v43  ;;  %v6337_v62 = vunpack.i.h.bf16 %v8121_v31  ;;  %v6336_v54 = vunpack.i.l.bf16 %v8121_v31 }
 0xe54   :  { %v6722_v13 = vpop.eup %6721  ;;  %v6341_v31 = vunpack.i.l.bf16 %v8125_v45 }
 0xe55   :  { %4303 = vrot.lane.b32.xlu0 %v4021_v58, %s6879_s20  ;;  %v3961_v8 = vpop.xlane.xlu0 %3960  ;;  %v3964_v32 = vpop.xlane.xlu1 %3963  ;;  %v4022_v38 = vmul.f32 %v6722_v13, %v8401_v33 }
 0xe56   :  { %v6724_v56 = vpop.eup %6723  ;;  %6731 = vrcp.f32 %v3961_v8 }
 0xe57   :  { %6733 = vrcp.f32 %v3964_v32  ;;  %4305 = vrot.lane.b32.xlu1 %v4022_v38, %s6879_s20  ;;  %v4025_v59 = vmul.f32 %v6724_v56, %v8403_v35 }
 0xe58   :  { %v6726_v10 = vpop.eup %6725 }
 0xe59   :  { %4444 = vrot.lane.b32.xlu0 %v4025_v59, %s6879_s20  ;;  %v4026_v52 = vmul.f32 %v6726_v10, %v8409_v15  ;;  %v6342_v10 = vunpack.i.h.bf16 %v8125_v45 }
 0xe5b   :  { %4446 = vrot.lane.b32.xlu1 %v4026_v52, %s6879_s20 }
 0xe5c   :  { %v6728_v43 = vpop.eup %6727 }
 0xe5d   :  { %v6730_v7 = vpop.eup %6729  ;;  %v4023_v39 = vmul.f32 %v6728_v43, %v8413_v3  ;;  %v8545_v3 = vpop.permute.xlu0 %6369  ;;  %v6352_v43 = vunpack.i.h.bf16 %v8142_v51 }
 0xe5e   :  { %v4024_v33 = vmul.f32 %v6730_v7, %v8415_v25 }
 0xe5f   :  { %4307 = vrot.lane.b32.xlu0 %v4023_v39, %s6879_s20 }
 0xe60   :  { %v6732_v17 = vpop.eup %6731  ;;  %4309 = vrot.lane.b32.xlu1 %v4024_v33, %s6879_s20 }
 0xe61   :  { %v6734_v18 = vpop.eup %6733  ;;  %v4027_v35 = vmul.f32 %v6732_v17, %v8421_v63 }
 0xe62   :  { %v4028_v20 = vmul.f32 %v6734_v18, %v8423_v44 }
 0xe63   :  { %4448 = vrot.lane.b32.xlu0 %v4027_v35, %s6879_s20 }
 0xe64   :  { %4450 = vrot.lane.b32.xlu1 %v4028_v20, %s6879_s20  ;;  %v6366_v20 = vunpack.i.l.bf16 %v8431_v29 }
 0xe86   :  { %v3871_v15 = vpop.xlane.xlu1 %3870 }
 0xe87   :  { %6735 = vrcp.f32 %v3871_v15  ;;  %v6109_v15 = vpack.c.bf16 %v6342_v10, %v6341_v31 }
 0xe8a   :  { %v3883_v50 = vpop.xlane.xlu1 %3882  ;;  %v3874_v2 = vpop.xlane.xlu0 %3873 }
 0xe8b   :  { %6737 = vrcp.f32 %v3874_v2 }
 0xe8c   :  { %6739 = vrcp.f32 %v3883_v50  ;;  %v6356_v50 = vunpack.i.l.bf16 %v8127_v60 }
 0xe8e   :  { %v3877_v0 = vpop.xlane.xlu1 %3876  ;;  %v3886_v55 = vpop.xlane.xlu0 %3885 }
 0xe8f   :  { %6741 = vrcp.f32 %v3886_v55 }
 0xe90   :  { %6743 = vrcp.f32 %v3877_v0 }
 0xe91   :  { %v6736_v22 = vpop.eup %6735 }
 0xe92   :  { %v3880_v25 = vpop.xlane.xlu1 %3879  ;;  %v3898_v9 = vpop.xlane.xlu0 %3897  ;;  %v3997_v58 = vmul.f32 %v6736_v22, %v8443_v14  ;;  %v6351_v14 = vunpack.i.l.bf16 %v8142_v51  ;;  %v6367_v51 = vunpack.i.h.bf16 %v8431_v29 }
 0xe95   :  { %v6738_v24 = vpop.eup %6737 }
 0xe96   :  { %v3889_v12 = vpop.xlane.xlu1 %3888  ;;  %v3910_v63 = vpop.xlane.xlu0 %3909  ;;  %v3998_v8 = vmul.f32 %v6738_v24, %v8448_v30  ;;  %v6093_v30 = vpack.c.bf16 %v6337_v62, %v6336_v54 }
 0xe97   :  { %6745 = vrcp.f32 %v3889_v12  ;;  %v6740_v13 = vpop.eup %6739 }
 0xe98   :  { %6747 = vrcp.f32 %v3880_v25  ;;  %v4001_v7 = vmul.f32 %v6740_v13, %v8451_v27 }
 0xe99   :  { %v6742_v38 = vpop.eup %6741 }
 0xe9a   :  { %v3892_v48 = vpop.xlane.xlu1 %3891  ;;  %v8549_v26 = vpop.xlane.xlu0 %3903  ;;  %v4002_v39 = vmul.f32 %v6742_v38, %v8458_v5  ;;  %v6357_v5 = vunpack.i.h.bf16 %v8127_v60  ;;  %v6101_v60 = vpack.c.bf16 %v6367_v51, %v6366_v20 }
 0xe9b   :  { %6749 = vrcp.f32 %v3892_v48  ;;  %v6744_v33 = vpop.eup %6743  ;;  %v6372_v48 = vunpack.i.h.bf16 %v8545_v3 }
 0xe9c   :  { %v3999_v0 = vmul.f32 %v6744_v33, %v8460_v49 }
 0xe9e   :  { %v3895_v53 = vpop.xlane.xlu1 %3894  ;;  %v8553_v21 = vpop.xlane.xlu0 %3915 }
 0xe9f   :  { %6751 = vrcp.f32 %v3895_v53  ;;  %v6371_v53 = vunpack.i.l.bf16 %v8545_v3 }
 0xea0   :  { %6753 = vrcp.f32 %v3898_v9  ;;  %v6113_v9 = vpack.c.bf16 %v6357_v5, %v6356_v50  ;;  %v4652_v50 = vld [vmem:[#allocation4 + $0x240] sm:$0xff] }
 0xea1   :  { %v6746_v27 = vpop.eup %6745  ;;  %v6117_v24 = vpack.c.bf16 %v6372_v48, %v6371_v53 }
 0xea2   :  { %v3907_v16 = vpop.xlane.xlu1 %3906  ;;  %v6748_v25 = vpop.eup %6747  ;;  %v4003_v12 = vmul.f32 %v6746_v27, %v8478_v46 }
 0xea3   :  { %6755 = vrcp.f32 %v3907_v16  ;;  %v4000_v49 = vmul.f32 %v6748_v25, %v8463_v61 }
 0xea4   :  { %6757 = vrcp.f32 %v3910_v63 }
 0xea5   :  { %v6750_v55 = vpop.eup %6749 }
 0xea6   :  { %v8547_v44 = vpop.xlane.xlu1 %3900  ;;  %v4004_v61 = vmul.f32 %v6750_v55, %v8481_v42 }
 0xea7   :  { %6759 = vrcp.f32 %v8547_v44 }
 0xea8   :  { %6761 = vrcp.f32 %v8549_v26 }
 0xea9   :  { %v6752_v22 = vpop.eup %6751 }
 0xeaa   :  { %v8551_v37 = vpop.xlane.xlu1 %3912  ;;  %v6754_v3 = vpop.eup %6753  ;;  %v4005_v54 = vmul.f32 %v6752_v22, %v8495_v28 }
 0xeab   :  { %6763 = vrcp.f32 %v8551_v37  ;;  %v4006_v26 = vmul.f32 %v6754_v3, %v8469_v41 }
 0xeac   :  { %6765 = vrcp.f32 %v8553_v21 }
 0xeb5   :  { %v4034_v32 = vpop.permute.xlu1 %4033 }
 0xeb6   :  { %v4036_v56 = vpop.permute.xlu0 %4035  ;;  %v4045_v59 = vsel %vm608_vm1, %v3997_v58, %v4034_v32  ;;  %v6756_v58 = vpop.eup %6755 }
 0xeb7   :  { %v4046_v52 = vsel %vm608_vm1, %v3998_v8, %v4036_v56  ;;  %5734 = vmatprep.mubr.msk.f32.mxu1 %vm981_vm2, %v4045_v59  ;;  %v6758_v8 = vpop.eup %6757  ;;  %v4009_v28 = vmul.f32 %v6756_v58, %v8501_v19 }
 0xeb8   :  { %5735 = vmatmul.mubr.msk.f32.vlgmr.msra.gmra.mrb[34].mxu1 %vm981_vm2, %v4046_v52  ;;  %v4010_v21 = vmul.f32 %v6758_v8, %v8472_v34  ;;  %v6760_v59 = vpop.eup %6759 }
 0xeb9   :  { %6092 = vmatpush3.bf16.msra.mxu1 %v8116_v36  ;;  %v6097_v36 = vpack.c.bf16 %v6352_v43, %v6351_v14  ;;  %v6762_v10 = vpop.eup %6761  ;;  %v4007_v19 = vmul.f32 %v6760_v59, %v8505_v1 }
 0xeba   :  { %v4163_v17 = vpop.permute.xlu0 %4162  ;;  %v4165_v18 = vpop.permute.xlu1 %4164  ;;  %6094 = vmatprep.subr.bf16.mxu1 %v6093_v30  ;;  %v4008_v14 = vmul.f32 %v6762_v10, %v8487_v11 }
 0xebb   :  { %v4174_v45 = vsel %vm608_vm1, %v4001_v7, %v4163_v17  ;;  %v4175_v35 = vsel %vm608_vm1, %v4002_v39, %v4165_v18  ;;  %v6764_v31 = vpop.eup %6763 }
 0xebc   :  { %5756 = vmatprep.mubr.msk.f32.mxu0 %vm981_vm2, %v4174_v45  ;;  %v4011_v33 = vmul.f32 %v6764_v31, %v8509_v47  ;;  %v4650_v47 = vld [vmem:[#allocation4 + $0x220] sm:$0xff] }
 0xebd   :  { %5757 = vmatmul.mubr.msk.f32.vlgmr.msra.gmra.mrb[22].mxu0 %vm981_vm2, %v4175_v35  ;;  %6096 = vmatpush3.bf16.msra.mxu1 %v6093_v30  ;;  %v6766_v30 = vpop.eup %6765 }
 0xebe   :  { %6108 = vmatpush3.bf16.msra.mxu0 %v8131_v40  ;;  %v4038_v2 = vpop.permute.xlu0 %4037  ;;  %6098 = vmatprep.subr.bf16.mxu1 %v6097_v36  ;;  %v4012_v18 = vmul.f32 %v6766_v30, %v8489_v57 }
 0xebf   :  { %v4047_v29 = vsel %vm608_vm1, %v3999_v0, %v4038_v2  ;;  %6110 = vmatprep.subr.bf16.mxu0 %v6109_v15  ;;  %v4653_v0 = vld [vmem:[#allocation4 + $0x250] sm:$0xff] }
 0xec0   :  { %5737 = vmatprep.mubr.msk.f32.mxu1 %vm981_vm2, %v4047_v29  ;;  %v6125_v25 = vpack.c.bf16 %v4653_v0, %v4652_v50 }
 0xec1   :  { %6100 = vmatpush3.bf16.msra.mxu1 %v6097_v36  ;;  %v4167_v40 = vpop.permute.xlu1 %4166 }
 0xec2   :  { %6112 = vmatpush3.bf16.msra.mxu0 %v6109_v15  ;;  %v4040_v16 = vpop.permute.xlu0 %4039  ;;  %v4176_v63 = vsel %vm608_vm1, %v4003_v12, %v4167_v40  ;;  %6102 = vmatprep.subr.bf16.mxu1 %v6101_v60  ;;  %v4651_v15 = vld [vmem:[#allocation4 + $0x230] sm:$0xff] }
 0xec3   :  { %v4048_v46 = vsel %vm608_vm1, %v4000_v49, %v4040_v16  ;;  %6114 = vmatprep.subr.bf16.mxu0 %v6113_v9  ;;  %5759 = vmatprep.mubr.msk.f32.mxu0 %vm981_vm2, %v4176_v63  ;;  %v6121_v57 = vpack.c.bf16 %v4651_v15, %v4650_v47  ;;  %v4654_v47 = vld [vmem:[#allocation4 + $0x260] sm:$0xf] }
 0xec4   :  { %5738 = vmatmul.mubr.msk.f32.gmra.mrb[36].mxu1 %vm981_vm2, %v4048_v46 }
 0xec5   :  { %6104 = vmatpush3.bf16.msra.mxu1 %v6101_v60  ;;  %v4169_v62 = vpop.permute.xlu1 %4168 }
 0xec6   :  { %6116 = vmatpush3.bf16.msra.mxu0 %v6113_v9  ;;  %v4177_v44 = vsel %vm608_vm1, %v4004_v61, %v4169_v62  ;;  %v3116_v62 = vld [vmem:[#allocation4 + $0x210] ss:$0 sm:$0xff] }
 0xec7   :  { %v4304_v13 = vpop.permute.xlu0 %4303  ;;  %6118 = vmatprep.subr.bf16.mxu0 %v6117_v24  ;;  %5760 = vmatmul.mubr.msk.f32.gmra.mrb[24].mxu0 %vm981_vm2, %v4177_v44 }
 0xec8   :  { %v4315_v42 = vsel %vm608_vm1, %v4005_v54, %v4304_v13 }
 0xec9   :  { %5778 = vmatprep.mubr.msk.f32.mxu1 %vm981_vm2, %v4315_v42  ;;  %v4306_v32 = vpop.permute.xlu1 %4305 }
 0xeca   :  { %6120 = vmatpush3.bf16.msra.mxu0 %v6117_v24  ;;  %v4316_v38 = vsel %vm608_vm1, %v4006_v26, %v4306_v32 }
 0xecb   :  { %v4445_v37 = vpop.permute.xlu0 %4444  ;;  %5779 = vmatmul.mubr.msk.f32.vlgmr.msra.gmra.mrb[38].mxu1 %vm981_vm2, %v4316_v38  ;;  %6122 = vmatprep.subr.bf16.mxu0 %v6121_v57 }
 0xecc   :  { %v4456_v56 = vsel %vm608_vm1, %v4009_v28, %v4445_v37 }
 0xecd   :  { %5800 = vmatprep.mubr.msk.f32.mxu0 %vm981_vm2, %v4456_v56  ;;  %v4447_v41 = vpop.permute.xlu1 %4446 }
 0xece   :  { %v4457_v52 = vsel %vm608_vm1, %v4010_v21, %v4447_v41 }
 0xecf   :  { %5801 = vmatmul.mubr.msk.f32.vlgmr.msra.gmra.mrb[26].mxu0 %vm981_vm2, %v4457_v52 }
 0xed0   :  { %6124 = vmatpush3.bf16.msra.mxu0 %v6121_v57 }
 0xed1   :  { %v4308_v43 = vpop.permute.xlu0 %4307  ;;  %6126 = vmatprep.subr.bf16.mxu0 %v6125_v25 }
 0xed2   :  { %v4317_v7 = vsel %vm608_vm1, %v4007_v19, %v4308_v43  ;;  %v4310_v39 = vpop.permute.xlu1 %4309 }
 0xed3   :  { %v4318_v34 = vsel %vm608_vm1, %v4008_v14, %v4310_v39  ;;  %5781 = vmatprep.mubr.msk.f32.mxu1 %vm981_vm2, %v4317_v7 }
 0xed4   :  { %5782 = vmatmul.mubr.msk.f32.gmra.mrb[40].mxu1 %vm981_vm2, %v4318_v34  ;;  %6128 = vmatpush3.bf16.msra.mxu0 %v6125_v25 }
 0xed5   :  { %v4449_v17 = vpop.permute.xlu0 %4448 }
 0xed6   :  { %v4458_v1 = vsel %vm608_vm1, %v4011_v33, %v4449_v17  ;;  %v4451_v45 = vpop.permute.xlu1 %4450  ;;  %v6888_v33 = vmov 0.0|0.0   ;;  %v8744_v17 = vmov 0.0  }
 0xed7   :  { %v4459_v11 = vsel %vm608_vm1, %v4012_v18, %v4451_v45  ;;  %5803 = vmatprep.mubr.msk.f32.mxu0 %vm981_vm2, %v4458_v1  ;;  %6129 = vmatprep.subr.bf16.mxu0 %v6888_v33 }
 0xed8   :  { %5804 = vmatmul.mubr.msk.f32.gmra.mrb[28].mxu0 %vm981_vm2, %v4459_v11 }
 0xf8b   :  { %v5736_v35 = vpop.f32.mrb[34].mxu1 }
 0xf8c   :  { %v4139_v51 = vpop.f32.mrb[35].mxu1 }
 0xf90   :  { %v5758_v20 = vpop.f32.mrb[22].mxu0 }
 0xf91   :  { %4587 = vrot.lane.b32.xlu1 %v5758_v20, %s6873_s23  ;;  %v4280_v36 = vpop.f32.mrb[23].mxu0 }
 0xf92   :  { %4585 = vrot.lane.b32.xlu0 %v4280_v36, %s6873_s23 }
 0xf97   :  { %v5739_v27 = vpop.f32.mrb[36].mxu1 }
 0xf98   :  { %v4149_v5 = vpop.f32.mrb[37].mxu1 }
 0xf9a   :  { %v5761_v2 = vpop.f32.mrb[24].mxu0 }
 0xf9b   :  { %4591 = vrot.lane.b32.xlu1 %v5761_v2, %s6873_s23  ;;  %v4290_v29 = vpop.f32.mrb[25].mxu0 }
 0xf9c   :  { %4589 = vrot.lane.b32.xlu0 %v4290_v29, %s6873_s23  ;;  %s6890_s23 = smov 127  }
 0xf9e   :  { %v5780_v12 = vpop.f32.mrb[38].mxu1 }
 0xf9f   :  { %v4421_v60 = vpop.f32.mrb[39].mxu1  ;;  %4603 = vrot.lane.b32.xlu1 %v5780_v12, %s6876_s9 }
 0xfa0   :  { %4601 = vrot.lane.b32.xlu0 %v4421_v60, %s6876_s9 }
 0xfa2   :  { %v5802_v55 = vpop.f32.mrb[26].mxu0 }
 0xfa3   :  { %4619 = vrot.lane.b32.xlu1 %v5802_v55, %s6887_s27  ;;  %v4562_v48 = vpop.f32.mrb[27].mxu0 }
 0xfa4   :  { %4617 = vrot.lane.b32.xlu0 %v4562_v48, %s6887_s27 }
 0xfa7   :  { %v5783_v53 = vpop.f32.mrb[40].mxu1 }
 0xfa8   :  { %v4431_v49 = vpop.f32.mrb[41].mxu1  ;;  %4607 = vrot.lane.b32.xlu1 %v5783_v53, %s6876_s9 }
 0xfa9   :  { %4605 = vrot.lane.b32.xlu0 %v4431_v49, %s6876_s9 }
 0xfab   :  { %v5805_v40 = vpop.f32.mrb[28].mxu0 }
 0xfac   :  { %4623 = vrot.lane.b32.xlu1 %v5805_v40, %s6887_s27  ;;  %v4572_v9 = vpop.f32.mrb[29].mxu0 }
 0xfad   :  { %4621 = vrot.lane.b32.xlu0 %v4572_v9, %s6887_s27 }
0x1003   :  { %v4588_v16 = vpop.permute.xlu1 %4587 }
0x1004   :  { %v4586_v63 = vpop.permute.xlu0 %4585  ;;  %v4630_v24 = vsel %vm61_vm0, %v5736_v35, %v4588_v16 }
0x1005   :  { %v4629_v54 = vsel %vm61_vm0, %v4139_v51, %v4586_v63 }
0x100d   :  { %v4592_v22 = vpop.permute.xlu1 %4591 }
0x100e   :  { %v4590_v46 = vpop.permute.xlu0 %4589  ;;  %v4632_v59 = vsel %vm61_vm0, %v5739_v27, %v4592_v22 }
0x100f   :  { %v4631_v41 = vsel %vm61_vm0, %v4149_v5, %v4590_v46 }
0x1011   :  { %v4604_v61 = vpop.permute.xlu1 %4603 }
0x1012   :  { %v4602_v3 = vpop.permute.xlu0 %4601  ;;  %v4634_v44 = vsel %vm3084_vm4, %v4630_v24, %v4604_v61 }
0x1013   :  { %v4633_v13 = vsel %vm3084_vm4, %v4629_v54, %v4602_v3 }
0x1015   :  { %v4620_v58 = vpop.permute.xlu1 %4619 }
0x1016   :  { %v4639_v42 = vsel %vm4637_vm7, %v4634_v44, %v4620_v58  ;;  %v4618_v26 = vpop.permute.xlu0 %4617  ;;  %v6816_v44 = vld [vmem:[#allocation2 + $0x20] sm:$0xff] }
0x1017   :  { %v4643_v8 = vadd.f32 %v4639_v42, %v3116_v62  ;;  %v4638_v32 = vsel %vm4637_vm7, %v4633_v13, %v4618_v26 }
0x1018   :  { %v4642_v28 = vadd.f32 %v4638_v32, %v3116_v62 }
0x1019   :  { %v4647_v56 = vmax.f32 %v4643_v8, 0.0 }
0x101a   :  { %v4646_v38 = vmax.f32 %v4642_v28, 0.0  ;;  %v4608_v37 = vpop.permute.xlu1 %4607 }
0x101b   :  { %v4606_v21 = vpop.permute.xlu0 %4605  ;;  %v4636_v10 = vsel %vm3084_vm4, %v4632_v59, %v4608_v37 }
0x101c   :  { %5814 = vmatprep.mubr.msk.f32.mxu0 %vm608_vm1, %v4646_v38  ;;  %v4635_v19 = vsel %vm3084_vm4, %v4631_v41, %v4606_v21 }
0x101d   :  { %5815 = vmatmul.mubr.msk.f32.vlgmr.msra.gmra.mrb[30].mxu0 %vm608_vm1, %v4647_v56 }
0x101e   :  { %v4624_v52 = vpop.permute.xlu1 %4623 }
0x101f   :  { %v4641_v31 = vsel %vm4637_vm7, %v4636_v10, %v4624_v52  ;;  %v4622_v43 = vpop.permute.xlu0 %4621 }
0x1020   :  { %v4645_v14 = vadd.f32 %v4641_v31, %v3116_v62  ;;  %v4640_v30 = vsel %vm4637_vm7, %v4635_v19, %v4622_v43 }
0x1021   :  { %v4644_v7 = vadd.f32 %v4640_v30, %v3116_v62  ;;  %v6818_v30 = vld [vmem:[#allocation2 + $0x38] sm:$0xff] }
0x1022   :  { %v4649_v34 = vmax.f32 %v4645_v14, 0.0 }
0x1023   :  { %v4648_v39 = vmax.f32 %v4644_v7, 0.0 }
0x1025   :  { %5817 = vmatprep.mubr.msk.f32.mxu0 %vm608_vm1, %v4648_v39 }
0x1026   :  { %5818 = vmatmul.mubr.msk.f32.gmra.mrb[32].mxu0 %vm608_vm1, %v4649_v34 }
0x1027   :  { %5828 = vmatprep.mubr.msk.f32.mxu0 %vm6889_vm8, %v8744_v17 }
0x10f0   :  { %v8646_v18 = vpop.f32.mrb[30].mxu0 }
0x10f1   :  { %v8648_v1 = vpop.f32.mrb[31].mxu0 }
0x10f2   :  { %v6373_v45 = vpack.i.bf16 %v8646_v18, %v8648_v1  ;;  %v6130_v11 = vpack.c.bf16 %v8646_v18, %v8648_v1 }
0x10f4   :  { %6132 = vmatpush3.bf16.xpose.msk.msra.mxu0 %vm6131_vm10, %v6130_v11  ;;  %6138 = vmatprep.subr.bf16.mxu1 %v6130_v11 }
0x10f5   :  { %6140 = vmatpush3.bf16.msra.mxu1 %v6130_v11  ;;  %6133 = vmatprep.subr.bf16.mxu0 %v6888_v33  ;;  %v6819_v33 = vld [vmem:[#allocation2] sm:$0xff] }
0x10f9   :  { %v8656_v35 = vpop.f32.mrb[32].mxu0 }
0x10fa   :  { %v8658_v51 = vpop.f32.mrb[33].mxu0 }
0x10fb   :  { %v6378_v20 = vpack.i.bf16 %v8656_v35, %v8658_v51  ;;  %v6134_v36 = vpack.c.bf16 %v8656_v35, %v8658_v51 }
0x10fd   :  { %6136 = vmatpush3.bf16.xpose.msk.msra.mxu0 %vm6131_vm10, %v6134_v36  ;;  %6142 = vmatprep.subr.bf16.mxu1 %v6134_v36 }
0x10fe   :  { %6144 = vmatpush3.bf16.msra.mxu1 %v6134_v36 }
0x1104   :  { %5829 = vmatmul.mubr.msk.f32.vlgmr.msra.gmra.mrb[34].mxu0 %vm4753_vm9, %v4654_v47 }
0x11d7   :  { %v4835_v15 = vpop.f32.mrb[34].mxu0 }
0x11d8   :  { %v4861_v57 = vrot.slane %v4835_v15, %v6997_v6  ;;  %v5830_v27 = vpop.f32.mrb[35].mxu0  ;;  %v4842_v5 = vrot.slane %v4835_v15, %v6994_v4  ;;  %v4884_v50 = vrot.slane %v4835_v15, %v8743_v23 }
0x11da   :  { %4867 = vbcast.lane.b32.xlu1 %v4861_v57, 264  ;;  %4863 = vbcast.lane.b32.xlu0 %v4861_v57, 256  ;;  %v4885_v0 = vcombine.high %v4884_v50, %v4884_v50  ;;  %v4892_v29 = vrot.slane %v4884_v50, %v8743_v23 }
0x11dc   :  { %v4899_v25 = vrot.slane %v4885_v0, %v8743_v23  ;;  %v4900_v53 = vcombine.high %v4892_v29, %v4892_v29  ;;  %v6815_v23 = vld [vmem:[#allocation2 + $0x28] sm:$0xff] }
0x11de   :  { %4875 = vbcast.lane.b32.xlu1 %v4861_v57, 280  ;;  %4871 = vbcast.lane.b32.xlu0 %v4861_v57, 272  ;;  %v4901_v2 = vcombine.high %v4899_v25, %v4899_v25  ;;  %v4905_v3 = vrot.slane %v4900_v53, %v6994_v4  ;;  %v6820_v57 = vld [vmem:[#allocation2 + $0x8] sm:$0xff] }
0x11e0   :  { %v4909_v6 = vrot.slane %v4901_v2, %v6994_v4  ;;  %v6817_v4 = vld [vmem:[#allocation2 + $0x30] sm:$0xff]  ;;  %v6822_v2 = vld [vmem:[#allocation2 + $0x18] sm:$0xff] }
0x11e2   :  { %4848 = vbcast.lane.b32.xlu1 %v4842_v5, 264  ;;  %4844 = vbcast.lane.b32.xlu0 %v4842_v5, 256 }
0x11e6   :  { %4856 = vbcast.lane.b32.xlu1 %v4842_v5, 280  ;;  %4852 = vbcast.lane.b32.xlu0 %v4842_v5, 272  ;;  %v6821_v5 = vld [vmem:[#allocation2 + $0x10] sm:$0xff] }
0x124c   :  { %v4868_v12 = vpop.permute.xlu1 %4867  ;;  %v4864_v60 = vpop.permute.xlu0 %4863 }
0x124d   :  { %v4917_v55 = vadd.f32 %v4909_v6, %v4868_v12  ;;  %v4916_v48 = vadd.f32 %v4909_v6, %v4864_v60 }
0x124f   :  { %v4925_v49 = vmul.f32 0.2, %v4917_v55  ;;  %v4924_v40 = vmul.f32 0.2, %v4916_v48 }
0x1250   :  { %v4876_v9 = vpop.permute.xlu1 %4875  ;;  %v4872_v16 = vpop.permute.xlu0 %4871 }
0x1251   :  { %v4933_v63 = vmax.f32 %v4917_v55, %v4925_v49  ;;  %v4932_v22 = vmax.f32 %v4916_v48, %v4924_v40  ;;  %v4919_v46 = vadd.f32 %v4909_v6, %v4876_v9  ;;  %v4918_v61 = vadd.f32 %v4909_v6, %v4872_v16 }
0x1253   :  { %v4927_v24 = vmul.f32 0.2, %v4919_v46  ;;  %v4926_v62 = vmul.f32 0.2, %v4918_v61  ;;  %v4941_v54 = vadd.f32 %v6815_v23, %v4933_v63  ;;  %v4940_v58 = vadd.f32 %v6816_v44, %v4932_v22 }
0x1254   :  { %v4849_v13 = vpop.permute.xlu1 %4848  ;;  %v4845_v42 = vpop.permute.xlu0 %4844 }
0x1255   :  { %v4934_v26 = vmax.f32 %v4918_v61, %v4926_v62  ;;  %v4913_v8 = vadd.f32 %v4905_v3, %v4849_v13  ;;  %v4912_v32 = vadd.f32 %v4905_v3, %v4845_v42  ;;  %v4935_v28 = vmax.f32 %v4919_v46, %v4927_v24 }
0x1256   :  { %v4959_v38 = vsel %vm608_vm1, %v4941_v54, -inf  ;;  %v4956_v37 = vsel %vm608_vm1, %v4940_v58, -inf }
0x1257   :  { %v4921_v56 = vmul.f32 0.2, %v4913_v8  ;;  %v4920_v21 = vmul.f32 0.2, %v4912_v32  ;;  %4960 = vmax.xlane.f32.xlu1 %v4959_v38  ;;  %4957 = vmax.xlane.f32.xlu0 %v4956_v37  ;;  %v4942_v59 = vadd.f32 %v6817_v4, %v4934_v26  ;;  %v4943_v7 = vadd.f32 %v6818_v30, %v4935_v28 }
0x1258   :  { %v4857_v41 = vpop.permute.xlu1 %4856  ;;  %v4853_v10 = vpop.permute.xlu0 %4852 }
0x1259   :  { %v4928_v52 = vmax.f32 %v4912_v32, %v4920_v21  ;;  %v4915_v19 = vadd.f32 %v4905_v3, %v4857_v41  ;;  %v4914_v31 = vadd.f32 %v4905_v3, %v4853_v10  ;;  %v4929_v43 = vmax.f32 %v4913_v8, %v4921_v56 }
0x125a   :  { %v4962_v14 = vsel %vm608_vm1, %v4942_v59, -inf  ;;  %v4965_v15 = vsel %vm608_vm1, %v4943_v7, -inf }
0x125b   :  { %v4923_v39 = vmul.f32 0.2, %v4915_v19  ;;  %v4922_v34 = vmul.f32 0.2, %v4914_v31  ;;  %4963 = vmax.xlane.f32.xlu0 %v4962_v14  ;;  %v4936_v17 = vadd.f32 %v6819_v33, %v4928_v52  ;;  %v4937_v27 = vadd.f32 %v6820_v57, %v4929_v43 }
0x125d   :  { %v4930_v11 = vmax.f32 %v4914_v31, %v4922_v34  ;;  %v4944_v36 = vsel %vm608_vm1, %v4936_v17, -inf  ;;  %v4931_v47 = vmax.f32 %v4915_v19, %v4923_v39  ;;  %v4947_v25 = vsel %vm608_vm1, %v4937_v27, -inf }
0x125e   :  { %4945 = vmax.xlane.f32.xlu1 %v4944_v36 }
0x125f   :  { %4966 = vmax.xlane.f32.xlu0 %v4965_v15  ;;  %v4938_v50 = vadd.f32 %v6821_v5, %v4930_v11  ;;  %v4939_v29 = vadd.f32 %v6822_v2, %v4931_v47 }
0x1261   :  { %v4950_v0 = vsel %vm608_vm1, %v4938_v50, -inf  ;;  %v4953_v6 = vsel %vm608_vm1, %v4939_v29, -inf }
0x1262   :  { %4951 = vmax.xlane.f32.xlu1 %v4950_v0 }
0x1263   :  { %4948 = vmax.xlane.f32.xlu0 %v4947_v25 }
0x1267   :  { %4954 = vmax.xlane.f32.xlu0 %v4953_v6 }
0x12e4   :  { %v4961_v12 = vpop.xlane.xlu1 %4960  ;;  %v4958_v60 = vpop.xlane.xlu0 %4957 }
0x12e5   :  { %v4973_v55 = vsub.f32 %v4941_v54, %v4961_v12  ;;  %v4972_v48 = vsub.f32 %v4940_v58, %v4958_v60 }
0x12e7   :  { %v4986_v53 = vmul.f32 1.442695, %v4973_v55  ;;  %v4984_v49 = vmul.f32 1.442695, %v4972_v48 }
0x12e8   :  { %v4964_v40 = vpop.xlane.xlu0 %4963 }
0x12e9   :  { %6767 = vpow2.f32 %v4986_v53  ;;  %v4974_v9 = vsub.f32 %v4942_v59, %v4964_v40 }
0x12ea   :  { %6769 = vpow2.f32 %v4984_v49 }
0x12eb   :  { %v4988_v16 = vmul.f32 1.442695, %v4974_v9  ;;  %v4946_v13 = vpop.xlane.xlu1 %4945 }
0x12ec   :  { %v4967_v63 = vpop.xlane.xlu0 %4966  ;;  %v4968_v26 = vsub.f32 %v4936_v17, %v4946_v13 }
0x12ed   :  { %6771 = vpow2.f32 %v4988_v16  ;;  %v4975_v22 = vsub.f32 %v4943_v7, %v4967_v63 }
0x12ee   :  { %v4976_v28 = vmul.f32 1.442695, %v4968_v26 }
0x12ef   :  { %v4990_v46 = vmul.f32 1.442695, %v4975_v22  ;;  %v4952_v8 = vpop.xlane.xlu1 %4951 }
0x12f0   :  { %v4949_v42 = vpop.xlane.xlu0 %4948  ;;  %v4970_v38 = vsub.f32 %v4938_v50, %v4952_v8 }
0x12f1   :  { %6773 = vpow2.f32 %v4990_v46  ;;  %v4969_v32 = vsub.f32 %v4937_v27, %v4949_v42 }
0x12f2   :  { %6775 = vpow2.f32 %v4976_v28  ;;  %v4980_v4 = vmul.f32 1.442695, %v4970_v38 }
0x12f3   :  { %v8680_v61 = vpop.eup %6767  ;;  %v4978_v56 = vmul.f32 1.442695, %v4969_v32 }
0x12f4   :  { %v6770_v3 = vpop.eup %6769  ;;  %v5007_v24 = vsel %vm608_vm1, %v8680_v61, 0.0  ;;  %v4955_v37 = vpop.xlane.xlu0 %4954 }
0x12f5   :  { %5008 = vadd.xlane.f32.xlu0 %v5007_v24  ;;  %v5004_v62 = vsel %vm608_vm1, %v6770_v3, 0.0  ;;  %v4971_v21 = vsub.f32 %v4939_v29, %v4955_v37  ;;  %6777 = vpow2.f32 %v4978_v56 }
0x12f6   :  { %5005 = vadd.xlane.f32.xlu1 %v5004_v62  ;;  %6779 = vpow2.f32 %v4980_v4 }
0x12f7   :  { %v6772_v23 = vpop.eup %6771  ;;  %v4982_v59 = vmul.f32 1.442695, %v4971_v21 }
0x12f8   :  { %v5010_v54 = vsel %vm608_vm1, %v6772_v23, 0.0 }
0x12f9   :  { %6781 = vpow2.f32 %v4982_v59 }
0x12fa   :  { %5011 = vadd.xlane.f32.xlu1 %v5010_v54 }
0x12fb   :  { %v8686_v44 = vpop.eup %6773 }
0x12fc   :  { %v5013_v58 = vsel %vm608_vm1, %v8686_v44, 0.0  ;;  %v6776_v18 = vpop.eup %6775 }
0x12fd   :  { %5014 = vadd.xlane.f32.xlu0 %v5013_v58 }
0x12ff   :  { %v6778_v1 = vpop.eup %6777 }
0x1300   :  { %v6780_v35 = vpop.eup %6779  ;;  %v4995_v51 = vsel %vm608_vm1, %v6778_v1, 0.0 }
0x1301   :  { %v4998_v41 = vsel %vm608_vm1, %v6780_v35, 0.0 }
0x130b   :  { %6374 = vrot.lane.b32.xlu1 %v6373_v45, %s6890_s23  ;;  %v4992_v45 = vsel %vm608_vm1, %v6776_v18, 0.0 }
0x1313   :  { %6379 = vrot.lane.b32.xlu0 %v6378_v20, %s6890_s23  ;;  %v6782_v20 = vpop.eup %6781 }
0x1314   :  { %v5001_v10 = vsel %vm608_vm1, %v6782_v20, 0.0 }
0x132f   :  { %4993 = vadd.xlane.f32.xlu1 %v4992_v45 }
0x1332   :  { %4996 = vadd.xlane.f32.xlu0 %v4995_v51 }
0x1333   :  { %4999 = vadd.xlane.f32.xlu1 %v4998_v41 }
0x1336   :  { %5002 = vadd.xlane.f32.xlu0 %v5001_v10 }
0x1382   :  { %v5009_v19 = vpop.xlane.xlu0 %5008 }
0x1383   :  { %v5006_v52 = vpop.xlane.xlu1 %5005 }
0x1384   :  { %6783 = vrcp.f32 %v5006_v52 }
0x1385   :  { %6785 = vrcp.f32 %v5009_v19 }
0x1387   :  { %v5012_v31 = vpop.xlane.xlu1 %5011 }
0x1388   :  { %6787 = vrcp.f32 %v5012_v31 }
0x138a   :  { %v5015_v43 = vpop.xlane.xlu0 %5014 }
0x138b   :  { %v6375_v14 = vpop.permute.xlu1 %6374  ;;  %6789 = vrcp.f32 %v5015_v43 }
0x138c   :  { %v6377_v30 = vunpack.i.h.bf16 %v6375_v14  ;;  %v6376_v7 = vunpack.i.l.bf16 %v6375_v14 }
0x138e   :  { %v6784_v39 = vpop.eup %6783  ;;  %v6145_v34 = vpack.c.bf16 %v6377_v30, %v6376_v7  ;;  %v6380_v33 = vpop.permute.xlu0 %6379 }
0x138f   :  { %v6382_v17 = vunpack.i.h.bf16 %v6380_v33  ;;  %v6381_v11 = vunpack.i.l.bf16 %v6380_v33  ;;  %v5028_v36 = vmul.f32 %v6784_v39, %v6770_v3  ;;  %v6786_v47 = vpop.eup %6785 }
0x1390   :  { %6146 = vmatprep.subr.bf16.mxu1 %v6145_v34  ;;  %v5029_v5 = vmul.f32 %v6786_v47, %v8680_v61 }
0x1391   :  { %v6149_v15 = vpack.c.bf16 %v6382_v17, %v6381_v11  ;;  %5036 = vrot.lane.b32.xlu1 %v5028_v36, %s6879_s20  ;;  %6148 = vmatpush3.bf16.msra.mxu1 %v6145_v34 }
0x1392   :  { %v6788_v57 = vpop.eup %6787 }
0x1393   :  { %6150 = vmatprep.subr.bf16.mxu1 %v6149_v15  ;;  %v5030_v27 = vmul.f32 %v6788_v57, %v6772_v23  ;;  %v4655_v23 = vld [vmem:[#allocation4 + $0x270] ss:$0 sm:$0xff] }
0x1395   :  { %v6790_v50 = vpop.eup %6789  ;;  %5040 = vrot.lane.b32.xlu0 %v5030_v27, %s6879_s20  ;;  %5038 = vrot.lane.b32.xlu1 %v5029_v5, %s6879_s20 }
0x1396   :  { %6152 = vmatpush3.bf16.msra.mxu1 %v6149_v15  ;;  %v5031_v0 = vmul.f32 %v6790_v50, %v8686_v44 }
0x1399   :  { %5042 = vrot.lane.b32.xlu1 %v5031_v0, %s6879_s20 }
0x13bc   :  { %v4994_v25 = vpop.xlane.xlu1 %4993 }
0x13bd   :  { %6791 = vrcp.f32 %v4994_v25 }
0x13bf   :  { %v4997_v2 = vpop.xlane.xlu0 %4996 }
0x13c0   :  { %v5000_v29 = vpop.xlane.xlu1 %4999  ;;  %6793 = vrcp.f32 %v4997_v2 }
0x13c1   :  { %6795 = vrcp.f32 %v5000_v29 }
0x13c3   :  { %v5003_v6 = vpop.xlane.xlu0 %5002 }
0x13c4   :  { %6797 = vrcp.f32 %v5003_v6 }
0x13c7   :  { %v6792_v12 = vpop.eup %6791 }
0x13c8   :  { %v5024_v55 = vmul.f32 %v6792_v12, %v6776_v18 }
0x13ca   :  { %v6794_v60 = vpop.eup %6793 }
0x13cb   :  { %v6796_v48 = vpop.eup %6795  ;;  %v5025_v40 = vmul.f32 %v6794_v60, %v6778_v1 }
0x13cc   :  { %v5026_v9 = vmul.f32 %v6796_v48, %v6780_v35 }
0x13ce   :  { %v6798_v16 = vpop.eup %6797 }
0x13cf   :  { %v5027_v3 = vmul.f32 %v6798_v16, %v6782_v20 }
0x1403   :  { %v5037_v53 = vpop.permute.xlu1 %5036 }
0x1404   :  { %v5048_v49 = vsel %vm608_vm1, %v5024_v55, %v5037_v53 }
0x1405   :  { %5847 = vmatprep.mubr.msk.f32.mxu1 %vm981_vm2, %v5048_v49 }
0x1407   :  { %v5039_v63 = vpop.permute.xlu1 %5038  ;;  %v5041_v22 = vpop.permute.xlu0 %5040 }
0x1408   :  { %v5049_v46 = vsel %vm608_vm1, %v5025_v40, %v5039_v63  ;;  %v5050_v61 = vsel %vm608_vm1, %v5026_v9, %v5041_v22 }
0x1409   :  { %5848 = vmatmul.mubr.msk.f32.vlgmr.msra.gmra.mrb[42].mxu1 %vm981_vm2, %v5049_v46 }
0x140a   :  { %5850 = vmatprep.mubr.msk.f32.mxu1 %vm981_vm2, %v5050_v61 }
0x140b   :  { %v5043_v24 = vpop.permute.xlu1 %5042 }
0x140c   :  { %v5051_v62 = vsel %vm608_vm1, %v5027_v3, %v5043_v24 }
0x140d   :  { %5851 = vmatmul.mubr.msk.f32.gmra.mrb[44].mxu1 %vm981_vm2, %v5051_v62 }
0x14dc   :  { %v5849_v54 = vpop.f32.mrb[42].mxu1 }
0x14dd   :  { %v5148_v44 = vadd.f32 %v5849_v54, %v4655_v23  ;;  %v5142_v58 = vpop.f32.mrb[43].mxu1 }
0x14de   :  { %v5143_v13 = vadd.f32 %v5142_v58, %v4655_v23 }
0x14df   :  { %5163 = vst.msk [vmem:[%s8729_s3 + $0x8] sm:$0xff] %vm5161_vm11, %v5148_v44 }
0x14e0   :  { %5162 = vst.msk [vmem:[%s8729_s3] sm:$0xff] %vm5161_vm11, %v5143_v13  ;;  %v5852_v42 = vpop.f32.mrb[44].mxu1 }
0x14e1   :  { %v5158_v26 = vadd.f32 %v5852_v42, %v4655_v23  ;;  %v5152_v8 = vpop.f32.mrb[45].mxu1 }
0x14e2   :  { %v5153_v32 = vadd.f32 %v5152_v8, %v4655_v23 }
0x14e3   :  { %5165 = vst.msk [vmem:[%s8729_s3 + $0x18] sm:$0xff] %vm5161_vm11, %v5158_v26 }
0x14e4   :  { %5164 = vst.msk [vmem:[%s8729_s3 + $0x10] sm:$0xff] %vm5161_vm11, %v5153_v32 }
0x14e5   :  { %5170 = vsyncpa [#allocation3], 1 }
0x14e6   :  { %5171 = vsyncpa [#allocation5], 1 }

</bundles_post_ra>
